<compile_context>
chip_gen: v7x
topology: tpu7x:2x2x1
jax: 0.10.0
libtpu: 0.0.40
codegen_flags: <defaults>
</compile_context>

<pallas_src>
import functools

import jax
import jax.numpy as jnp
import numpy as np
from jax.experimental import pallas as pl
from jax.experimental.pallas import tpu as pltpu

EPS = 1e-5
K = 5  # conv kernel size (padding = 2)

_VMEM = pl.BlockSpec(memory_space=pltpu.MemorySpace.VMEM)
_COMPILER_PARAMS = pltpu.CompilerParams(vmem_limit_bytes=32 * 1024 * 1024)


# ------------------------------ Pallas kernel ------------------------------- #

def _cnn_kernel(a1_ref, b1e_ref, b1o_ref, g1_ref, be1_ref,
                b2e_ref, b2o_ref, g2_ref, be2_ref, fw_ref, fb_ref,
                o_ref, *, n, eps):
    f32 = jnp.float32
    bf16 = jnp.bfloat16

    def conv_bn_relu_wpool(slab, band_e, band_o, g_ref, b_ref, hp, c_out):
        """Conv (5 dy-tap bf16 matmuls per width parity, SAME padding folded into the bands)
        + batch-stat BN + width-pair max + ReLU.

        slab   : (n*hp+4, w_in*c_in) bf16, rows = image-stacked & height-padded.
        band_* : (5, w_in*c_in, wp*c_out) bf16 refs (even / odd output widths).
        Returns (n*hp, wp*c_out) f32.  Rows whose 5-row window crosses an image boundary
        hold garbage but are masked out of the BN stats and are never selected by the
        downstream placement matmuls.
        """
        rows = slab.shape[0] - (K - 1)
        lanes = band_e.shape[2]
        acc_e = jnp.zeros((rows, lanes), f32)
        acc_o = jnp.zeros((rows, lanes), f32)
        for dy in range(K):                      # dy-tap accumulation: no lane-misaligned concat
            lhs = slab[dy:dy + rows, :]
            acc_e = acc_e + jnp.dot(lhs, band_e[dy], preferred_element_type=f32)
            acc_o = acc_o + jnp.dot(lhs, band_o[dy], preferred_element_type=f32)

        # per-channel batch statistics over the valid conv rows only
        ri = jax.lax.broadcasted_iota(jnp.int32, (rows, 1), 0) % hp
        mask = ((ri >= 2) & (ri < hp - 2)).astype(f32)
        count = float((rows // hp) * (hp - 4) * 2 * (lanes // c_out))  # N * H * W
        # 0/1 maps between the (w, c) lane space and the channel space (iota compares,
        # applied with tiny matmuls -> per-channel stats without any in-kernel reshapes)
        red = (jax.lax.broadcasted_iota(jnp.int32, (lanes, c_out), 0) % c_out ==
               jax.lax.broadcasted_iota(jnp.int32, (lanes, c_out), 1)).astype(f32)
        expand = (jax.lax.broadcasted_iota(jnp.int32, (c_out, lanes), 1) % c_out ==
                  jax.lax.broadcasted_iota(jnp.int32, (c_out, lanes), 0)).astype(f32)

        tot = jnp.sum((acc_e + acc_o) * mask, axis=0, keepdims=True)          # (1, lanes)
        mean_l = jnp.dot(jnp.dot(tot, red) / count, expand)                   # (1, lanes)
        cen_e = acc_e - mean_l
        cen_o = acc_o - mean_l
        ssq = jnp.sum((cen_e * cen_e + cen_o * cen_o) * mask, axis=0, keepdims=True)
        var_c = jnp.dot(ssq, red) / count                                     # (1, c_out)
        scale_l = jnp.dot(g_ref[...] * jax.lax.rsqrt(var_c + eps), expand)
        shift_l = jnp.dot(b_ref[...], expand)
        # BN (gamma may be negative, so normalize both parities before the max),
        # then width-direction pool max, then ReLU.
        return jnp.maximum(jnp.maximum(cen_e * scale_l + shift_l,
                                       cen_o * scale_l + shift_l), 0.0)

    def sel01(cond):
        # bool -> bf16 via f32: keeps the in-kernel 0/1 placement matrices MXU-native bf16
        return cond.astype(f32).astype(bf16)

    # ------------------------------- layer 1 -------------------------------- #
    wm1 = conv_bn_relu_wpool(a1_ref[...], b1e_ref, b1o_ref, g1_ref, be1_ref,
                             hp=32, c_out=16)                                  # (n*32, 224)
    hm1 = jnp.maximum(wm1[:-1, :], wm1[1:, :]).astype(bf16)                    # height-pair max

    # ONE placement matmul: pooled row (image b, height i) at hm1 row b*32+2i+2 -> row
    # b*18+i+4 of the height-padded layer-2 slab (pad rows come out as exact zeros).
    r1 = jax.lax.broadcasted_iota(jnp.int32, (n * 18 + 4, n * 32 - 1), 0)
    s1 = jax.lax.broadcasted_iota(jnp.int32, (n * 18 + 4, n * 32 - 1), 1)
    t = s1 - 2
    p1 = sel01((t >= 0) & ((t & 1) == 0) & ((t & 31) < 28) &
               (r1 == (t >> 5) * 18 + ((t & 31) >> 1) + 4))
    slab2 = jnp.dot(p1, hm1, preferred_element_type=f32).astype(bf16)          # (n*18+4, 224)

    # ------------------------------- layer 2 -------------------------------- #
    wm2 = conv_bn_relu_wpool(slab2, b2e_ref, b2o_ref, g2_ref, be2_ref,
                             hp=18, c_out=32)                                  # (n*18, 224)
    hm2 = jnp.maximum(wm2[:-1, :], wm2[1:, :]).astype(bf16)

    # pooled row (image b, height i) at hm2 row b*18+2i+2 -> row i*8+b (8-row groups keep
    # the FC accumulation slices sublane-aligned; requires n <= 8).
    r2 = jax.lax.broadcasted_iota(jnp.int32, (7 * 8, n * 18 - 1), 0)
    s2 = jax.lax.broadcasted_iota(jnp.int32, (7 * 8, n * 18 - 1), 1)
    p2 = sel01(((r2 & 7) < n) & (s2 == (r2 & 7) * 18 + ((r2 >> 3) << 1) + 2))
    m2 = jnp.dot(p2, hm2, preferred_element_type=f32)                          # (56, 224) f32

    # --------- FC: flatten folded into permuted weights, accumulated over i --------- #
    out = jnp.zeros((8, fw_ref.shape[1]), f32)
    for i in range(7):
        out = out + jnp.dot(m2[i * 8:(i + 1) * 8, :],
                            fw_ref[i * 224:(i + 1) * 224, :],
                            preferred_element_type=f32)
    o_ref[...] = (out + fb_ref[...])[:n]


# ------------------------------- glue (JAX) --------------------------------- #

def _band_weights(w, w_in, parity):
    """(Cout, Cin, 5, 5) conv weights -> per-dy-tap banded matrices for a SAME-padding conv
    restricted to output widths of the given parity (the width half of the 2x2 max pool):
    shape (5, w_in*Cin, (w_in//2)*Cout), bf16."""
    cout, cin, k, _ = w.shape
    wp = w_in // 2
    sel = np.zeros((k, w_in, wp), np.float32)
    for dx in range(k):
        for j in range(wp):
            wi = 2 * j + parity + dx - 2
            if 0 <= wi < w_in:
                sel[dx, wi, j] = 1.0
    band = jnp.einsum("ocdx,xij->dicjo", w, sel)           # (k, w_in, cin, wp, cout)
    return band.reshape(k, w_in * cin, wp * cout).astype(jnp.bfloat16)


def cnn_forward(x_nchw, params):
    n = x_nchw.shape[0]
    nout = params["fc_w"].shape[0]
    assert x_nchw.shape[1:] == (1, 28, 28) and n <= 8  # TODO(synk): grid over batch for n > 8

    # layer-1 slab: rows = n*32 + 4 (per-image height pad + 2 guard rows each end),
    # lanes = 28 (width, unpadded -- SAME width padding lives in the banded weights)
    xp = jnp.pad(x_nchw[:, 0].astype(jnp.float32), ((0, 0), (2, 2), (0, 0)))   # (N, 32, 28)
    a1 = jnp.pad(xp.reshape(n * 32, 28), ((2, 2), (0, 0))).astype(jnp.bfloat16)

    b1e = _band_weights(params["w1"], 28, 0)   # (5, 28, 224)
    b1o = _band_weights(params["w1"], 28, 1)
    b2e = _band_weights(params["w2"], 14, 0)   # (5, 224, 224)
    b2o = _band_weights(params["w2"], 14, 1)

    # PyTorch flattens (N, C, 7, 7) as c*49 + i*7 + j; the kernel produces (i, j, c), so the
    # transpose is folded into a one-time row permutation of fc_w.
    i_, j_, c_ = np.meshgrid(np.arange(7), np.arange(7), np.arange(32), indexing="ij")
    fw_perm = params["fc_w"].T[(c_ * 49 + i_ * 7 + j_).reshape(-1)]            # (1568, nout)
    fcb = params["fc_b"].reshape(1, -1)

    return pl.pallas_call(
        functools.partial(_cnn_kernel, n=n, eps=EPS),
        out_shape=jax.ShapeDtypeStruct((n, nout), jnp.float32),
        in_specs=[_VMEM] * 11,
        out_specs=_VMEM,
        compiler_params=_COMPILER_PARAMS,
    )(a1, b1e, b1o, params["g1"].reshape(1, -1), params["be1"].reshape(1, -1),
      b2e, b2o, params["g2"].reshape(1, -1), params["be2"].reshape(1, -1),
      fw_perm, fcb)


# --------------------------- pure-JAX reference ----------------------------- #

def cnn_reference(x, params, eps=EPS):
    def conv(x, w, b):
        y = jax.lax.conv_general_dilated(
            x, w, window_strides=(1, 1), padding=((2, 2), (2, 2)),
            dimension_numbers=("NCHW", "OIHW", "NCHW"))
        return y + b.reshape(1, -1, 1, 1)

    def bn_relu(y, g, be):
        mean = jnp.mean(y, axis=(0, 2, 3), keepdims=True)
        var = jnp.mean(jnp.square(y - mean), axis=(0, 2, 3), keepdims=True)
        y = (y - mean) * g.reshape(1, -1, 1, 1) / jnp.sqrt(var + eps) + be.reshape(1, -1, 1, 1)
        return jnp.maximum(y, 0.0)

    def pool(y):
        n, c, h, w = y.shape
        return jnp.max(y.reshape(n, c, h // 2, 2, w // 2, 2), axis=(3, 5))

    y = pool(bn_relu(conv(x, params["w1"], params["b1"]), params["g1"], params["be1"]))
    y = pool(bn_relu(conv(y, params["w2"], params["b2"]), params["g2"], params["be2"]))
    y = y.reshape(y.shape[0], -1)
    return y @ params["fc_w"].T + params["fc_b"]


# ----------------------------------- main ----------------------------------- #

if __name__ == "__main__":
    key = jax.random.PRNGKey(0)
    ks = jax.random.split(key, 11)
    params = {
        "w1": 0.10 * jax.random.normal(ks[0], (16, 1, 5, 5), jnp.float32),
        "b1": 0.05 * jax.random.normal(ks[1], (16,), jnp.float32),
        "g1": 1.0 + 0.1 * jax.random.normal(ks[2], (16,), jnp.float32),
        "be1": 0.10 * jax.random.normal(ks[3], (16,), jnp.float32),
        "w2": 0.05 * jax.random.normal(ks[4], (32, 16, 5, 5), jnp.float32),
        "b2": 0.05 * jax.random.normal(ks[5], (32,), jnp.float32),
        "g2": 1.0 + 0.1 * jax.random.normal(ks[6], (32,), jnp.float32),
        "be2": 0.10 * jax.random.normal(ks[7], (32,), jnp.float32),
        "fc_w": 0.02 * jax.random.normal(ks[8], (10, 7 * 7 * 32), jnp.float32),
        "fc_b": 0.02 * jax.random.normal(ks[9], (10,), jnp.float32),
    }
    x = jax.random.normal(ks[10], (2, 1, 28, 28), jnp.float32)  # MNIST-like NCHW

    out = jax.jit(cnn_forward)(x, params)
    out = jax.block_until_ready(out)
    assert out.shape == (2, 10)

    ref = cnn_reference(x, params)
    # bf16 MXU inputs (activations / conv weights / pooled slabs) vs. full-f32 reference.
    np.testing.assert_allclose(np.asarray(out), np.asarray(ref), rtol=3e-2, atol=3e-2)

    print("KERNEL_OK")
</pallas_src>

<mosaic_0001>
module attributes {stable_mosaic.version = 11 : i64} {
  func.func private @main(%arg0: i32) attributes {dimension_semantics = [#tpu.dimension_semantics<core_parallel>], iteration_bounds = array<i64: 2>, tpu.core_type = #tpu.core_type<sc_scalar_subcore>, window_params = []} {
    return
  }
}

module attributes {stable_mosaic.version = 11 : i64} {
  func.func private @main(%arg0: i32) attributes {dimension_semantics = [#tpu.dimension_semantics<core_parallel>], iteration_bounds = array<i64: 2>, tpu.core_type = #tpu.core_type<sc_scalar_subcore>, window_params = []} {
    return
  }
}

module attributes {stable_mosaic.version = 11 : i64} {
  func.func @_cnn_kernel(%arg0: memref<68x28xbf16, #tpu.memory_space<vmem>>, %arg1: memref<5x28x224xbf16, #tpu.memory_space<vmem>>, %arg2: memref<5x28x224xbf16, #tpu.memory_space<vmem>>, %arg3: memref<1x16xf32, #tpu.memory_space<vmem>>, %arg4: memref<1x16xf32, #tpu.memory_space<vmem>>, %arg5: memref<5x224x224xbf16, #tpu.memory_space<vmem>>, %arg6: memref<5x224x224xbf16, #tpu.memory_space<vmem>>, %arg7: memref<1x32xf32, #tpu.memory_space<vmem>>, %arg8: memref<1x32xf32, #tpu.memory_space<vmem>>, %arg9: memref<1568x10xf32, #tpu.memory_space<vmem>>, %arg10: memref<1x10xf32, #tpu.memory_space<vmem>>, %arg11: memref<2x10xf32, #tpu.memory_space<vmem>>) attributes {dimension_semantics = [], scalar_prefetch = 0 : i64, scratch_operands = 0 : i64, tpu.core_type = #tpu.core_type<tc>} {
    %c0 = arith.constant 0 : index
    %c0_0 = arith.constant 0 : index
    %0 = vector.load %arg0[%c0, %c0_0] : memref<68x28xbf16, #tpu.memory_space<vmem>>, vector<68x28xbf16>
    %cst = arith.constant 0.000000e+00 : f32
    %1 = vector.broadcast %cst : f32 to vector<64x224xf32>
    %cst_1 = arith.constant 0.000000e+00 : f32
    %2 = vector.broadcast %cst_1 : f32 to vector<64x224xf32>
    %3 = vector.extract_strided_slice %0 {offsets = [0, 0], sizes = [64, 28], strides = [1, 1]} : vector<68x28xbf16> to vector<64x28xbf16>
    %c0_2 = arith.constant 0 : index
    %c0_3 = arith.constant 0 : index
    %c0_4 = arith.constant 0 : index
    %4 = vector.load %arg1[%c0_2, %c0_3, %c0_4] : memref<5x28x224xbf16, #tpu.memory_space<vmem>>, vector<1x28x224xbf16>
    %5 = vector.shape_cast %4 : vector<1x28x224xbf16> to vector<28x224xbf16>
    %cst_5 = arith.constant dense<0.000000e+00> : vector<64x224xf32>
    %6 = tpu.matmul %3, %5, %cst_5 {dimension_numbers = #tpu.dot_dimension_numbers<[1], [0], [0], [1], [0, 0, 1, 1], [], []>} : vector<64x28xbf16>, vector<28x224xbf16>, vector<64x224xf32> -> vector<64x224xf32>
    %7 = arith.addf %1, %6 : vector<64x224xf32>
    %c0_6 = arith.constant 0 : index
    %c0_7 = arith.constant 0 : index
    %c0_8 = arith.constant 0 : index
    %8 = vector.load %arg2[%c0_6, %c0_7, %c0_8] : memref<5x28x224xbf16, #tpu.memory_space<vmem>>, vector<1x28x224xbf16>
    %9 = vector.shape_cast %8 : vector<1x28x224xbf16> to vector<28x224xbf16>
    %cst_9 = arith.constant dense<0.000000e+00> : vector<64x224xf32>
    %10 = tpu.matmul %3, %9, %cst_9 {dimension_numbers = #tpu.dot_dimension_numbers<[1], [0], [0], [1], [0, 0, 1, 1], [], []>} : vector<64x28xbf16>, vector<28x224xbf16>, vector<64x224xf32> -> vector<64x224xf32>
    %11 = arith.addf %2, %10 : vector<64x224xf32>
    %12 = vector.extract_strided_slice %0 {offsets = [1, 0], sizes = [64, 28], strides = [1, 1]} : vector<68x28xbf16> to vector<64x28xbf16>
    %c1 = arith.constant 1 : index
    %c0_10 = arith.constant 0 : index
    %c0_11 = arith.constant 0 : index
    %13 = vector.load %arg1[%c1, %c0_10, %c0_11] : memref<5x28x224xbf16, #tpu.memory_space<vmem>>, vector<1x28x224xbf16>
    %14 = vector.shape_cast %13 : vector<1x28x224xbf16> to vector<28x224xbf16>
    %cst_12 = arith.constant dense<0.000000e+00> : vector<64x224xf32>
    %15 = tpu.matmul %12, %14, %cst_12 {dimension_numbers = #tpu.dot_dimension_numbers<[1], [0], [0], [1], [0, 0, 1, 1], [], []>} : vector<64x28xbf16>, vector<28x224xbf16>, vector<64x224xf32> -> vector<64x224xf32>
    %16 = arith.addf %7, %15 : vector<64x224xf32>
    %c1_13 = arith.constant 1 : index
    %c0_14 = arith.constant 0 : index
    %c0_15 = arith.constant 0 : index
    %17 = vector.load %arg2[%c1_13, %c0_14, %c0_15] : memref<5x28x224xbf16, #tpu.memory_space<vmem>>, vector<1x28x224xbf16>
    %18 = vector.shape_cast %17 : vector<1x28x224xbf16> to vector<28x224xbf16>
    %cst_16 = arith.constant dense<0.000000e+00> : vector<64x224xf32>
    %19 = tpu.matmul %12, %18, %cst_16 {dimension_numbers = #tpu.dot_dimension_numbers<[1], [0], [0], [1], [0, 0, 1, 1], [], []>} : vector<64x28xbf16>, vector<28x224xbf16>, vector<64x224xf32> -> vector<64x224xf32>
    %20 = arith.addf %11, %19 : vector<64x224xf32>
    %21 = vector.extract_strided_slice %0 {offsets = [2, 0], sizes = [64, 28], strides = [1, 1]} : vector<68x28xbf16> to vector<64x28xbf16>
    %c2 = arith.constant 2 : index
    %c0_17 = arith.constant 0 : index
    %c0_18 = arith.constant 0 : index
    %22 = vector.load %arg1[%c2, %c0_17, %c0_18] : memref<5x28x224xbf16, #tpu.memory_space<vmem>>, vector<1x28x224xbf16>
    %23 = vector.shape_cast %22 : vector<1x28x224xbf16> to vector<28x224xbf16>
    %cst_19 = arith.constant dense<0.000000e+00> : vector<64x224xf32>
    %24 = tpu.matmul %21, %23, %cst_19 {dimension_numbers = #tpu.dot_dimension_numbers<[1], [0], [0], [1], [0, 0, 1, 1], [], []>} : vector<64x28xbf16>, vector<28x224xbf16>, vector<64x224xf32> -> vector<64x224xf32>
    %25 = arith.addf %16, %24 : vector<64x224xf32>
    %c2_20 = arith.constant 2 : index
    %c0_21 = arith.constant 0 : index
    %c0_22 = arith.constant 0 : index
    %26 = vector.load %arg2[%c2_20, %c0_21, %c0_22] : memref<5x28x224xbf16, #tpu.memory_space<vmem>>, vector<1x28x224xbf16>
    %27 = vector.shape_cast %26 : vector<1x28x224xbf16> to vector<28x224xbf16>
    %cst_23 = arith.constant dense<0.000000e+00> : vector<64x224xf32>
    %28 = tpu.matmul %21, %27, %cst_23 {dimension_numbers = #tpu.dot_dimension_numbers<[1], [0], [0], [1], [0, 0, 1, 1], [], []>} : vector<64x28xbf16>, vector<28x224xbf16>, vector<64x224xf32> -> vector<64x224xf32>
    %29 = arith.addf %20, %28 : vector<64x224xf32>
    %30 = vector.extract_strided_slice %0 {offsets = [3, 0], sizes = [64, 28], strides = [1, 1]} : vector<68x28xbf16> to vector<64x28xbf16>
    %c3 = arith.constant 3 : index
    %c0_24 = arith.constant 0 : index
    %c0_25 = arith.constant 0 : index
    %31 = vector.load %arg1[%c3, %c0_24, %c0_25] : memref<5x28x224xbf16, #tpu.memory_space<vmem>>, vector<1x28x224xbf16>
    %32 = vector.shape_cast %31 : vector<1x28x224xbf16> to vector<28x224xbf16>
    %cst_26 = arith.constant dense<0.000000e+00> : vector<64x224xf32>
    %33 = tpu.matmul %30, %32, %cst_26 {dimension_numbers = #tpu.dot_dimension_numbers<[1], [0], [0], [1], [0, 0, 1, 1], [], []>} : vector<64x28xbf16>, vector<28x224xbf16>, vector<64x224xf32> -> vector<64x224xf32>
    %34 = arith.addf %25, %33 : vector<64x224xf32>
    %c3_27 = arith.constant 3 : index
    %c0_28 = arith.constant 0 : index
    %c0_29 = arith.constant 0 : index
    %35 = vector.load %arg2[%c3_27, %c0_28, %c0_29] : memref<5x28x224xbf16, #tpu.memory_space<vmem>>, vector<1x28x224xbf16>
    %36 = vector.shape_cast %35 : vector<1x28x224xbf16> to vector<28x224xbf16>
    %cst_30 = arith.constant dense<0.000000e+00> : vector<64x224xf32>
    %37 = tpu.matmul %30, %36, %cst_30 {dimension_numbers = #tpu.dot_dimension_numbers<[1], [0], [0], [1], [0, 0, 1, 1], [], []>} : vector<64x28xbf16>, vector<28x224xbf16>, vector<64x224xf32> -> vector<64x224xf32>
    %38 = arith.addf %29, %37 : vector<64x224xf32>
    %39 = vector.extract_strided_slice %0 {offsets = [4, 0], sizes = [64, 28], strides = [1, 1]} : vector<68x28xbf16> to vector<64x28xbf16>
    %c4 = arith.constant 4 : index
    %c0_31 = arith.constant 0 : index
    %c0_32 = arith.constant 0 : index
    %40 = vector.load %arg1[%c4, %c0_31, %c0_32] : memref<5x28x224xbf16, #tpu.memory_space<vmem>>, vector<1x28x224xbf16>
    %41 = vector.shape_cast %40 : vector<1x28x224xbf16> to vector<28x224xbf16>
    %cst_33 = arith.constant dense<0.000000e+00> : vector<64x224xf32>
    %42 = tpu.matmul %39, %41, %cst_33 {dimension_numbers = #tpu.dot_dimension_numbers<[1], [0], [0], [1], [0, 0, 1, 1], [], []>} : vector<64x28xbf16>, vector<28x224xbf16>, vector<64x224xf32> -> vector<64x224xf32>
    %43 = arith.addf %34, %42 : vector<64x224xf32>
    %c4_34 = arith.constant 4 : index
    %c0_35 = arith.constant 0 : index
    %c0_36 = arith.constant 0 : index
    %44 = vector.load %arg2[%c4_34, %c0_35, %c0_36] : memref<5x28x224xbf16, #tpu.memory_space<vmem>>, vector<1x28x224xbf16>
    %45 = vector.shape_cast %44 : vector<1x28x224xbf16> to vector<28x224xbf16>
    %cst_37 = arith.constant dense<0.000000e+00> : vector<64x224xf32>
    %46 = tpu.matmul %39, %45, %cst_37 {dimension_numbers = #tpu.dot_dimension_numbers<[1], [0], [0], [1], [0, 0, 1, 1], [], []>} : vector<64x28xbf16>, vector<28x224xbf16>, vector<64x224xf32> -> vector<64x224xf32>
    %47 = arith.addf %38, %46 : vector<64x224xf32>
    %48 = tpu.iota {dimensions = array<i32: 0>} : vector<64x1xi32>
    %c32_i32 = arith.constant 32 : i32
    %c0_i32 = arith.constant 0 : i32
    %49 = arith.cmpi eq, %c32_i32, %c0_i32 : i32
    %c1_i32 = arith.constant 1 : i32
    %50 = arith.select %49, %c1_i32, %c32_i32 : i32
    %51 = vector.broadcast %50 : i32 to vector<64x1xi32>
    %52 = arith.remsi %48, %51 : vector<64x1xi32>
    %c0_i32_38 = arith.constant 0 : i32
    %53 = vector.broadcast %c0_i32_38 : i32 to vector<64x1xi32>
    %54 = arith.cmpi ne, %52, %53 : vector<64x1xi32>
    %c0_i32_39 = arith.constant 0 : i32
    %55 = vector.broadcast %c0_i32_39 : i32 to vector<64x1xi32>
    %56 = arith.cmpi slt, %52, %55 : vector<64x1xi32>
    %c0_i32_40 = arith.constant 0 : i32
    %57 = arith.cmpi slt, %50, %c0_i32_40 : i32
    %58 = vector.broadcast %57 : i1 to vector<64x1xi1>
    %59 = vector.broadcast %58 : vector<64x1xi1> to vector<64x1xi1>
    %60 = arith.xori %56, %59 : vector<64x1xi1>
    %61 = arith.andi %60, %54 : vector<64x1xi1>
    %62 = vector.broadcast %50 : i32 to vector<64x1xi32>
    %63 = arith.addi %52, %62 : vector<64x1xi32>
    %64 = arith.select %61, %63, %52 : vector<64x1xi1>, vector<64x1xi32>
    %c2_i32 = arith.constant 2 : i32
    %65 = vector.broadcast %c2_i32 : i32 to vector<64x1xi32>
    %66 = arith.cmpi sge, %64, %65 : vector<64x1xi32>
    %c30_i32 = arith.constant 30 : i32
    %67 = vector.broadcast %c30_i32 : i32 to vector<64x1xi32>
    %68 = arith.cmpi slt, %64, %67 : vector<64x1xi32>
    %69 = arith.andi %66, %68 : vector<64x1xi1>
    %70 = arith.extui %69 : vector<64x1xi1> to vector<64x1xi32>
    %71 = arith.sitofp %70 : vector<64x1xi32> to vector<64x1xf32>
    %72 = tpu.iota {dimensions = array<i32: 0>} : vector<224x16xi32>
    %c16_i32 = arith.constant 16 : i32
    %c0_i32_41 = arith.constant 0 : i32
    %73 = arith.cmpi eq, %c16_i32, %c0_i32_41 : i32
    %c1_i32_42 = arith.constant 1 : i32
    %74 = arith.select %73, %c1_i32_42, %c16_i32 : i32
    %75 = vector.broadcast %74 : i32 to vector<224x16xi32>
    %76 = arith.remsi %72, %75 : vector<224x16xi32>
    %c0_i32_43 = arith.constant 0 : i32
    %77 = vector.broadcast %c0_i32_43 : i32 to vector<224x16xi32>
    %78 = arith.cmpi ne, %76, %77 : vector<224x16xi32>
    %c0_i32_44 = arith.constant 0 : i32
    %79 = vector.broadcast %c0_i32_44 : i32 to vector<224x16xi32>
    %80 = arith.cmpi slt, %76, %79 : vector<224x16xi32>
    %c0_i32_45 = arith.constant 0 : i32
    %81 = arith.cmpi slt, %74, %c0_i32_45 : i32
    %82 = vector.broadcast %81 : i1 to vector<224x16xi1>
    %83 = vector.broadcast %82 : vector<224x16xi1> to vector<224x16xi1>
    %84 = arith.xori %80, %83 : vector<224x16xi1>
    %85 = arith.andi %84, %78 : vector<224x16xi1>
    %86 = vector.broadcast %74 : i32 to vector<224x16xi32>
    %87 = arith.addi %76, %86 : vector<224x16xi32>
    %88 = arith.select %85, %87, %76 : vector<224x16xi1>, vector<224x16xi32>
    %89 = tpu.iota {dimensions = array<i32: 1>} : vector<224x16xi32>
    %90 = arith.cmpi eq, %88, %89 : vector<224x16xi32>
    %91 = arith.extui %90 : vector<224x16xi1> to vector<224x16xi32>
    %92 = arith.sitofp %91 : vector<224x16xi32> to vector<224x16xf32>
    %93 = tpu.iota {dimensions = array<i32: 1>} : vector<16x224xi32>
    %c16_i32_46 = arith.constant 16 : i32
    %c0_i32_47 = arith.constant 0 : i32
    %94 = arith.cmpi eq, %c16_i32_46, %c0_i32_47 : i32
    %c1_i32_48 = arith.constant 1 : i32
    %95 = arith.select %94, %c1_i32_48, %c16_i32_46 : i32
    %96 = vector.broadcast %95 : i32 to vector<16x224xi32>
    %97 = arith.remsi %93, %96 : vector<16x224xi32>
    %c0_i32_49 = arith.constant 0 : i32
    %98 = vector.broadcast %c0_i32_49 : i32 to vector<16x224xi32>
    %99 = arith.cmpi ne, %97, %98 : vector<16x224xi32>
    %c0_i32_50 = arith.constant 0 : i32
    %100 = vector.broadcast %c0_i32_50 : i32 to vector<16x224xi32>
    %101 = arith.cmpi slt, %97, %100 : vector<16x224xi32>
    %c0_i32_51 = arith.constant 0 : i32
    %102 = arith.cmpi slt, %95, %c0_i32_51 : i32
    %103 = vector.broadcast %102 : i1 to vector<16x224xi1>
    %104 = vector.broadcast %103 : vector<16x224xi1> to vector<16x224xi1>
    %105 = arith.xori %101, %104 : vector<16x224xi1>
    %106 = arith.andi %105, %99 : vector<16x224xi1>
    %107 = vector.broadcast %95 : i32 to vector<16x224xi32>
    %108 = arith.addi %97, %107 : vector<16x224xi32>
    %109 = arith.select %106, %108, %97 : vector<16x224xi1>, vector<16x224xi32>
    %110 = tpu.iota {dimensions = array<i32: 0>} : vector<16x224xi32>
    %111 = arith.cmpi eq, %109, %110 : vector<16x224xi32>
    %112 = arith.extui %111 : vector<16x224xi1> to vector<16x224xi32>
    %113 = arith.sitofp %112 : vector<16x224xi32> to vector<16x224xf32>
    %114 = arith.addf %43, %47 : vector<64x224xf32>
    %115 = vector.broadcast %71 : vector<64x1xf32> to vector<64x224xf32>
    %116 = arith.mulf %114, %115 : vector<64x224xf32>
    %cst_52 = arith.constant dense<0.000000e+00> : vector<224xf32>
    %117 = vector.multi_reduction <add>, %116, %cst_52 [0] : vector<64x224xf32> to vector<224xf32>
    %118 = vector.shape_cast %117 : vector<224xf32> to vector<1x224xf32>
    %cst_53 = arith.constant dense<0.000000e+00> : vector<1x16xf32>
    %119 = tpu.matmul %118, %92, %cst_53 {dimension_numbers = #tpu.dot_dimension_numbers<[1], [0], [0], [1], [0, 0, 1, 1], [], []>} : vector<1x224xf32>, vector<224x16xf32>, vector<1x16xf32> -> vector<1x16xf32>
    %cst_54 = arith.constant 1.568000e+03 : f32
    %120 = vector.broadcast %cst_54 : f32 to vector<1x16xf32>
    %121 = arith.divf %119, %120 : vector<1x16xf32>
    %cst_55 = arith.constant dense<0.000000e+00> : vector<1x224xf32>
    %122 = tpu.matmul %121, %113, %cst_55 {dimension_numbers = #tpu.dot_dimension_numbers<[1], [0], [0], [1], [0, 0, 1, 1], [], []>} : vector<1x16xf32>, vector<16x224xf32>, vector<1x224xf32> -> vector<1x224xf32>
    %123 = vector.broadcast %122 : vector<1x224xf32> to vector<64x224xf32>
    %124 = arith.subf %43, %123 : vector<64x224xf32>
    %125 = vector.broadcast %122 : vector<1x224xf32> to vector<64x224xf32>
    %126 = arith.subf %47, %125 : vector<64x224xf32>
    %127 = arith.mulf %124, %124 : vector<64x224xf32>
    %128 = arith.mulf %126, %126 : vector<64x224xf32>
    %129 = arith.addf %127, %128 : vector<64x224xf32>
    %130 = vector.broadcast %71 : vector<64x1xf32> to vector<64x224xf32>
    %131 = arith.mulf %129, %130 : vector<64x224xf32>
    %cst_56 = arith.constant dense<0.000000e+00> : vector<224xf32>
    %132 = vector.multi_reduction <add>, %131, %cst_56 [0] : vector<64x224xf32> to vector<224xf32>
    %133 = vector.shape_cast %132 : vector<224xf32> to vector<1x224xf32>
    %cst_57 = arith.constant dense<0.000000e+00> : vector<1x16xf32>
    %134 = tpu.matmul %133, %92, %cst_57 {dimension_numbers = #tpu.dot_dimension_numbers<[1], [0], [0], [1], [0, 0, 1, 1], [], []>} : vector<1x224xf32>, vector<224x16xf32>, vector<1x16xf32> -> vector<1x16xf32>
    %cst_58 = arith.constant 1.568000e+03 : f32
    %135 = vector.broadcast %cst_58 : f32 to vector<1x16xf32>
    %136 = arith.divf %134, %135 : vector<1x16xf32>
    %c0_59 = arith.constant 0 : index
    %c0_60 = arith.constant 0 : index
    %137 = vector.load %arg3[%c0_59, %c0_60] : memref<1x16xf32, #tpu.memory_space<vmem>>, vector<1x16xf32>
    %cst_61 = arith.constant 9.99999974E-6 : f32
    %138 = vector.broadcast %cst_61 : f32 to vector<1x16xf32>
    %139 = arith.addf %136, %138 : vector<1x16xf32>
    %140 = math.rsqrt %139 : vector<1x16xf32>
    %141 = arith.mulf %137, %140 : vector<1x16xf32>
    %cst_62 = arith.constant dense<0.000000e+00> : vector<1x224xf32>
    %142 = tpu.matmul %141, %113, %cst_62 {dimension_numbers = #tpu.dot_dimension_numbers<[1], [0], [0], [1], [0, 0, 1, 1], [], []>} : vector<1x16xf32>, vector<16x224xf32>, vector<1x224xf32> -> vector<1x224xf32>
    %c0_63 = arith.constant 0 : index
    %c0_64 = arith.constant 0 : index
    %143 = vector.load %arg4[%c0_63, %c0_64] : memref<1x16xf32, #tpu.memory_space<vmem>>, vector<1x16xf32>
    %cst_65 = arith.constant dense<0.000000e+00> : vector<1x224xf32>
    %144 = tpu.matmul %143, %113, %cst_65 {dimension_numbers = #tpu.dot_dimension_numbers<[1], [0], [0], [1], [0, 0, 1, 1], [], []>} : vector<1x16xf32>, vector<16x224xf32>, vector<1x224xf32> -> vector<1x224xf32>
    %145 = vector.broadcast %142 : vector<1x224xf32> to vector<64x224xf32>
    %146 = arith.mulf %124, %145 : vector<64x224xf32>
    %147 = vector.broadcast %144 : vector<1x224xf32> to vector<64x224xf32>
    %148 = arith.addf %146, %147 : vector<64x224xf32>
    %149 = vector.broadcast %142 : vector<1x224xf32> to vector<64x224xf32>
    %150 = arith.mulf %126, %149 : vector<64x224xf32>
    %151 = vector.broadcast %144 : vector<1x224xf32> to vector<64x224xf32>
    %152 = arith.addf %150, %151 : vector<64x224xf32>
    %153 = arith.maximumf %148, %152 : vector<64x224xf32>
    %cst_66 = arith.constant 0.000000e+00 : f32
    %154 = vector.broadcast %cst_66 : f32 to vector<64x224xf32>
    %155 = arith.maximumf %153, %154 : vector<64x224xf32>
    %156 = vector.extract_strided_slice %155 {offsets = [0, 0], sizes = [63, 224], strides = [1, 1]} : vector<64x224xf32> to vector<63x224xf32>
    %157 = vector.extract_strided_slice %155 {offsets = [1, 0], sizes = [63, 224], strides = [1, 1]} : vector<64x224xf32> to vector<63x224xf32>
    %158 = arith.maximumf %156, %157 : vector<63x224xf32>
    %159 = arith.truncf %158 : vector<63x224xf32> to vector<63x224xbf16>
    %160 = tpu.iota {dimensions = array<i32: 0>} : vector<40x63xi32>
    %161 = tpu.iota {dimensions = array<i32: 1>} : vector<40x63xi32>
    %c2_i32_67 = arith.constant 2 : i32
    %162 = vector.broadcast %c2_i32_67 : i32 to vector<40x63xi32>
    %163 = arith.subi %161, %162 : vector<40x63xi32>
    %c0_i32_68 = arith.constant 0 : i32
    %164 = vector.broadcast %c0_i32_68 : i32 to vector<40x63xi32>
    %165 = arith.cmpi sge, %163, %164 : vector<40x63xi32>
    %c1_i32_69 = arith.constant 1 : i32
    %166 = vector.broadcast %c1_i32_69 : i32 to vector<40x63xi32>
    %167 = arith.andi %163, %166 : vector<40x63xi32>
    %c0_i32_70 = arith.constant 0 : i32
    %168 = vector.broadcast %c0_i32_70 : i32 to vector<40x63xi32>
    %169 = arith.cmpi eq, %167, %168 : vector<40x63xi32>
    %170 = arith.andi %165, %169 : vector<40x63xi1>
    %c31_i32 = arith.constant 31 : i32
    %171 = vector.broadcast %c31_i32 : i32 to vector<40x63xi32>
    %172 = arith.andi %163, %171 : vector<40x63xi32>
    %c28_i32 = arith.constant 28 : i32
    %173 = vector.broadcast %c28_i32 : i32 to vector<40x63xi32>
    %174 = arith.cmpi slt, %172, %173 : vector<40x63xi32>
    %175 = arith.andi %170, %174 : vector<40x63xi1>
    %c5_i32 = arith.constant 5 : i32
    %176 = vector.broadcast %c5_i32 : i32 to vector<40x63xi32>
    %177 = arith.shrsi %163, %176 : vector<40x63xi32>
    %c18_i32 = arith.constant 18 : i32
    %178 = vector.broadcast %c18_i32 : i32 to vector<40x63xi32>
    %179 = arith.muli %177, %178 : vector<40x63xi32>
    %c31_i32_71 = arith.constant 31 : i32
    %180 = vector.broadcast %c31_i32_71 : i32 to vector<40x63xi32>
    %181 = arith.andi %163, %180 : vector<40x63xi32>
    %c1_i32_72 = arith.constant 1 : i32
    %182 = vector.broadcast %c1_i32_72 : i32 to vector<40x63xi32>
    %183 = arith.shrsi %181, %182 : vector<40x63xi32>
    %184 = arith.addi %179, %183 : vector<40x63xi32>
    %c4_i32 = arith.constant 4 : i32
    %185 = vector.broadcast %c4_i32 : i32 to vector<40x63xi32>
    %186 = arith.addi %184, %185 : vector<40x63xi32>
    %187 = arith.cmpi eq, %160, %186 : vector<40x63xi32>
    %188 = arith.andi %175, %187 : vector<40x63xi1>
    %189 = arith.extui %188 : vector<40x63xi1> to vector<40x63xi32>
    %190 = arith.sitofp %189 : vector<40x63xi32> to vector<40x63xf32>
    %191 = arith.truncf %190 : vector<40x63xf32> to vector<40x63xbf16>
    %cst_73 = arith.constant dense<0.000000e+00> : vector<40x224xf32>
    %192 = tpu.matmul %191, %159, %cst_73 {dimension_numbers = #tpu.dot_dimension_numbers<[1], [0], [0], [1], [0, 0, 1, 1], [], []>} : vector<40x63xbf16>, vector<63x224xbf16>, vector<40x224xf32> -> vector<40x224xf32>
    %193 = arith.truncf %192 : vector<40x224xf32> to vector<40x224xbf16>
    %cst_74 = arith.constant 0.000000e+00 : f32
    %194 = vector.broadcast %cst_74 : f32 to vector<36x224xf32>
    %cst_75 = arith.constant 0.000000e+00 : f32
    %195 = vector.broadcast %cst_75 : f32 to vector<36x224xf32>
    %196 = vector.extract_strided_slice %193 {offsets = [0, 0], sizes = [36, 224], strides = [1, 1]} : vector<40x224xbf16> to vector<36x224xbf16>
    %c0_76 = arith.constant 0 : index
    %c0_77 = arith.constant 0 : index
    %c0_78 = arith.constant 0 : index
    %197 = vector.load %arg5[%c0_76, %c0_77, %c0_78] : memref<5x224x224xbf16, #tpu.memory_space<vmem>>, vector<1x224x224xbf16>
    %198 = vector.shape_cast %197 : vector<1x224x224xbf16> to vector<224x224xbf16>
    %cst_79 = arith.constant dense<0.000000e+00> : vector<36x224xf32>
    %199 = tpu.matmul %196, %198, %cst_79 {dimension_numbers = #tpu.dot_dimension_numbers<[1], [0], [0], [1], [0, 0, 1, 1], [], []>} : vector<36x224xbf16>, vector<224x224xbf16>, vector<36x224xf32> -> vector<36x224xf32>
    %200 = arith.addf %194, %199 : vector<36x224xf32>
    %c0_80 = arith.constant 0 : index
    %c0_81 = arith.constant 0 : index
    %c0_82 = arith.constant 0 : index
    %201 = vector.load %arg6[%c0_80, %c0_81, %c0_82] : memref<5x224x224xbf16, #tpu.memory_space<vmem>>, vector<1x224x224xbf16>
    %202 = vector.shape_cast %201 : vector<1x224x224xbf16> to vector<224x224xbf16>
    %cst_83 = arith.constant dense<0.000000e+00> : vector<36x224xf32>
    %203 = tpu.matmul %196, %202, %cst_83 {dimension_numbers = #tpu.dot_dimension_numbers<[1], [0], [0], [1], [0, 0, 1, 1], [], []>} : vector<36x224xbf16>, vector<224x224xbf16>, vector<36x224xf32> -> vector<36x224xf32>
    %204 = arith.addf %195, %203 : vector<36x224xf32>
    %205 = vector.extract_strided_slice %193 {offsets = [1, 0], sizes = [36, 224], strides = [1, 1]} : vector<40x224xbf16> to vector<36x224xbf16>
    %c1_84 = arith.constant 1 : index
    %c0_85 = arith.constant 0 : index
    %c0_86 = arith.constant 0 : index
    %206 = vector.load %arg5[%c1_84, %c0_85, %c0_86] : memref<5x224x224xbf16, #tpu.memory_space<vmem>>, vector<1x224x224xbf16>
    %207 = vector.shape_cast %206 : vector<1x224x224xbf16> to vector<224x224xbf16>
    %cst_87 = arith.constant dense<0.000000e+00> : vector<36x224xf32>
    %208 = tpu.matmul %205, %207, %cst_87 {dimension_numbers = #tpu.dot_dimension_numbers<[1], [0], [0], [1], [0, 0, 1, 1], [], []>} : vector<36x224xbf16>, vector<224x224xbf16>, vector<36x224xf32> -> vector<36x224xf32>
    %209 = arith.addf %200, %208 : vector<36x224xf32>
    %c1_88 = arith.constant 1 : index
    %c0_89 = arith.constant 0 : index
    %c0_90 = arith.constant 0 : index
    %210 = vector.load %arg6[%c1_88, %c0_89, %c0_90] : memref<5x224x224xbf16, #tpu.memory_space<vmem>>, vector<1x224x224xbf16>
    %211 = vector.shape_cast %210 : vector<1x224x224xbf16> to vector<224x224xbf16>
    %cst_91 = arith.constant dense<0.000000e+00> : vector<36x224xf32>
    %212 = tpu.matmul %205, %211, %cst_91 {dimension_numbers = #tpu.dot_dimension_numbers<[1], [0], [0], [1], [0, 0, 1, 1], [], []>} : vector<36x224xbf16>, vector<224x224xbf16>, vector<36x224xf32> -> vector<36x224xf32>
    %213 = arith.addf %204, %212 : vector<36x224xf32>
    %214 = vector.extract_strided_slice %193 {offsets = [2, 0], sizes = [36, 224], strides = [1, 1]} : vector<40x224xbf16> to vector<36x224xbf16>
    %c2_92 = arith.constant 2 : index
    %c0_93 = arith.constant 0 : index
    %c0_94 = arith.constant 0 : index
    %215 = vector.load %arg5[%c2_92, %c0_93, %c0_94] : memref<5x224x224xbf16, #tpu.memory_space<vmem>>, vector<1x224x224xbf16>
    %216 = vector.shape_cast %215 : vector<1x224x224xbf16> to vector<224x224xbf16>
    %cst_95 = arith.constant dense<0.000000e+00> : vector<36x224xf32>
    %217 = tpu.matmul %214, %216, %cst_95 {dimension_numbers = #tpu.dot_dimension_numbers<[1], [0], [0], [1], [0, 0, 1, 1], [], []>} : vector<36x224xbf16>, vector<224x224xbf16>, vector<36x224xf32> -> vector<36x224xf32>
    %218 = arith.addf %209, %217 : vector<36x224xf32>
    %c2_96 = arith.constant 2 : index
    %c0_97 = arith.constant 0 : index
    %c0_98 = arith.constant 0 : index
    %219 = vector.load %arg6[%c2_96, %c0_97, %c0_98] : memref<5x224x224xbf16, #tpu.memory_space<vmem>>, vector<1x224x224xbf16>
    %220 = vector.shape_cast %219 : vector<1x224x224xbf16> to vector<224x224xbf16>
    %cst_99 = arith.constant dense<0.000000e+00> : vector<36x224xf32>
    %221 = tpu.matmul %214, %220, %cst_99 {dimension_numbers = #tpu.dot_dimension_numbers<[1], [0], [0], [1], [0, 0, 1, 1], [], []>} : vector<36x224xbf16>, vector<224x224xbf16>, vector<36x224xf32> -> vector<36x224xf32>
    %222 = arith.addf %213, %221 : vector<36x224xf32>
    %223 = vector.extract_strided_slice %193 {offsets = [3, 0], sizes = [36, 224], strides = [1, 1]} : vector<40x224xbf16> to vector<36x224xbf16>
    %c3_100 = arith.constant 3 : index
    %c0_101 = arith.constant 0 : index
    %c0_102 = arith.constant 0 : index
    %224 = vector.load %arg5[%c3_100, %c0_101, %c0_102] : memref<5x224x224xbf16, #tpu.memory_space<vmem>>, vector<1x224x224xbf16>
    %225 = vector.shape_cast %224 : vector<1x224x224xbf16> to vector<224x224xbf16>
    %cst_103 = arith.constant dense<0.000000e+00> : vector<36x224xf32>
    %226 = tpu.matmul %223, %225, %cst_103 {dimension_numbers = #tpu.dot_dimension_numbers<[1], [0], [0], [1], [0, 0, 1, 1], [], []>} : vector<36x224xbf16>, vector<224x224xbf16>, vector<36x224xf32> -> vector<36x224xf32>
    %227 = arith.addf %218, %226 : vector<36x224xf32>
    %c3_104 = arith.constant 3 : index
    %c0_105 = arith.constant 0 : index
    %c0_106 = arith.constant 0 : index
    %228 = vector.load %arg6[%c3_104, %c0_105, %c0_106] : memref<5x224x224xbf16, #tpu.memory_space<vmem>>, vector<1x224x224xbf16>
    %229 = vector.shape_cast %228 : vector<1x224x224xbf16> to vector<224x224xbf16>
    %cst_107 = arith.constant dense<0.000000e+00> : vector<36x224xf32>
    %230 = tpu.matmul %223, %229, %cst_107 {dimension_numbers = #tpu.dot_dimension_numbers<[1], [0], [0], [1], [0, 0, 1, 1], [], []>} : vector<36x224xbf16>, vector<224x224xbf16>, vector<36x224xf32> -> vector<36x224xf32>
    %231 = arith.addf %222, %230 : vector<36x224xf32>
    %232 = vector.extract_strided_slice %193 {offsets = [4, 0], sizes = [36, 224], strides = [1, 1]} : vector<40x224xbf16> to vector<36x224xbf16>
    %c4_108 = arith.constant 4 : index
    %c0_109 = arith.constant 0 : index
    %c0_110 = arith.constant 0 : index
    %233 = vector.load %arg5[%c4_108, %c0_109, %c0_110] : memref<5x224x224xbf16, #tpu.memory_space<vmem>>, vector<1x224x224xbf16>
    %234 = vector.shape_cast %233 : vector<1x224x224xbf16> to vector<224x224xbf16>
    %cst_111 = arith.constant dense<0.000000e+00> : vector<36x224xf32>
    %235 = tpu.matmul %232, %234, %cst_111 {dimension_numbers = #tpu.dot_dimension_numbers<[1], [0], [0], [1], [0, 0, 1, 1], [], []>} : vector<36x224xbf16>, vector<224x224xbf16>, vector<36x224xf32> -> vector<36x224xf32>
    %236 = arith.addf %227, %235 : vector<36x224xf32>
    %c4_112 = arith.constant 4 : index
    %c0_113 = arith.constant 0 : index
    %c0_114 = arith.constant 0 : index
    %237 = vector.load %arg6[%c4_112, %c0_113, %c0_114] : memref<5x224x224xbf16, #tpu.memory_space<vmem>>, vector<1x224x224xbf16>
    %238 = vector.shape_cast %237 : vector<1x224x224xbf16> to vector<224x224xbf16>
    %cst_115 = arith.constant dense<0.000000e+00> : vector<36x224xf32>
    %239 = tpu.matmul %232, %238, %cst_115 {dimension_numbers = #tpu.dot_dimension_numbers<[1], [0], [0], [1], [0, 0, 1, 1], [], []>} : vector<36x224xbf16>, vector<224x224xbf16>, vector<36x224xf32> -> vector<36x224xf32>
    %240 = arith.addf %231, %239 : vector<36x224xf32>
    %241 = tpu.iota {dimensions = array<i32: 0>} : vector<36x1xi32>
    %c18_i32_116 = arith.constant 18 : i32
    %c0_i32_117 = arith.constant 0 : i32
    %242 = arith.cmpi eq, %c18_i32_116, %c0_i32_117 : i32
    %c1_i32_118 = arith.constant 1 : i32
    %243 = arith.select %242, %c1_i32_118, %c18_i32_116 : i32
    %244 = vector.broadcast %243 : i32 to vector<36x1xi32>
    %245 = arith.remsi %241, %244 : vector<36x1xi32>
    %c0_i32_119 = arith.constant 0 : i32
    %246 = vector.broadcast %c0_i32_119 : i32 to vector<36x1xi32>
    %247 = arith.cmpi ne, %245, %246 : vector<36x1xi32>
    %c0_i32_120 = arith.constant 0 : i32
    %248 = vector.broadcast %c0_i32_120 : i32 to vector<36x1xi32>
    %249 = arith.cmpi slt, %245, %248 : vector<36x1xi32>
    %c0_i32_121 = arith.constant 0 : i32
    %250 = arith.cmpi slt, %243, %c0_i32_121 : i32
    %251 = vector.broadcast %250 : i1 to vector<36x1xi1>
    %252 = vector.broadcast %251 : vector<36x1xi1> to vector<36x1xi1>
    %253 = arith.xori %249, %252 : vector<36x1xi1>
    %254 = arith.andi %253, %247 : vector<36x1xi1>
    %255 = vector.broadcast %243 : i32 to vector<36x1xi32>
    %256 = arith.addi %245, %255 : vector<36x1xi32>
    %257 = arith.select %254, %256, %245 : vector<36x1xi1>, vector<36x1xi32>
    %c2_i32_122 = arith.constant 2 : i32
    %258 = vector.broadcast %c2_i32_122 : i32 to vector<36x1xi32>
    %259 = arith.cmpi sge, %257, %258 : vector<36x1xi32>
    %c16_i32_123 = arith.constant 16 : i32
    %260 = vector.broadcast %c16_i32_123 : i32 to vector<36x1xi32>
    %261 = arith.cmpi slt, %257, %260 : vector<36x1xi32>
    %262 = arith.andi %259, %261 : vector<36x1xi1>
    %263 = arith.extui %262 : vector<36x1xi1> to vector<36x1xi32>
    %264 = arith.sitofp %263 : vector<36x1xi32> to vector<36x1xf32>
    %265 = tpu.iota {dimensions = array<i32: 0>} : vector<224x32xi32>
    %c32_i32_124 = arith.constant 32 : i32
    %c0_i32_125 = arith.constant 0 : i32
    %266 = arith.cmpi eq, %c32_i32_124, %c0_i32_125 : i32
    %c1_i32_126 = arith.constant 1 : i32
    %267 = arith.select %266, %c1_i32_126, %c32_i32_124 : i32
    %268 = vector.broadcast %267 : i32 to vector<224x32xi32>
    %269 = arith.remsi %265, %268 : vector<224x32xi32>
    %c0_i32_127 = arith.constant 0 : i32
    %270 = vector.broadcast %c0_i32_127 : i32 to vector<224x32xi32>
    %271 = arith.cmpi ne, %269, %270 : vector<224x32xi32>
    %c0_i32_128 = arith.constant 0 : i32
    %272 = vector.broadcast %c0_i32_128 : i32 to vector<224x32xi32>
    %273 = arith.cmpi slt, %269, %272 : vector<224x32xi32>
    %c0_i32_129 = arith.constant 0 : i32
    %274 = arith.cmpi slt, %267, %c0_i32_129 : i32
    %275 = vector.broadcast %274 : i1 to vector<224x32xi1>
    %276 = vector.broadcast %275 : vector<224x32xi1> to vector<224x32xi1>
    %277 = arith.xori %273, %276 : vector<224x32xi1>
    %278 = arith.andi %277, %271 : vector<224x32xi1>
    %279 = vector.broadcast %267 : i32 to vector<224x32xi32>
    %280 = arith.addi %269, %279 : vector<224x32xi32>
    %281 = arith.select %278, %280, %269 : vector<224x32xi1>, vector<224x32xi32>
    %282 = tpu.iota {dimensions = array<i32: 1>} : vector<224x32xi32>
    %283 = arith.cmpi eq, %281, %282 : vector<224x32xi32>
    %284 = arith.extui %283 : vector<224x32xi1> to vector<224x32xi32>
    %285 = arith.sitofp %284 : vector<224x32xi32> to vector<224x32xf32>
    %286 = tpu.iota {dimensions = array<i32: 1>} : vector<32x224xi32>
    %c32_i32_130 = arith.constant 32 : i32
    %c0_i32_131 = arith.constant 0 : i32
    %287 = arith.cmpi eq, %c32_i32_130, %c0_i32_131 : i32
    %c1_i32_132 = arith.constant 1 : i32
    %288 = arith.select %287, %c1_i32_132, %c32_i32_130 : i32
    %289 = vector.broadcast %288 : i32 to vector<32x224xi32>
    %290 = arith.remsi %286, %289 : vector<32x224xi32>
    %c0_i32_133 = arith.constant 0 : i32
    %291 = vector.broadcast %c0_i32_133 : i32 to vector<32x224xi32>
    %292 = arith.cmpi ne, %290, %291 : vector<32x224xi32>
    %c0_i32_134 = arith.constant 0 : i32
    %293 = vector.broadcast %c0_i32_134 : i32 to vector<32x224xi32>
    %294 = arith.cmpi slt, %290, %293 : vector<32x224xi32>
    %c0_i32_135 = arith.constant 0 : i32
    %295 = arith.cmpi slt, %288, %c0_i32_135 : i32
    %296 = vector.broadcast %295 : i1 to vector<32x224xi1>
    %297 = vector.broadcast %296 : vector<32x224xi1> to vector<32x224xi1>
    %298 = arith.xori %294, %297 : vector<32x224xi1>
    %299 = arith.andi %298, %292 : vector<32x224xi1>
    %300 = vector.broadcast %288 : i32 to vector<32x224xi32>
    %301 = arith.addi %290, %300 : vector<32x224xi32>
    %302 = arith.select %299, %301, %290 : vector<32x224xi1>, vector<32x224xi32>
    %303 = tpu.iota {dimensions = array<i32: 0>} : vector<32x224xi32>
    %304 = arith.cmpi eq, %302, %303 : vector<32x224xi32>
    %305 = arith.extui %304 : vector<32x224xi1> to vector<32x224xi32>
    %306 = arith.sitofp %305 : vector<32x224xi32> to vector<32x224xf32>
    %307 = arith.addf %236, %240 : vector<36x224xf32>
    %308 = vector.broadcast %264 : vector<36x1xf32> to vector<36x224xf32>
    %309 = arith.mulf %307, %308 : vector<36x224xf32>
    %cst_136 = arith.constant dense<0.000000e+00> : vector<224xf32>
    %310 = vector.multi_reduction <add>, %309, %cst_136 [0] : vector<36x224xf32> to vector<224xf32>
    %311 = vector.shape_cast %310 : vector<224xf32> to vector<1x224xf32>
    %cst_137 = arith.constant dense<0.000000e+00> : vector<1x32xf32>
    %312 = tpu.matmul %311, %285, %cst_137 {dimension_numbers = #tpu.dot_dimension_numbers<[1], [0], [0], [1], [0, 0, 1, 1], [], []>} : vector<1x224xf32>, vector<224x32xf32>, vector<1x32xf32> -> vector<1x32xf32>
    %cst_138 = arith.constant 3.920000e+02 : f32
    %313 = vector.broadcast %cst_138 : f32 to vector<1x32xf32>
    %314 = arith.divf %312, %313 : vector<1x32xf32>
    %cst_139 = arith.constant dense<0.000000e+00> : vector<1x224xf32>
    %315 = tpu.matmul %314, %306, %cst_139 {dimension_numbers = #tpu.dot_dimension_numbers<[1], [0], [0], [1], [0, 0, 1, 1], [], []>} : vector<1x32xf32>, vector<32x224xf32>, vector<1x224xf32> -> vector<1x224xf32>
    %316 = vector.broadcast %315 : vector<1x224xf32> to vector<36x224xf32>
    %317 = arith.subf %236, %316 : vector<36x224xf32>
    %318 = vector.broadcast %315 : vector<1x224xf32> to vector<36x224xf32>
    %319 = arith.subf %240, %318 : vector<36x224xf32>
    %320 = arith.mulf %317, %317 : vector<36x224xf32>
    %321 = arith.mulf %319, %319 : vector<36x224xf32>
    %322 = arith.addf %320, %321 : vector<36x224xf32>
    %323 = vector.broadcast %264 : vector<36x1xf32> to vector<36x224xf32>
    %324 = arith.mulf %322, %323 : vector<36x224xf32>
    %cst_140 = arith.constant dense<0.000000e+00> : vector<224xf32>
    %325 = vector.multi_reduction <add>, %324, %cst_140 [0] : vector<36x224xf32> to vector<224xf32>
    %326 = vector.shape_cast %325 : vector<224xf32> to vector<1x224xf32>
    %cst_141 = arith.constant dense<0.000000e+00> : vector<1x32xf32>
    %327 = tpu.matmul %326, %285, %cst_141 {dimension_numbers = #tpu.dot_dimension_numbers<[1], [0], [0], [1], [0, 0, 1, 1], [], []>} : vector<1x224xf32>, vector<224x32xf32>, vector<1x32xf32> -> vector<1x32xf32>
    %cst_142 = arith.constant 3.920000e+02 : f32
    %328 = vector.broadcast %cst_142 : f32 to vector<1x32xf32>
    %329 = arith.divf %327, %328 : vector<1x32xf32>
    %c0_143 = arith.constant 0 : index
    %c0_144 = arith.constant 0 : index
    %330 = vector.load %arg7[%c0_143, %c0_144] : memref<1x32xf32, #tpu.memory_space<vmem>>, vector<1x32xf32>
    %cst_145 = arith.constant 9.99999974E-6 : f32
    %331 = vector.broadcast %cst_145 : f32 to vector<1x32xf32>
    %332 = arith.addf %329, %331 : vector<1x32xf32>
    %333 = math.rsqrt %332 : vector<1x32xf32>
    %334 = arith.mulf %330, %333 : vector<1x32xf32>
    %cst_146 = arith.constant dense<0.000000e+00> : vector<1x224xf32>
    %335 = tpu.matmul %334, %306, %cst_146 {dimension_numbers = #tpu.dot_dimension_numbers<[1], [0], [0], [1], [0, 0, 1, 1], [], []>} : vector<1x32xf32>, vector<32x224xf32>, vector<1x224xf32> -> vector<1x224xf32>
    %c0_147 = arith.constant 0 : index
    %c0_148 = arith.constant 0 : index
    %336 = vector.load %arg8[%c0_147, %c0_148] : memref<1x32xf32, #tpu.memory_space<vmem>>, vector<1x32xf32>
    %cst_149 = arith.constant dense<0.000000e+00> : vector<1x224xf32>
    %337 = tpu.matmul %336, %306, %cst_149 {dimension_numbers = #tpu.dot_dimension_numbers<[1], [0], [0], [1], [0, 0, 1, 1], [], []>} : vector<1x32xf32>, vector<32x224xf32>, vector<1x224xf32> -> vector<1x224xf32>
    %338 = vector.broadcast %335 : vector<1x224xf32> to vector<36x224xf32>
    %339 = arith.mulf %317, %338 : vector<36x224xf32>
    %340 = vector.broadcast %337 : vector<1x224xf32> to vector<36x224xf32>
    %341 = arith.addf %339, %340 : vector<36x224xf32>
    %342 = vector.broadcast %335 : vector<1x224xf32> to vector<36x224xf32>
    %343 = arith.mulf %319, %342 : vector<36x224xf32>
    %344 = vector.broadcast %337 : vector<1x224xf32> to vector<36x224xf32>
    %345 = arith.addf %343, %344 : vector<36x224xf32>
    %346 = arith.maximumf %341, %345 : vector<36x224xf32>
    %cst_150 = arith.constant 0.000000e+00 : f32
    %347 = vector.broadcast %cst_150 : f32 to vector<36x224xf32>
    %348 = arith.maximumf %346, %347 : vector<36x224xf32>
    %349 = vector.extract_strided_slice %348 {offsets = [0, 0], sizes = [35, 224], strides = [1, 1]} : vector<36x224xf32> to vector<35x224xf32>
    %350 = vector.extract_strided_slice %348 {offsets = [1, 0], sizes = [35, 224], strides = [1, 1]} : vector<36x224xf32> to vector<35x224xf32>
    %351 = arith.maximumf %349, %350 : vector<35x224xf32>
    %352 = arith.truncf %351 : vector<35x224xf32> to vector<35x224xbf16>
    %353 = tpu.iota {dimensions = array<i32: 0>} : vector<56x35xi32>
    %354 = tpu.iota {dimensions = array<i32: 1>} : vector<56x35xi32>
    %c7_i32 = arith.constant 7 : i32
    %355 = vector.broadcast %c7_i32 : i32 to vector<56x35xi32>
    %356 = arith.andi %353, %355 : vector<56x35xi32>
    %c2_i32_151 = arith.constant 2 : i32
    %357 = vector.broadcast %c2_i32_151 : i32 to vector<56x35xi32>
    %358 = arith.cmpi slt, %356, %357 : vector<56x35xi32>
    %c7_i32_152 = arith.constant 7 : i32
    %359 = vector.broadcast %c7_i32_152 : i32 to vector<56x35xi32>
    %360 = arith.andi %353, %359 : vector<56x35xi32>
    %c18_i32_153 = arith.constant 18 : i32
    %361 = vector.broadcast %c18_i32_153 : i32 to vector<56x35xi32>
    %362 = arith.muli %360, %361 : vector<56x35xi32>
    %c3_i32 = arith.constant 3 : i32
    %363 = vector.broadcast %c3_i32 : i32 to vector<56x35xi32>
    %364 = arith.shrsi %353, %363 : vector<56x35xi32>
    %c1_i32_154 = arith.constant 1 : i32
    %365 = vector.broadcast %c1_i32_154 : i32 to vector<56x35xi32>
    %366 = arith.shli %364, %365 : vector<56x35xi32>
    %367 = arith.addi %362, %366 : vector<56x35xi32>
    %c2_i32_155 = arith.constant 2 : i32
    %368 = vector.broadcast %c2_i32_155 : i32 to vector<56x35xi32>
    %369 = arith.addi %367, %368 : vector<56x35xi32>
    %370 = arith.cmpi eq, %354, %369 : vector<56x35xi32>
    %371 = arith.andi %358, %370 : vector<56x35xi1>
    %372 = arith.extui %371 : vector<56x35xi1> to vector<56x35xi32>
    %373 = arith.sitofp %372 : vector<56x35xi32> to vector<56x35xf32>
    %374 = arith.truncf %373 : vector<56x35xf32> to vector<56x35xbf16>
    %cst_156 = arith.constant dense<0.000000e+00> : vector<56x224xf32>
    %375 = tpu.matmul %374, %352, %cst_156 {dimension_numbers = #tpu.dot_dimension_numbers<[1], [0], [0], [1], [0, 0, 1, 1], [], []>} : vector<56x35xbf16>, vector<35x224xbf16>, vector<56x224xf32> -> vector<56x224xf32>
    %cst_157 = arith.constant 0.000000e+00 : f32
    %376 = vector.broadcast %cst_157 : f32 to vector<8x10xf32>
    %377 = vector.extract_strided_slice %375 {offsets = [0, 0], sizes = [8, 224], strides = [1, 1]} : vector<56x224xf32> to vector<8x224xf32>
    %c0_158 = arith.constant 0 : index
    %c0_159 = arith.constant 0 : index
    %378 = vector.load %arg9[%c0_158, %c0_159] : memref<1568x10xf32, #tpu.memory_space<vmem>>, vector<224x10xf32>
    %cst_160 = arith.constant dense<0.000000e+00> : vector<8x10xf32>
    %379 = tpu.matmul %377, %378, %cst_160 {dimension_numbers = #tpu.dot_dimension_numbers<[1], [0], [0], [1], [0, 0, 1, 1], [], []>} : vector<8x224xf32>, vector<224x10xf32>, vector<8x10xf32> -> vector<8x10xf32>
    %380 = arith.addf %376, %379 : vector<8x10xf32>
    %381 = vector.extract_strided_slice %375 {offsets = [8, 0], sizes = [8, 224], strides = [1, 1]} : vector<56x224xf32> to vector<8x224xf32>
    %c224 = arith.constant 224 : index
    %c0_161 = arith.constant 0 : index
    %382 = vector.load %arg9[%c224, %c0_161] : memref<1568x10xf32, #tpu.memory_space<vmem>>, vector<224x10xf32>
    %cst_162 = arith.constant dense<0.000000e+00> : vector<8x10xf32>
    %383 = tpu.matmul %381, %382, %cst_162 {dimension_numbers = #tpu.dot_dimension_numbers<[1], [0], [0], [1], [0, 0, 1, 1], [], []>} : vector<8x224xf32>, vector<224x10xf32>, vector<8x10xf32> -> vector<8x10xf32>
    %384 = arith.addf %380, %383 : vector<8x10xf32>
    %385 = vector.extract_strided_slice %375 {offsets = [16, 0], sizes = [8, 224], strides = [1, 1]} : vector<56x224xf32> to vector<8x224xf32>
    %c448 = arith.constant 448 : index
    %c0_163 = arith.constant 0 : index
    %386 = vector.load %arg9[%c448, %c0_163] : memref<1568x10xf32, #tpu.memory_space<vmem>>, vector<224x10xf32>
    %cst_164 = arith.constant dense<0.000000e+00> : vector<8x10xf32>
    %387 = tpu.matmul %385, %386, %cst_164 {dimension_numbers = #tpu.dot_dimension_numbers<[1], [0], [0], [1], [0, 0, 1, 1], [], []>} : vector<8x224xf32>, vector<224x10xf32>, vector<8x10xf32> -> vector<8x10xf32>
    %388 = arith.addf %384, %387 : vector<8x10xf32>
    %389 = vector.extract_strided_slice %375 {offsets = [24, 0], sizes = [8, 224], strides = [1, 1]} : vector<56x224xf32> to vector<8x224xf32>
    %c672 = arith.constant 672 : index
    %c0_165 = arith.constant 0 : index
    %390 = vector.load %arg9[%c672, %c0_165] : memref<1568x10xf32, #tpu.memory_space<vmem>>, vector<224x10xf32>
    %cst_166 = arith.constant dense<0.000000e+00> : vector<8x10xf32>
    %391 = tpu.matmul %389, %390, %cst_166 {dimension_numbers = #tpu.dot_dimension_numbers<[1], [0], [0], [1], [0, 0, 1, 1], [], []>} : vector<8x224xf32>, vector<224x10xf32>, vector<8x10xf32> -> vector<8x10xf32>
    %392 = arith.addf %388, %391 : vector<8x10xf32>
    %393 = vector.extract_strided_slice %375 {offsets = [32, 0], sizes = [8, 224], strides = [1, 1]} : vector<56x224xf32> to vector<8x224xf32>
    %c896 = arith.constant 896 : index
    %c0_167 = arith.constant 0 : index
    %394 = vector.load %arg9[%c896, %c0_167] : memref<1568x10xf32, #tpu.memory_space<vmem>>, vector<224x10xf32>
    %cst_168 = arith.constant dense<0.000000e+00> : vector<8x10xf32>
    %395 = tpu.matmul %393, %394, %cst_168 {dimension_numbers = #tpu.dot_dimension_numbers<[1], [0], [0], [1], [0, 0, 1, 1], [], []>} : vector<8x224xf32>, vector<224x10xf32>, vector<8x10xf32> -> vector<8x10xf32>
    %396 = arith.addf %392, %395 : vector<8x10xf32>
    %397 = vector.extract_strided_slice %375 {offsets = [40, 0], sizes = [8, 224], strides = [1, 1]} : vector<56x224xf32> to vector<8x224xf32>
    %c1120 = arith.constant 1120 : index
    %c0_169 = arith.constant 0 : index
    %398 = vector.load %arg9[%c1120, %c0_169] : memref<1568x10xf32, #tpu.memory_space<vmem>>, vector<224x10xf32>
    %cst_170 = arith.constant dense<0.000000e+00> : vector<8x10xf32>
    %399 = tpu.matmul %397, %398, %cst_170 {dimension_numbers = #tpu.dot_dimension_numbers<[1], [0], [0], [1], [0, 0, 1, 1], [], []>} : vector<8x224xf32>, vector<224x10xf32>, vector<8x10xf32> -> vector<8x10xf32>
    %400 = arith.addf %396, %399 : vector<8x10xf32>
    %401 = vector.extract_strided_slice %375 {offsets = [48, 0], sizes = [8, 224], strides = [1, 1]} : vector<56x224xf32> to vector<8x224xf32>
    %c1344 = arith.constant 1344 : index
    %c0_171 = arith.constant 0 : index
    %402 = vector.load %arg9[%c1344, %c0_171] : memref<1568x10xf32, #tpu.memory_space<vmem>>, vector<224x10xf32>
    %cst_172 = arith.constant dense<0.000000e+00> : vector<8x10xf32>
    %403 = tpu.matmul %401, %402, %cst_172 {dimension_numbers = #tpu.dot_dimension_numbers<[1], [0], [0], [1], [0, 0, 1, 1], [], []>} : vector<8x224xf32>, vector<224x10xf32>, vector<8x10xf32> -> vector<8x10xf32>
    %404 = arith.addf %400, %403 : vector<8x10xf32>
    %c0_173 = arith.constant 0 : index
    %c0_174 = arith.constant 0 : index
    %405 = vector.load %arg10[%c0_173, %c0_174] : memref<1x10xf32, #tpu.memory_space<vmem>>, vector<1x10xf32>
    %406 = vector.broadcast %405 : vector<1x10xf32> to vector<8x10xf32>
    %407 = arith.addf %404, %406 : vector<8x10xf32>
    %408 = vector.extract_strided_slice %407 {offsets = [0, 0], sizes = [2, 10], strides = [1, 1]} : vector<8x10xf32> to vector<2x10xf32>
    %c0_175 = arith.constant 0 : index
    %c0_176 = arith.constant 0 : index
    %409 = vector.load %arg11[%c0_175, %c0_176] : memref<2x10xf32, #tpu.memory_space<vmem>>, vector<2x10xf32>
    tpu.vector_store %arg11[%c0_175, %c0_176], %408 {strides = array<i32>} : memref<2x10xf32, #tpu.memory_space<vmem>>, vector<2x10xf32>,
    return
  }
}

</mosaic_0001>

<bundles_post_ra>
// kernel: cnn_forward.1
= control target key start
LH: loop header
LB: loop body
LE: loop exit
PB: predicated region body
PF: predicated region fallthrough
CT: control target
= control target key end

     0   :  { %16 = vsyncpa [#allocation3], 0  ;;  %s13111_s0 = inlined_call_operand.vmem [shape: bf16[68,28], index: 0, kind: input, shape index: {}]   ;;  %s13112_s1 = inlined_call_operand.vmem [shape: bf16[5,28,224], index: 1, kind: input, shape index: {}]   ;;  %s13113_s2 = inlined_call_operand.vmem [shape: bf16[5,28,224], index: 2, kind: input, shape index: {}]   ;;  %s13114_s3 = inlined_call_operand.vmem [shape: f32[1,16], index: 3, kind: input, shape index: {}]   ;;  %s13115_s4 = inlined_call_operand.vmem [shape: f32[1,16], index: 4, kind: input, shape index: {}]   ;;  %s13116_s5 = inlined_call_operand.vmem [shape: bf16[5,224,224], index: 5, kind: input, shape index: {}]   ;;  %s13117_s6 = inlined_call_operand.vmem [shape: bf16[5,224,224], index: 6, kind: input, shape index: {}]   ;;  %s13118_s7 = inlined_call_operand.vmem [shape: f32[1,32], index: 7, kind: input, shape index: {}]   ;;  %s13119_s8 = inlined_call_operand.vmem [shape: f32[1,32], index: 8, kind: input, shape index: {}]   ;;  %s13120_s9 = inlined_call_operand.hbm [shape: f32[1568,10], index: 9, kind: input, shape index: {}]   ;;  %s13121_s10 = inlined_call_operand.vmem [shape: f32[1,10], index: 10, kind: input, shape index: {}]   ;;  %s13122_s11 = inlined_call_operand.hbm [shape: f32[2,10], index: 11, kind: output, shape index: {}]  }
   0x1   :  { %17 = vsyncpa [#allocation4], 0  ;;  %s9614_s17 = smov [#allocation2]   ;;  %s9566_s21 = scalar_lea.hbm %s13120_s9, 25088 }
   0x2   :  { %s41_s18 = sshll.u32 %s9614_s17, 4  ;;  %p9567_p0 = scmp.ne.s32.totalorder %s13120_s9, %s9566_s21  ;;  %s42_s18 = int_to_ptr.vmem [resolvable:$true] %s41_s18 }
   0x3   :  { %p9570_p1 = scmp.lt.u32.totalorder %s9566_s21, %s13120_s9 }
   0x5   :  { %p9572_p2 = pnand %p9570_p1, %p9567_p0 }
   0x7   :  { %9575 = shalt.err (!%p9572_p2)
}
   0x8   :  { %s9576_s26 = scalar_lea.vmem %s42_s18, 25088  ;;  %p9581_p4 = scmp.lt.s32.totalorder %s42_s18, %s42_s18 }
   0x9   :  { %p9577_p3 = scmp.ne.s32.totalorder %s42_s18, %s9576_s26  ;;  %p9582_p5 = scmp.lt.s32.totalorder %s9576_s26, %s9576_s26 }
   0xb   :  { %p9583_p6 = por %p9582_p5, %p9581_p4 }
   0xd   :  { %p9584_p7 = pnand %p9583_p6, %p9577_p3 }
   0xf   :  { %9587 = shalt.err (!%p9584_p7)
}
  0x10   :  { %s9615_s27 = smov 128   ;;  %s9616_s28 = smov 8  }
  0x11   :  { %47 = dma.hbm_to_vmem [thread:$0]  %s13120_s9, 25088, %s42_s18, [#allocation3], %s9615_s27, %s9615_s27, %s9616_s28  }
  0x12   :  { %9610 = dma.done.wait [#allocation3], 25088  }
  0x13   :  { %9611 = vsyncadd [#allocation3], 4294942208  ;;  %v13143_v0 = vmov 0   ;;  %v9077_v1 = vld [vmem:[%s13112_s1 + $0x24] ss:$8 sps:$4 sm:$0xff]   ;;  %vm13125_vm0 = vcmask 1045504  }
  0x14   :  { %206 = vmatprep.mubr.bf16.mxu0 %v13143_v0  ;;  %216 = vmatprep.mubr.bf16.mxu1 %v13143_v0  ;;  %v9079_v2 = vld [vmem:[%s13112_s1 + $0x20] ss:$8 sps:$4 sm:$0xff]   ;;  %vm13124_vm1 = vsmask.f32 7424  ;;  %vm154_vm2 = vcmask 228352   ;;  %v9725_v8 = vld [vmem:[%s13111_s0 + $0x10] sm:$0xff]  }
  0x15   :  { %174 = vmatprep.subr.bf16.mxu0 %v9077_v1  ;;  %8830 = vmatprep.subr.bf16.mxu1 %v9077_v1  ;;  %v9080_v3 = vld [vmem:[%s13112_s1 + $0x34] ss:$8 sps:$4 sm:$0x3f]   ;;  %v9082_v4 = vld [vmem:[%s13112_s1 + $0x30] ss:$8 sps:$4 sm:$0x3f]  }
  0x16   :  { %175 = vmatpush1.bf16.msra.mxu0 %v9079_v2  ;;  %8832 = vmatpush1.bf16.msra.mxu1 %v9079_v2  ;;  %v169_v5 = vsel %vm13125_vm0, %v9082_v4, 0  ;;  %v9715_v6 = vld [vmem:[%s13111_s0] sm:$0xff]   ;;  %v9720_v7 = vld [vmem:[%s13111_s0 + $0x8] sm:$0xff]   ;;  %v116_v13 = vshll.u32 %v9725_v8, 16  ;;  %vm13123_vm3 = vsmask.f32 6400 }
  0x17   :  { %7421 = vmatprep.subr.msk.bf16.mxu0 %vm13125_vm0, %v9080_v3  ;;  %8831 = vmatprep.subr.msk.bf16.mxu1 %vm13125_vm0, %v9080_v3  ;;  %v101_v9 = vshrl.u32 %v9715_v6, 16  ;;  %v103_v10 = vshll.u32 %v9715_v6, 16  ;;  %v108_v11 = vshll.u32 %v9720_v7, 16  ;;  %v112_v12 = vshrl.u32 %v9720_v7, 16  ;;  %v9088_v14 = vld [vmem:[%s13113_s2 + $0x24] ss:$8 sps:$4 sm:$0xff]  }
  0x18   :  { %v9086_v19 = vld [vmem:[%s13113_s2 + $0x20] ss:$8 sps:$4 sm:$0xff]   ;;  %v9741_v20 = vld [vmem:[%s13111_s0 + $0x18] sm:$0xff]   ;;  %v118_v22 = vrot.slane %v116_v13, 1  ;;  %v120_v25 = vshrl.u32 %v9725_v8, 16  ;;  %v823_v55 = vrot.slane %v116_v13, 2 }
  0x19   :  { %v105_v15 = vrot.slane %v103_v10, 1  ;;  %v110_v16 = vrot.slane %v108_v11, 1  ;;  %v815_v17 = vrot.slane %v101_v9, 1  ;;  %v816_v18 = vrot.slane %v103_v10, 2  ;;  %v9089_v24 = vld [vmem:[%s13112_s1] ss:$8 sps:$4 sm:$0xff]  }
  0x1a   :  { %177 = vmatpush1.bf16.msra.mxu0 %v169_v5  ;;  %8833 = vmatpush1.bf16.msra.mxu1 %v169_v5  ;;  %v819_v21 = vrot.slane %v108_v11, 2  ;;  %v818_v23 = vrot.slane %v112_v12, 1  ;;  %v9091_v28 = vld [vmem:[%s13112_s1 + $0x4] ss:$8 sps:$4 sm:$0xff]   ;;  %v124_v30 = vshll.u32 %v9741_v20, 16  ;;  %v122_v38 = vor.u32 %v120_v25, %v118_v22 }
  0x1b   :  { %381 = vmatprep.subr.bf16.mxu1 %v9088_v14  ;;  %v106_v26 = vor.u32 %v105_v15, %v101_v9  ;;  %v114_v27 = vor.u32 %v112_v12, %v110_v16  ;;  %v817_v29 = vor.u32 %v816_v18, %v815_v17  ;;  %279 = vmatprep.subr.bf16.mxu0 %v9091_v28  ;;  %v9093_v34 = vld [vmem:[%s13112_s1 + $0x14] ss:$8 sps:$4 sm:$0x3f]   ;;  %v9095_v35 = vld [vmem:[%s13112_s1 + $0x10] ss:$8 sps:$4 sm:$0x3f]  }
  0x1c   :  { %v820_v31 = vor.u32 %v819_v21, %v818_v23  ;;  %v9096_v36 = vld [vmem:[%s13113_s2 + $0x34] ss:$8 sps:$4 sm:$0x3f]   ;;  %v126_v39 = vrot.slane %v124_v30, 1  ;;  %v274_v41 = vsel %vm13125_vm0, %v9095_v35, 0  ;;  %v128_v47 = vshrl.u32 %v9741_v20, 16 }
  0x1d   :  { %v9752_v32 = vsel %vm13124_vm1, %v106_v26, %v110_v16  ;;  %v9755_v33 = vsel %vm13124_vm1, %v114_v27, %v118_v22  ;;  %v9098_v40 = vld [vmem:[%s13113_s2 + $0x30] ss:$8 sps:$4 sm:$0x3f]   ;;  %v9782_v42 = vld [vmem:[%s13111_s0 + $0x20] ss:$0 sps:$4 sm:$0x33]  }
  0x1e   :  { %7422 = vmatmul.mubr.msk.bf16.vlgmr.msra.gmra.mrb[0].mxu0 %vm154_vm2, %v9752_v32  ;;  %7423 = vmatmul.mubr.msk.bf16.vlgmr.msra.gmra.mrb[0].mxu1 %vm154_vm2, %v9755_v33  ;;  %v9771_v37 = vsel %vm13123_vm3, %v817_v29, %v820_v31  ;;  %v376_v43 = vsel %vm13125_vm0, %v9098_v40, 0  ;;  %v9102_v44 = vld [vmem:[%s13113_s2 + $0x4] ss:$8 sps:$4 sm:$0xff]   ;;  %v127_v46 = vsel %vm13124_vm1, %v122_v38, %v126_v39  ;;  %v132_v48 = vshll.u32 %v9782_v42, 16  ;;  %v9103_v51 = vld [vmem:[%s13112_s1 + $0x40] ss:$8 sps:$4 sm:$0xff]  }
  0x1f   :  { %382 = vmatpush1.bf16.msra.mxu1 %v9086_v19  ;;  %280 = vmatpush1.bf16.msra.mxu0 %v9089_v24  ;;  %v9105_v45 = vld [vmem:[%s13112_s1 + $0x44] ss:$8 sps:$4 sm:$0xff]   ;;  %v130_v49 = vor.u32 %v128_v47, %v126_v39  ;;  %v9108_v52 = vld [vmem:[%s13112_s1 + $0x54] ss:$8 sps:$4 sm:$0x3f]   ;;  %v822_v54 = vrot.slane %v120_v25, 1 }
  0x20   :  { %226 = vmatprep.mubr.bf16.mxu1 %v13143_v0  ;;  %7430 = vmatprep.subr.msk.bf16.mxu0 %vm13125_vm0, %v9093_v34  ;;  %v134_v50 = vrot.slane %v132_v48, 1  ;;  %v9111_v53 = vld [vmem:[%s13112_s1 + $0x50] ss:$8 sps:$4 sm:$0x3f]   ;;  %v9117_v59 = vld [vmem:[%s13112_s1 + $0x64] ss:$8 sps:$4 sm:$0xff]  }
  0x21   :  { %311 = vmatprep.mubr.bf16.mxu0 %v13143_v0  ;;  %7443 = vmatprep.subr.msk.bf16.mxu1 %vm13125_vm0, %v9096_v36  ;;  %v824_v57 = vor.u32 %v823_v55, %v822_v54  ;;  %v597_v58 = vsel %vm13125_vm0, %v9111_v53, 0  ;;  %v826_v60 = vrot.slane %v128_v47, 1  ;;  %v827_v62 = vrot.slane %v124_v30, 2  ;;  %v9100_v5 = vld [vmem:[%s13113_s2] ss:$8 sps:$4 sm:$0xff]   ;;  %s9622_s0 = smov [#allocation5]  }
  0x22   :  { %v135_v56 = vsel %vm13124_vm1, %v130_v49, %v134_v50  ;;  %v830_v63 = vshrl.u32 %v9782_v42, 16  ;;  %v833_v1 = vrot.slane %v132_v48, 2  ;;  %v9106_v10 = vld [vmem:[%s13113_s2 + $0x14] ss:$8 sps:$4 sm:$0x3f]   ;;  %v557_v15 = vrot.slane %v9715_v6, 1 }
  0x23   :  { %282 = vmatpush1.bf16.msra.mxu0 %v274_v41  ;;  %384 = vmatpush1.bf16.msra.mxu1 %v376_v43  ;;  %v9817_v61 = vsel %vm13123_vm3, %v820_v31, %v824_v57  ;;  %v828_v2 = vor.u32 %v827_v62, %v826_v60  ;;  %v9110_v11 = vld [vmem:[%s13113_s2 + $0x10] ss:$8 sps:$4 sm:$0x3f]   ;;  %v9114_v13 = vld [vmem:[%s13113_s2 + $0x44] ss:$8 sps:$4 sm:$0xff]   ;;  %v558_v16 = vrot.slane %v9720_v7, 1 }
  0x24   :  { %478 = vmatprep.subr.bf16.mxu1 %v9102_v44  ;;  %602 = vmatprep.subr.bf16.mxu0 %v9105_v45  ;;  %v832_v3 = vrot.slane %v830_v63, 1  ;;  %v473_v14 = vsel %vm13125_vm0, %v9110_v11, 0  ;;  %vm13126_vm4 = vcmask 1046528   ;;  %v9115_v17 = vld [vmem:[%s13112_s1 + $0x60] ss:$8 sps:$4 sm:$0xff]   ;;  %v560_v23 = vrot.slane %v9725_v8, 1 }
  0x25   :  { %v9823_v4 = vsel %vm13123_vm3, %v824_v57, %v828_v2  ;;  %v9120_v18 = vld [vmem:[%s13112_s1 + $0x74] ss:$8 sps:$4 sm:$0x3f]   ;;  %v9123_v19 = vld [vmem:[%s13112_s1 + $0x70] ss:$8 sps:$4 sm:$0x3f]   ;;  %v559_v21 = vsel %vm13126_vm4, %v557_v15, %v558_v16  ;;  %v1337_v57 = vlaneseq }
  0x26   :  { %7424 = vmatmul.mubr.msk.bf16.gmra.mrb[4].mxu1 %vm154_vm2, %v127_v46  ;;  %v834_v9 = vor.u32 %v833_v1, %v832_v3  ;;  %v9129_v22 = vld [vmem:[%s13112_s1 + $0x84] ss:$8 sps:$4 sm:$0xff]   ;;  %v867_v24 = vsel %vm13125_vm0, %v9123_v19, 0  ;;  %v561_v25 = vsel %vm13126_vm4, %v558_v16, %v560_v23  ;;  %v9112_v26 = vld [vmem:[%s13113_s2 + $0x40] ss:$8 sps:$4 sm:$0xff]   ;;  %v562_v29 = vrot.slane %v9741_v20, 1 }
  0x27   :  { %236 = vmatprep.mubr.bf16.mxu1 %v13143_v0  ;;  %v9118_v27 = vld [vmem:[%s13113_s2 + $0x54] ss:$8 sps:$4 sm:$0x3f]   ;;  %v9122_v28 = vld [vmem:[%s13113_s2 + $0x50] ss:$8 sps:$4 sm:$0x3f]  }
  0x28   :  { %v9838_v12 = vsel %vm13123_vm3, %v828_v2, %v834_v9  ;;  %v9126_v30 = vld [vmem:[%s13113_s2 + $0x64] ss:$8 sps:$4 sm:$0xff]   ;;  %v563_v31 = vsel %vm13126_vm4, %v560_v23, %v562_v29  ;;  %v9127_v35 = vld [vmem:[%s13112_s1 + $0x80] ss:$8 sps:$4 sm:$0xff]   ;;  %v1086_v47 = vrot.slane %v9720_v7, 2  ;;  %v1088_v49 = vrot.slane %v9725_v8, 2 }
  0x29   :  { %v9132_v36 = vld [vmem:[%s13112_s1 + $0x94] ss:$8 sps:$4 sm:$0x3f]   ;;  %v9135_v38 = vld [vmem:[%s13112_s1 + $0x90] ss:$8 sps:$4 sm:$0x3f]  }
  0x2a   :  { %7431 = vmatmul.mubr.msk.bf16.vlgmr.msra.gmra.mrb[0].mxu0 %vm154_vm2, %v9715_v6  ;;  %v1125_v39 = vsel %vm13125_vm0, %v9135_v38, 0  ;;  %v9124_v40 = vld [vmem:[%s13113_s2 + $0x60] ss:$8 sps:$4 sm:$0xff]   ;;  %v9130_v41 = vld [vmem:[%s13113_s2 + $0x74] ss:$8 sps:$4 sm:$0x3f]   ;;  %v1089_v50 = vsel %vm13125_vm0, %v1086_v47, %v1088_v49 }
  0x2b   :  { %321 = vmatprep.mubr.bf16.mxu0 %v13143_v0  ;;  %603 = vmatpush1.bf16.msra.mxu0 %v9103_v51  ;;  %v9134_v43 = vld [vmem:[%s13113_s2 + $0x70] ss:$8 sps:$4 sm:$0x3f]   ;;  %v9138_v44 = vld [vmem:[%s13113_s2 + $0x84] ss:$8 sps:$4 sm:$0xff]   ;;  %v1092_v53 = vrot.slane %v9782_v42, 2 }
  0x2c   :  { %7465 = vmatprep.subr.msk.bf16.mxu0 %vm13125_vm0, %v9108_v52  ;;  %v985_v45 = vsel %vm13125_vm0, %v9134_v43, 0  ;;  %v9141_v51 = vld [vmem:[%s13113_s2 + $0x90] ss:$8 sps:$4 sm:$0x3f]   ;;  %v13154_v60 = vmov 0.0|0.0   ;;  %v10024_v62 = vand.u32 127, %v1337_v57 }
  0x2d   :  { %s7399_s29 = sshll.u32 %s9622_s0, 4  ;;  %s7400_s29 = int_to_ptr.vmem [resolvable:$true] %s7399_s29 }
  0x2e   :  { %7425 = vmatmul.mubr.msk.bf16.gmra.mrb[8].mxu1 %vm154_vm2, %v135_v56  ;;  %13316 = vst [vmem:[#allocation9_spill] sm:$0xff] %v10024_v62  ;;  %s9588_s30 = scalar_lea.vmem %s7400_s29, 32  ;;  %p9593_p9 = scmp.lt.s32.totalorder %s7400_s29, %s7400_s29 }
  0x2f   :  { %413 = vmatprep.mubr.bf16.mxu1 %v13143_v0  ;;  %605 = vmatpush1.bf16.msra.mxu0 %v597_v58  ;;  %p9589_p8 = scmp.ne.s32.totalorder %s7400_s29, %s9588_s30  ;;  %p9594_p10 = scmp.lt.s32.totalorder %s9588_s30, %s9588_s30 }
  0x30   :  { %872 = vmatprep.subr.bf16.mxu0 %v9117_v59 }
  0x31   :  { %p9595_p11 = por %p9594_p10, %p9593_p9 }
  0x32   :  { %7432 = vmatmul.mubr.msk.bf16.gmra.mrb[4].mxu0 %vm154_vm2, %v9720_v7 }
  0x33   :  { %331 = vmatprep.mubr.bf16.mxu0 %v13143_v0  ;;  %p9596_p12 = pnand %p9595_p11, %p9589_p8 }
  0x36   :  { %7444 = vmatmul.mubr.msk.bf16.vlgmr.msra.gmra.mrb[12].mxu1 %vm154_vm2, %v9752_v32  ;;  %v715_v32 = vsel %vm13125_vm0, %v9122_v28, 0 }
  0x37   :  { %479 = vmatpush1.bf16.msra.mxu1 %v9100_v5  ;;  %423 = vmatprep.mubr.bf16.mxu1 %v13143_v0 }
  0x38   :  { %7452 = vmatprep.subr.msk.bf16.mxu1 %vm13125_vm0, %v9106_v10 }
  0x3a   :  { %7433 = vmatmul.mubr.msk.bf16.gmra.mrb[8].mxu0 %vm154_vm2, %v9725_v8 }
  0x3b   :  { %341 = vmatprep.mubr.bf16.mxu0 %v13143_v0  ;;  %481 = vmatpush1.bf16.msra.mxu1 %v473_v14 }
  0x3c   :  { %720 = vmatprep.subr.bf16.mxu1 %v9114_v13 }
  0x3e   :  { %7445 = vmatmul.mubr.msk.bf16.gmra.mrb[16].mxu1 %vm154_vm2, %v9755_v33  ;;  %v564_v33 = vrot.slane %v9782_v42, 1 }
  0x3f   :  { %433 = vmatprep.mubr.bf16.mxu1 %v13143_v0 }
  0x40   :  { %v565_v34 = vsel %vm13126_vm4, %v562_v29, %v564_v33 }
  0x42   :  { %7434 = vmatmul.mubr.msk.bf16.gmra.mrb[12].mxu0 %vm154_vm2, %v9741_v20 }
  0x43   :  { %634 = vmatprep.mubr.bf16.mxu0 %v13143_v0 }
  0x46   :  { %7446 = vmatmul.mubr.msk.bf16.gmra.mrb[20].mxu1 %vm154_vm2, %v127_v46  ;;  %v1085_v46 = vrot.slane %v9715_v6, 2 }
  0x47   :  { %443 = vmatprep.mubr.bf16.mxu1 %v13143_v0 }
  0x48   :  { %v1087_v48 = vsel %vm13125_vm0, %v1085_v46, %v1086_v47  ;;  %v13348_v47 = vmov 0 }
  0x4a   :  { %7466 = vmatmul.mubr.msk.bf16.vlgmr.msra.gmra.mrb[0].mxu0 %vm154_vm2, %v559_v21 }
  0x4b   :  { %644 = vmatprep.mubr.bf16.mxu0 %v13143_v0  ;;  %873 = vmatpush1.bf16.msra.mxu0 %v9115_v17 }
  0x4c   :  { %7491 = vmatprep.subr.msk.bf16.mxu0 %vm13125_vm0, %v9120_v18  ;;  %v13163_v18 = vmov 1.0|1.0  }
  0x4e   :  { %7447 = vmatmul.mubr.msk.bf16.gmra.mrb[24].mxu1 %vm154_vm2, %v135_v56 }
  0x4f   :  { %510 = vmatprep.mubr.bf16.mxu1 %v13143_v0  ;;  %875 = vmatpush1.bf16.msra.mxu0 %v867_v24 }
  0x50   :  { %1130 = vmatprep.subr.bf16.mxu0 %v9129_v22 }
  0x52   :  { %7467 = vmatmul.mubr.msk.bf16.gmra.mrb[4].mxu0 %vm154_vm2, %v561_v25 }
  0x53   :  { %654 = vmatprep.mubr.bf16.mxu0 %v13143_v0 }
  0x56   :  { %7453 = vmatmul.mubr.msk.bf16.vlgmr.msra.gmra.mrb[12].mxu1 %vm154_vm2, %v9715_v6  ;;  %v9136_v6 = vld [vmem:[%s13113_s2 + $0x80] ss:$8 sps:$4 sm:$0xff]  }
  0x57   :  { %721 = vmatpush1.bf16.msra.mxu1 %v9112_v26  ;;  %520 = vmatprep.mubr.bf16.mxu1 %v13143_v0 }
  0x58   :  { %7478 = vmatprep.subr.msk.bf16.mxu1 %vm13125_vm0, %v9118_v27 }
  0x5a   :  { %7468 = vmatmul.mubr.msk.bf16.gmra.mrb[8].mxu0 %vm154_vm2, %v563_v31 }
  0x5b   :  { %664 = vmatprep.mubr.bf16.mxu0 %v13143_v0  ;;  %723 = vmatpush1.bf16.msra.mxu1 %v715_v32 }
  0x5c   :  { %990 = vmatprep.subr.bf16.mxu1 %v9126_v30 }
  0x5e   :  { %7454 = vmatmul.mubr.msk.bf16.gmra.mrb[16].mxu1 %vm154_vm2, %v9720_v7  ;;  %v1090_v7 = vrot.slane %v9741_v20, 2 }
  0x5f   :  { %530 = vmatprep.mubr.bf16.mxu1 %v13143_v0 }
  0x60   :  { %v1091_v52 = vsel %vm13125_vm0, %v1088_v49, %v1090_v7 }
  0x62   :  { %7469 = vmatmul.mubr.msk.bf16.gmra.mrb[12].mxu0 %vm154_vm2, %v565_v34 }
  0x63   :  { %904 = vmatprep.mubr.bf16.mxu0 %v13143_v0 }
  0x66   :  { %7455 = vmatmul.mubr.msk.bf16.gmra.mrb[20].mxu1 %vm154_vm2, %v9725_v8  ;;  %v9139_v8 = vld [vmem:[%s13113_s2 + $0x94] ss:$8 sps:$4 sm:$0x3f]  }
  0x67   :  { %540 = vmatprep.mubr.bf16.mxu1 %v13143_v0 }
  0x6a   :  { %7492 = vmatmul.mubr.msk.bf16.vlgmr.msra.gmra.mrb[0].mxu0 %vm154_vm2, %v9771_v37 }
  0x6b   :  { %914 = vmatprep.mubr.bf16.mxu0 %v13143_v0  ;;  %1131 = vmatpush1.bf16.msra.mxu0 %v9127_v35 }
  0x6c   :  { %7517 = vmatprep.subr.msk.bf16.mxu0 %vm13125_vm0, %v9132_v36 }
  0x6e   :  { %7456 = vmatmul.mubr.msk.bf16.gmra.mrb[24].mxu1 %vm154_vm2, %v9741_v20  ;;  %v1243_v20 = vsel %vm13125_vm0, %v9141_v51, 0 }
  0x6f   :  { %752 = vmatprep.mubr.bf16.mxu1 %v13143_v0  ;;  %1133 = vmatpush1.bf16.msra.mxu0 %v1125_v39 }
  0x70   :  { %8332 = vmatprep.subr.bf16.mxu0 %v13154_v60 }
  0x72   :  { %7493 = vmatmul.mubr.msk.bf16.gmra.mrb[4].mxu0 %vm154_vm2, %v9817_v61 }
  0x73   :  { %924 = vmatprep.mubr.bf16.mxu0 %v13143_v0 }
  0x76   :  { %7479 = vmatmul.mubr.msk.bf16.vlgmr.msra.gmra.mrb[12].mxu1 %vm154_vm2, %v559_v21 }
  0x77   :  { %991 = vmatpush1.bf16.msra.mxu1 %v9124_v40  ;;  %762 = vmatprep.mubr.bf16.mxu1 %v13143_v0  ;;  %v13342_v40 = vmov 0 }
  0x78   :  { %7504 = vmatprep.subr.msk.bf16.mxu1 %vm13125_vm0, %v9130_v41  ;;  %v13344_v41 = vmov 0 }
  0x7a   :  { %7494 = vmatmul.mubr.msk.bf16.gmra.mrb[8].mxu0 %vm154_vm2, %v9823_v4 }
  0x7b   :  { %934 = vmatprep.mubr.bf16.mxu0 %v13143_v0  ;;  %993 = vmatpush1.bf16.msra.mxu1 %v985_v45 }
  0x7c   :  { %1248 = vmatprep.subr.bf16.mxu1 %v9138_v44 }
  0x7e   :  { %7480 = vmatmul.mubr.msk.bf16.gmra.mrb[16].mxu1 %vm154_vm2, %v561_v25 }
  0x7f   :  { %772 = vmatprep.mubr.bf16.mxu1 %v13143_v0 }
  0x82   :  { %7495 = vmatmul.mubr.msk.bf16.gmra.mrb[12].mxu0 %vm154_vm2, %v9838_v12 }
  0x83   :  { %1162 = vmatprep.mubr.bf16.mxu0 %v13143_v0 }
  0x86   :  { %7481 = vmatmul.mubr.msk.bf16.gmra.mrb[20].mxu1 %vm154_vm2, %v563_v31  ;;  %v13146_v31 = vmov 0.0  }
  0x87   :  { %782 = vmatprep.mubr.bf16.mxu1 %v13143_v0 }
  0x8a   :  { %7518 = vmatmul.mubr.msk.bf16.vlgmr.msra.gmra.mrb[0].mxu0 %vm154_vm2, %v1087_v48 }
  0x8b   :  { %1172 = vmatprep.mubr.bf16.mxu0 %v13143_v0 }
  0x8e   :  { %7482 = vmatmul.mubr.msk.bf16.gmra.mrb[24].mxu1 %vm154_vm2, %v565_v34 }
  0x8f   :  { %1022 = vmatprep.mubr.bf16.mxu1 %v13143_v0 }
  0x92   :  { %7519 = vmatmul.mubr.msk.bf16.gmra.mrb[4].mxu0 %vm154_vm2, %v1089_v50 }
  0x93   :  { %1182 = vmatprep.mubr.bf16.mxu0 %v13143_v0 }
  0x96   :  { %7505 = vmatmul.mubr.msk.bf16.vlgmr.msra.gmra.mrb[12].mxu1 %vm154_vm2, %v9771_v37  ;;  %v1093_v37 = vsel %vm13125_vm0, %v1090_v7, %v1092_v53 }
  0x97   :  { %1249 = vmatpush1.bf16.msra.mxu1 %v9136_v6  ;;  %1032 = vmatprep.mubr.bf16.mxu1 %v13143_v0 }
  0x98   :  { %7530 = vmatprep.subr.msk.bf16.mxu1 %vm13125_vm0, %v9139_v8  ;;  %v13354_v8 = vmov 0 }
  0x9a   :  { %7520 = vmatmul.mubr.msk.bf16.gmra.mrb[8].mxu0 %vm154_vm2, %v1091_v52 }
  0x9b   :  { %1192 = vmatprep.mubr.bf16.mxu0 %v13143_v0  ;;  %1251 = vmatpush1.bf16.msra.mxu1 %v1243_v20  ;;  %v13358_v20 = vmov 0 }
  0x9e   :  { %7506 = vmatmul.mubr.msk.bf16.gmra.mrb[16].mxu1 %vm154_vm2, %v9817_v61  ;;  %v10022_v61 = vshrl.u32 %v1337_v57, 7  ;;  %v13360_v57 = vmov 0 }
  0x9f   :  { %1042 = vmatprep.mubr.bf16.mxu1 %v13143_v0 }
  0xa0   :  { %13315 = vst [vmem:[#allocation8_spill] sm:$0xff] %v10022_v61  ;;  %v10031_v2 = vadd.s32 8, %v10022_v61  ;;  %v1506_v3 = vand.u32 15, %v10022_v61  ;;  %v10038_v5 = vadd.s32 24, %v10022_v61  ;;  %v10087_v22 = vadd.s32 32, %v10022_v61 }
  0xa1   :  { %v10090_v23 = vadd.s32 40, %v10022_v61  ;;  %v10112_v28 = vadd.s32 48, %v10022_v61  ;;  %v10119_v29 = vadd.s32 56, %v10022_v61  ;;  %v10137_v34 = vadd.s32 64, %v10022_v61 }
  0xa2   :  { %7521 = vmatmul.mubr.msk.bf16.gmra.mrb[12].mxu0 %vm154_vm2, %v1093_v37  ;;  %13317 = vst [vmem:[#allocation10_spill] sm:$0xff] %v10031_v2  ;;  %13319 = vst [vmem:[#allocation12_spill] sm:$0xff] %v10038_v5  ;;  %v1513_v9 = vand.u32 15, %v10031_v2  ;;  %vm10042_vm5 = vcmp.eq.s32.totalorder %v1506_v3, %v10024_v62  ;;  %v1534_v24 = vand.u32 15, %v10087_v22  ;;  %v10140_v35 = vadd.s32 72, %v10022_v61 }
  0xa3   :  { %13328 = vst [vmem:[#allocation13_spill] sm:$0xff] %v10087_v22  ;;  %13329 = vst [vmem:[#allocation14_spill] sm:$0xff] %v10090_v23  ;;  %v1541_v25 = vand.u32 15, %v10090_v23  ;;  %v1548_v30 = vand.u32 15, %v10112_v28  ;;  %v1555_v32 = vand.u32 15, %v10119_v29  ;;  %v1562_v38 = vand.u32 15, %v10137_v34 }
  0xa4   :  { %vm10049_vm6 = vcmp.eq.s32.totalorder %v1513_v9, %v10024_v62  ;;  %vm10102_vm11 = vcmp.eq.s32.totalorder %v1534_v24, %v10024_v62  ;;  %13334 = vst [vmem:[#allocation15_spill] sm:$0xff] %v10112_v28  ;;  %13335 = vst [vmem:[#allocation16_spill] sm:$0xff] %v10119_v29  ;;  %v1569_v39 = vand.u32 15, %v10140_v35  ;;  %v10171_v43 = vadd.s32 80, %v10022_v61 }
  0xa5   :  { %vm13132_vm9 = vmpackc.low %vm10049_vm6, %vm10042_vm5  ;;  %vm10107_vm12 = vcmp.eq.s32.totalorder %v1541_v25, %v10024_v62  ;;  %vm10132_vm14 = vcmp.eq.s32.totalorder %v1548_v30, %v10024_v62  ;;  %13338 = vst [vmem:[#allocation17_spill] sm:$0xff] %v10137_v34  ;;  %vm10143_vm15 = vcmp.eq.s32.totalorder %v1555_v32, %v10024_v62  ;;  %vm10161_vm3 = vcmp.eq.s32.totalorder %v1562_v38, %v10024_v62 }
  0xa6   :  { %7507 = vmatmul.mubr.msk.bf16.gmra.mrb[20].mxu1 %vm154_vm2, %v9823_v4  ;;  %v10035_v4 = vadd.s32 16, %v10022_v61  ;;  %8334 = vmatpush1.bf16.msk.msra.mxu0 %vm13132_vm9, %v13163_v18  ;;  %vm13129_vm13 = vmpackc.low %vm10107_vm12, %vm10102_vm11  ;;  %13339 = vst [vmem:[#allocation18_spill] sm:$0xff] %v10140_v35  ;;  %v13343_v40 = vsel %vm10161_vm3, 4294967295, %v13342_v40  ;;  %vm10166_vm1 = vcmp.eq.s32.totalorder %v1569_v39, %v10024_v62  ;;  %v10174_v44 = vadd.s32 88, %v10022_v61 }
  0xa7   :  { %1052 = vmatprep.mubr.bf16.mxu1 %v13143_v0  ;;  %8335 = vmatprep.subr.bf16.mxu0 %v13154_v60  ;;  %v13345_v41 = vsel %vm10166_vm1, 4294967295, %v13344_v41  ;;  %13346 = vst [vmem:[#allocation19_spill] sm:$0xff] %v10171_v43  ;;  %vm13128_vm0 = vmpackc.low %vm10166_vm1, %vm10161_vm3  ;;  %v1576_v45 = vand.u32 15, %v10171_v43  ;;  %v10200_v49 = vadd.s32 96, %v10022_v61  ;;  %v10224_v51 = vadd.s32 112, %v10022_v61 }
  0xa8   :  { %13318 = vst [vmem:[#allocation11_spill] sm:$0xff] %v10035_v4  ;;  %v1520_v11 = vand.u32 15, %v10035_v4  ;;  %13347 = vst [vmem:[#allocation20_spill] sm:$0xff] %v10174_v44  ;;  %v1583_v46 = vand.u32 15, %v10174_v44  ;;  %v13362_v3 = vmov 0  ;;  %v10258_v9 = vadd.s32 128, %v10022_v61 }
  0xa9   :  { %vm10190_vm4 = vcmp.eq.s32.totalorder %v1576_v45, %v10024_v62  ;;  %13352 = vst [vmem:[#allocation21_spill] sm:$0xff] %v10200_v49  ;;  %v1590_v6 = vand.u32 15, %v10200_v49  ;;  %13356 = vst [vmem:[#allocation23_spill] sm:$0xff] %v10224_v51  ;;  %v1604_v53 = vand.u32 15, %v10224_v51  ;;  %v13366_v25 = vmov 0 }
  0xaa   :  { %vm10054_vm7 = vcmp.eq.s32.totalorder %v1520_v11, %v10024_v62  ;;  %v13349_v47 = vsel %vm10190_vm4, 4294967295, %v13348_v47  ;;  %13364 = vst [vmem:[#allocation25_spill] sm:$0xff] %v10258_v9  ;;  %v10261_v11 = vadd.s32 136, %v10022_v61  ;;  %v13368_v30 = vmov 0 }
  0xab   :  { %vm10248_vm9 = vcmp.eq.s32.totalorder %v1604_v53, %v10024_v62  ;;  %v10287_v32 = vadd.s32 144, %v10022_v61  ;;  %v10290_v38 = vadd.s32 152, %v10022_v61  ;;  %v10323_v53 = vadd.s32 168, %v10022_v61 }
  0xac   :  { %v13361_v57 = vsel %vm10248_vm9, 4294967295, %v13360_v57  ;;  %13365 = vst [vmem:[#allocation26_spill] sm:$0xff] %v10261_v11  ;;  %v1625_v24 = vand.u32 15, %v10261_v11 }
  0xad   :  { %13370 = vst [vmem:[#allocation27_spill] sm:$0xff] %v10287_v32  ;;  %13371 = vst [vmem:[#allocation28_spill] sm:$0xff] %v10290_v38  ;;  %v1632_v39 = vand.u32 15, %v10287_v32  ;;  %v1639_v45 = vand.u32 15, %v10290_v38  ;;  %v13393_v38 = vmov 0 }
  0xae   :  { %7508 = vmatmul.mubr.msk.bf16.gmra.mrb[24].mxu1 %vm154_vm2, %v9838_v12  ;;  %v1527_v12 = vand.u32 15, %v10038_v5  ;;  %13377 = vst [vmem:[#allocation30_spill] sm:$0xff] %v10323_v53  ;;  %v13397_v32 = vmov 1.0|1.0  }
  0xaf   :  { %1280 = vmatprep.mubr.bf16.mxu1 %v13143_v0 }
  0xb0   :  { %vm10059_vm8 = vcmp.eq.s32.totalorder %v1527_v12, %v10024_v62  ;;  %v1618_v12 = vand.u32 15, %v10258_v9 }
  0xb1   :  { %vm13130_vm10 = vmpackc.low %vm10059_vm8, %vm10054_vm7 }
  0xb2   :  { %8337 = vmatpush1.bf16.msk.msra.mxu0 %vm13130_vm10, %v13163_v18 }
  0xb3   :  { %8338 = vmatprep.subr.bf16.mxu0 %v13154_v60 }
  0xb6   :  { %7531 = vmatmul.mubr.msk.bf16.vlgmr.msra.gmra.mrb[12].mxu1 %vm154_vm2, %v1087_v48  ;;  %8340 = vmatpush1.bf16.msk.msra.mxu0 %vm13129_vm13, %v13163_v18  ;;  %v13350_v48 = vmov 0  ;;  %vm10219_vm13 = vcmp.eq.s32.totalorder %v1590_v6, %v10024_v62  ;;  %v13374_v6 = vmov 0 }
  0xb7   :  { %1290 = vmatprep.mubr.bf16.mxu1 %v13143_v0  ;;  %8341 = vmatprep.subr.bf16.mxu0 %v13154_v60  ;;  %v13355_v8 = vsel %vm10219_vm13, 4294967295, %v13354_v8 }
  0xbe   :  { %7532 = vmatmul.mubr.msk.bf16.gmra.mrb[16].mxu1 %vm154_vm2, %v1089_v50  ;;  %v10207_v50 = vadd.s32 104, %v10022_v61 }
  0xbf   :  { %1300 = vmatprep.mubr.bf16.mxu1 %v13143_v0 }
  0xc0   :  { %13353 = vst [vmem:[#allocation22_spill] sm:$0xff] %v10207_v50  ;;  %v1597_v7 = vand.u32 15, %v10207_v50 }
  0xc2   :  { %vm10230_vm10 = vcmp.eq.s32.totalorder %v1597_v7, %v10024_v62  ;;  %v10316_v7 = vadd.s32 160, %v10022_v61 }
  0xc3   :  { %v13359_v20 = vsel %vm10230_vm10, 4294967295, %v13358_v20 }
  0xc4   :  { %13376 = vst [vmem:[#allocation29_spill] sm:$0xff] %v10316_v7 }
  0xc6   :  { %7533 = vmatmul.mubr.msk.bf16.gmra.mrb[20].mxu1 %vm154_vm2, %v1091_v52  ;;  %v10227_v52 = vadd.s32 120, %v10022_v61 }
  0xc7   :  { %1310 = vmatprep.mubr.bf16.mxu1 %v13143_v0  ;;  %v13382_v0 = vmov 0 }
  0xc8   :  { %13357 = vst [vmem:[#allocation24_spill] sm:$0xff] %v10227_v52 }
  0xce   :  { %7534 = vmatmul.mubr.msk.bf16.gmra.mrb[24].mxu1 %vm154_vm2, %v1093_v37  ;;  %vm13127_vm2 = vmpackc.low %vm10143_vm15, %vm10132_vm14  ;;  %v1611_v37 = vand.u32 15, %v10227_v52 }
  0xcf   :  { %2171 = vmatprep.mubr.f32.mxu1 %v13146_v31  ;;  %8343 = vmatpush1.bf16.msk.msra.mxu0 %vm13127_vm2, %v13163_v18  ;;  %vm10195_vm2 = vcmp.eq.s32.totalorder %v1583_v46, %v10024_v62  ;;  %v13372_v46 = vmov 0 }
  0xd0   :  { %8344 = vmatprep.subr.bf16.mxu0 %v13154_v60  ;;  %v13351_v48 = vsel %vm10195_vm2, 4294967295, %v13350_v48 }
  0xd3   :  { %8346 = vmatpush1.bf16.msk.msra.mxu0 %vm13128_vm0, %v13163_v18  ;;  %vm13131_vm0 = vmpackc.low %vm10195_vm2, %vm10190_vm4  ;;  %vm10253_vm4 = vcmp.eq.s32.totalorder %v1611_v37, %v10024_v62  ;;  %v1646_v37 = vand.u32 15, %v10316_v7  ;;  %v13391_v7 = vmov 0 }
  0xd4   :  { %8347 = vmatprep.subr.bf16.mxu0 %v13154_v60  ;;  %v13363_v3 = vsel %vm10253_vm4, 4294967295, %v13362_v3 }
  0xd7   :  { %8349 = vmatpush1.bf16.msk.msra.mxu0 %vm13131_vm0, %v13163_v18  ;;  %vm13134_vm0 = vmpackc.low %vm10230_vm10, %vm10219_vm13  ;;  %vm10277_vm13 = vcmp.eq.s32.totalorder %v1618_v12, %v10024_v62  ;;  %vm10282_vm10 = vcmp.eq.s32.totalorder %v1625_v24, %v10024_v62  ;;  %v1653_v12 = vand.u32 15, %v10323_v53  ;;  %v13378_v24 = vmov 0 }
  0xd8   :  { %8350 = vmatprep.subr.bf16.mxu0 %v13154_v60  ;;  %v13367_v25 = vsel %vm10277_vm13, 4294967295, %v13366_v25  ;;  %v13369_v30 = vsel %vm10282_vm10, 4294967295, %v13368_v30  ;;  %v13386_v53 = vmov 0 }
  0xdb   :  { %8352 = vmatpush1.bf16.msk.msra.mxu0 %vm13134_vm0, %v13163_v18  ;;  %vm13137_vm0 = vmpackc.low %vm10253_vm4, %vm10248_vm9  ;;  %vm10306_vm9 = vcmp.eq.s32.totalorder %v1632_v39, %v10024_v62  ;;  %vm10311_vm4 = vcmp.eq.s32.totalorder %v1639_v45, %v10024_v62  ;;  %v10340_v39 = vadd.s32 176, %v10022_v61  ;;  %v10343_v45 = vadd.s32 184, %v10022_v61 }
  0xdc   :  { %8353 = vmatprep.subr.bf16.mxu0 %v13154_v60  ;;  %v13373_v46 = vsel %vm10306_vm9, 4294967295, %v13372_v46  ;;  %v13375_v6 = vsel %vm10311_vm4, 4294967295, %v13374_v6 }
  0xdd   :  { %13380 = vst [vmem:[#allocation31_spill] sm:$0xff] %v10340_v39  ;;  %13381 = vst [vmem:[#allocation32_spill] sm:$0xff] %v10343_v45  ;;  %v1667_v31 = vand.u32 15, %v10343_v45  ;;  %v10374_v45 = vadd.s32 192, %v10022_v61 }
  0xdf   :  { %8355 = vmatpush1.bf16.msk.msra.mxu0 %vm13137_vm0, %v13163_v18  ;;  %vm13140_vm0 = vmpackc.low %vm10282_vm10, %vm10277_vm13  ;;  %vm10335_vm13 = vcmp.eq.s32.totalorder %v1646_v37, %v10024_v62  ;;  %vm10346_vm10 = vcmp.eq.s32.totalorder %v1653_v12, %v10024_v62  ;;  %v1660_v37 = vand.u32 15, %v10340_v39  ;;  %v13384_v12 = vmov 0  ;;  %13388 = vst [vmem:[#allocation33_spill] sm:$0xff] %v10374_v45 }
  0xe0   :  { %8356 = vmatprep.subr.bf16.mxu0 %v13154_v60  ;;  %v13379_v24 = vsel %vm10335_vm13, 4294967295, %v13378_v24  ;;  %v13383_v0 = vsel %vm10346_vm10, 4294967295, %v13382_v0  ;;  %v10377_v39 = vadd.s32 200, %v10022_v61 }
  0xe2   :  { %13389 = vst [vmem:[#allocation34_spill] sm:$0xff] %v10377_v39 }
  0xe3   :  { %8358 = vmatpush1.bf16.msk.msra.mxu0 %vm13140_vm0, %v13163_v18  ;;  %vm13145_vm0 = vmpackc.low %vm10311_vm4, %vm10306_vm9  ;;  %vm10364_vm9 = vcmp.eq.s32.totalorder %v1660_v37, %v10024_v62  ;;  %vm10369_vm4 = vcmp.eq.s32.totalorder %v1667_v31, %v10024_v62  ;;  %v1674_v37 = vand.u32 15, %v10374_v45  ;;  %v13390_v31 = vmov 0.0|0.0  }
  0xe4   :  { %8359 = vmatprep.subr.bf16.mxu0 %v13154_v60  ;;  %v13385_v12 = vsel %vm10364_vm9, 4294967295, %v13384_v12  ;;  %v13387_v53 = vsel %vm10369_vm4, 4294967295, %v13386_v53  ;;  %v10406_v45 = vadd.s32 216, %v10022_v61 }
  0xe6   :  { %13396 = vst [vmem:[#allocation36_spill] sm:$0xff] %v10406_v45 }
  0xe7   :  { %8361 = vmatpush1.bf16.msk.msra.mxu0 %vm13145_vm0, %v13163_v18  ;;  %vm13153_vm0 = vmpackc.low %vm10346_vm10, %vm10335_vm13  ;;  %vm10393_vm13 = vcmp.eq.s32.totalorder %v1674_v37, %v10024_v62 }
  0xe8   :  { %8362 = vmatprep.subr.bf16.mxu0 %v13154_v60  ;;  %v13392_v7 = vsel %vm10393_vm13, 4294967295, %v13391_v7 }
  0xeb   :  { %8364 = vmatpush1.bf16.msk.msra.mxu0 %vm13153_vm0, %v13163_v18  ;;  %vm13162_vm0 = vmpackc.low %vm10369_vm4, %vm10364_vm9 }
  0xec   :  { %8365 = vmatprep.subr.bf16.mxu0 %v13154_v60  ;;  %v1681_v60 = vand.u32 15, %v10377_v39  ;;  %v10403_v39 = vadd.s32 208, %v10022_v61 }
  0xee   :  { %vm10398_vm10 = vcmp.eq.s32.totalorder %v1681_v60, %v10024_v62  ;;  %13395 = vst [vmem:[#allocation35_spill] sm:$0xff] %v10403_v39  ;;  %v1688_v37 = vand.u32 15, %v10403_v39  ;;  %v9153_v39 = vld [vmem:[%s13117_s6 + $0xf4] ss:$8 sps:$4 sm:$0xff]  }
  0xef   :  { %8367 = vmatpush1.bf16.msk.msra.mxu0 %vm13162_vm0, %v13163_v18  ;;  %v13394_v38 = vsel %vm10398_vm10, 4294967295, %v13393_v38  ;;  %vm13171_vm0 = vmpackc.low %vm10398_vm10, %vm10393_vm13  ;;  %v1695_v18 = vand.u32 15, %v10406_v45 }
  0xf0   :  { %8368 = vmatprep.subr.bf16.mxu0 %v13390_v31  ;;  %vm10422_vm9 = vcmp.eq.s32.totalorder %v1688_v37, %v10024_v62  ;;  %v10442_v37 = vadd.s32 128, %v10024_v62 }
  0xf1   :  { %v10009_v42 = vpop.f32.mrb[0].mxu1  ;;  %vm10427_vm4 = vcmp.eq.s32.totalorder %v1695_v18, %v10024_v62  ;;  %v1929_v18 = vand.u32 15, %v10024_v62 }
  0xf2   :  { %v10011_v54 = vpop.f32.mrb[1].mxu1  ;;  %vm13177_vm2 = vmpackc.low %vm10427_vm4, %vm10422_vm9  ;;  %13402 = vst [vmem:[#allocation37_spill] sm:$0xff] %v10442_v37  ;;  %v1936_v45 = vand.u32 15, %v10442_v37 }
  0xf3   :  { %v10013_v55 = vpop.f32.mrb[2].mxu1  ;;  %8370 = vmatpush1.bf16.msk.msra.mxu0 %vm13171_vm0, %v13397_v32  ;;  %vm1949_vm0 = vcmp.eq.s32.totalorder %v1929_v18, %v10022_v61  ;;  %vm1951_vm13 = vcmp.eq.s32.totalorder %v1929_v18, %v10031_v2 }
  0xf4   :  { %v10015_v56 = vpop.f32.mrb[3].mxu1  ;;  %8371 = vmatprep.subr.bf16.mxu0 %v13390_v31  ;;  %vm1950_vm10 = vcmp.eq.s32.totalorder %v1936_v45, %v10022_v61  ;;  %vm1952_vm3 = vcmp.eq.s32.totalorder %v1936_v45, %v10031_v2  ;;  %vm10450_vm1 = vmpackc.low %vm1951_vm13, %vm1949_vm0 }
  0xf7   :  { %8373 = vmatpush1.bf16.msk.msra.mxu0 %vm13177_vm2, %v13397_v32  ;;  %vm10454_vm2 = vmpackc.low %vm1952_vm3, %vm1950_vm10  ;;  %vm13245_vm3 = vcmask 785408  }
  0xf8   :  { %8375 = vmatprep.subr.msk.bf16.mxu1 %vm10454_vm2, %v13397_v32  ;;  %8421 = vmatprep.subr.msk.bf16.mxu0 %vm10454_vm2, %v13397_v32 }
  0xf9   :  { %v10017_v58 = vpop.f32.mrb[4].mxu1  ;;  %8377 = vmatpush1.bf16.msk.msra.mxu1 %vm10450_vm1, %v13397_v32 }
  0xfa   :  { %v10019_v59 = vpop.f32.mrb[5].mxu1  ;;  %8378 = vmatprep.subr.bf16.mxu1 %v13390_v31 }
  0xfb   :  { %v10026_v63 = vpop.f32.mrb[6].mxu1 }
  0xfc   :  { %v10028_v1 = vpop.f32.mrb[7].mxu1 }
 0x101   :  { %v10063_v16 = vpop.f32.mrb[8].mxu1 }
 0x102   :  { %v10069_v17 = vpop.f32.mrb[9].mxu1 }
 0x103   :  { %v10077_v19 = vpop.f32.mrb[10].mxu1 }
 0x104   :  { %v10084_v21 = vpop.f32.mrb[11].mxu1 }
 0x15d   :  { %v10468_v45 = vpop.f32.mrb[0].mxu0 }
 0x15e   :  { %13407 = vst [vmem:[#allocation38_spill] sm:$0xff] %v10468_v45  ;;  %v10470_v18 = vpop.f32.mrb[1].mxu0 }
 0x15f   :  { %13408 = vst [vmem:[#allocation39_spill] sm:$0xff] %v10470_v18  ;;  %v10472_v37 = vpop.f32.mrb[2].mxu0 }
 0x160   :  { %13409 = vst [vmem:[#allocation40_spill] sm:$0xff] %v10472_v37  ;;  %v10474_v52 = vpop.f32.mrb[3].mxu0 }
 0x165   :  { %v1174_v51 = vpop.f32.mrb[4].mxu0  ;;  %v13469_v27 = vld [vmem:[#allocation38_spill] sm:$0xff] }
 0x166   :  { %v10477_v50 = vadd.f32 %v1174_v51, %v10009_v42  ;;  %v1176_v49 = vpop.f32.mrb[5].mxu0 }
 0x167   :  { %v10480_v44 = vadd.f32 %v1176_v49, %v10011_v54  ;;  %v1178_v43 = vpop.f32.mrb[6].mxu0  ;;  %v13470_v36 = vld [vmem:[#allocation40_spill] sm:$0xff] }
 0x168   :  { %13410 = vst [vmem:[#allocation41_spill] sm:$0xff] %v10477_v50  ;;  %v10483_v35 = vadd.f32 %v1178_v43, %v10013_v55  ;;  %v1180_v34 = vpop.f32.mrb[7].mxu0 }
 0x169   :  { %v10486_v28 = vadd.f32 %v1180_v34, %v10015_v56 }
 0x16a   :  { %13411 = vst [vmem:[#allocation42_spill] sm:$0xff] %v10483_v35 }
 0x16d   :  { %v1184_v23 = vpop.f32.mrb[8].mxu0 }
 0x16e   :  { %v10489_v4 = vadd.f32 %v1184_v23, %v10017_v58  ;;  %v1186_v2 = vpop.f32.mrb[9].mxu0 }
 0x16f   :  { %v10492_v42 = vadd.f32 %v1186_v2, %v10019_v59  ;;  %v1188_v51 = vpop.f32.mrb[10].mxu0 }
 0x170   :  { %13412 = vst [vmem:[#allocation43_spill] sm:$0xff] %v10489_v4  ;;  %v10495_v54 = vadd.f32 %v1188_v51, %v10026_v63  ;;  %v1190_v49 = vpop.f32.mrb[11].mxu0  ;;  %v13196_v51 = vand.u32 31, %v10022_v61 }
 0x171   :  { %v10498_v55 = vadd.f32 %v1190_v49, %v10028_v1 }
 0x172   :  { %13413 = vst [vmem:[#allocation44_spill] sm:$0xff] %v10495_v54  ;;  %vm1442_vm0 = vcmp.ge.s32.totalorder %v13196_v51, 2  ;;  %v13207_v51 = vand.u32 31, %v10038_v5 }
 0x173   :  { %13414 = vst [vmem:[#allocation45_spill] sm:$0xff] %v10498_v55 }
 0x174   :  { %vm1453_vm10 = vcmp.lt.s32.totalorder %v13207_v51, 30 }
 0x175   :  { %v1194_v43 = vpop.f32.mrb[12].mxu0 }
 0x176   :  { %v10501_v56 = vadd.f32 %v1194_v43, %v10063_v16  ;;  %v1196_v34 = vpop.f32.mrb[13].mxu0  ;;  %v13420_v16 = vmov 0.0  }
 0x177   :  { %v10504_v58 = vadd.f32 %v1196_v34, %v10069_v17  ;;  %v1198_v23 = vpop.f32.mrb[14].mxu0  ;;  %v10518_v49 = vsel %vm1442_vm0, 1.0, %v13420_v16 }
 0x178   :  { %13415 = vst [vmem:[#allocation46_spill] sm:$0xff] %v10501_v56  ;;  %v10507_v59 = vadd.f32 %v1198_v23, %v10077_v19  ;;  %v1200_v2 = vpop.f32.mrb[15].mxu0  ;;  %13421 = vst [vmem:[#allocation51_spill] sm:$0xff] %v10518_v49 }
 0x179   :  { %13416 = vst [vmem:[#allocation47_spill] sm:$0xff] %v10504_v58  ;;  %v10510_v63 = vadd.f32 %v1200_v2, %v10084_v21 }
 0x17a   :  { %13417 = vst [vmem:[#allocation48_spill] sm:$0xff] %v10507_v59 }
 0x17b   :  { %13418 = vst [vmem:[#allocation49_spill] sm:$0xff] %v10510_v63 }
 0x189   :  { %v10515_v1 = vpop.f32.mrb[12].mxu1 }
 0x18a   :  { %13419 = vst [vmem:[#allocation50_spill] sm:$0xff] %v10515_v1  ;;  %v1961_v17 = vadd.f32 %v10515_v1, %v10468_v45  ;;  %v10522_v43 = vpop.f32.mrb[13].mxu1 }
 0x18b   :  { %13422 = vst [vmem:[#allocation52_spill] sm:$0xff] %v10522_v43  ;;  %v1962_v19 = vadd.f32 %v10522_v43, %v10470_v18  ;;  %v10526_v21 = vpop.f32.mrb[14].mxu1 }
 0x18c   :  { %13423 = vst [vmem:[#allocation53_spill] sm:$0xff] %v10526_v21  ;;  %v1977_v34 = vmul.f32 %v10518_v49, %v1961_v17  ;;  %v1963_v23 = vadd.f32 %v10526_v21, %v10472_v37  ;;  %v10531_v2 = vpop.f32.mrb[15].mxu1 }
 0x18d   :  { %v1978_v62 = vmul.f32 %v10518_v49, %v1962_v19  ;;  %v1964_v1 = vadd.f32 %v10531_v2, %v10474_v52 }
 0x18e   :  { %v1993_v45 = vadd.f32 %v1977_v34, %v1963_v23 }
 0x18f   :  { %v2007_v43 = vsel %vm13245_vm3, %v1978_v62, 0.0  ;;  %v2008_v18 = vsel %vm13245_vm3, %v1964_v1, 0.0  ;;  %v10553_v62 = vsel %vm1453_vm10, 1.0, %v13420_v16  ;;  %vm2103_vm10 = vcmask 130048  }
 0x190   :  { %v2009_v61 = vadd.f32 %v2008_v18, %v2007_v43  ;;  %13427 = vst [vmem:[#allocation57_spill] sm:$0xff] %v10553_v62 }
 0x191   :  { %v10541_v17 = vpop.f32.mrb[16].mxu1 }
 0x192   :  { %13424 = vst [vmem:[#allocation54_spill] sm:$0xff] %v10541_v17  ;;  %v1965_v21 = vadd.f32 %v10477_v50, %v10541_v17  ;;  %v10545_v37 = vpop.f32.mrb[17].mxu1  ;;  %v13428_v50 = vand.u32 31, %v10087_v22 }
 0x193   :  { %13425 = vst [vmem:[#allocation55_spill] sm:$0xff] %v10545_v37  ;;  %v1966_v34 = vadd.f32 %v10480_v44, %v10545_v37  ;;  %v10550_v23 = vpop.f32.mrb[18].mxu1 }
 0x194   :  { %13426 = vst [vmem:[#allocation56_spill] sm:$0xff] %v10550_v23  ;;  %v1994_v18 = vadd.f32 %v1993_v45, %v1965_v21  ;;  %v1967_v1 = vadd.f32 %v10483_v35, %v10550_v23  ;;  %v10557_v43 = vpop.f32.mrb[19].mxu1  ;;  %vm1446_vm13 = vcmp.ge.s32.totalorder %v13428_v50, 2 }
 0x195   :  { %v2010_v51 = vsel %vm13245_vm3, %v1966_v34, 0.0  ;;  %v1968_v5 = vadd.f32 %v10486_v28, %v10557_v43  ;;  %v10570_v23 = vsel %vm1446_vm13, 1.0, %v13420_v16  ;;  %vm13436_vm13 = vmpackc.low %vm10049_vm6, %vm10042_vm5  ;;  %vm13440_vm6 = vnez %v13345_v41  ;;  %v13471_v41 = vld [vmem:[#allocation39_spill] sm:$0xff] }
 0x196   :  { %v2011_v19 = vadd.f32 %v2010_v51, %v2009_v61  ;;  %v1983_v17 = vmul.f32 %v10553_v62, %v1967_v1  ;;  %13430 = vst [vmem:[#allocation59_spill] sm:$0xff] %v10570_v23  ;;  %vm13439_vm5 = vmpackc.low %vm10143_vm15, %vm10132_vm14  ;;  %vm13446_vm14 = vnez %v13359_v20  ;;  %vm13447_vm15 = vnez %v13355_v8 }
 0x197   :  { %v1984_v49 = vmul.f32 %v10553_v62, %v1968_v5 }
 0x198   :  { %v1995_v37 = vadd.f32 %v1994_v18, %v1983_v17 }
 0x199   :  { %v2012_v45 = vsel %vm13245_vm3, %v1984_v49, 0.0  ;;  %v10567_v21 = vpop.f32.mrb[20].mxu1  ;;  %v13226_v49 = vand.u32 31, %v10119_v29 }
 0x19a   :  { %13429 = vst [vmem:[#allocation58_spill] sm:$0xff] %v10567_v21  ;;  %v2013_v34 = vadd.f32 %v2012_v45, %v2011_v19  ;;  %v1969_v35 = vadd.f32 %v10489_v4, %v10567_v21  ;;  %v10574_v61 = vpop.f32.mrb[21].mxu1 }
 0x19b   :  { %13431 = vst [vmem:[#allocation60_spill] sm:$0xff] %v10574_v61  ;;  %v1970_v51 = vadd.f32 %v10492_v42, %v10574_v61  ;;  %v10578_v50 = vpop.f32.mrb[22].mxu1  ;;  %vm1457_vm0 = vcmp.lt.s32.totalorder %v13226_v49, 30 }
 0x19c   :  { %13432 = vst [vmem:[#allocation61_spill] sm:$0xff] %v10578_v50  ;;  %v1985_v5 = vmul.f32 %v10570_v23, %v1969_v35  ;;  %v10581_v17 = vpop.f32.mrb[23].mxu1  ;;  %v1971_v1 = vadd.f32 %v10495_v54, %v10578_v50 }
 0x19d   :  { %v1986_v18 = vmul.f32 %v10570_v23, %v1970_v51  ;;  %v1972_v19 = vadd.f32 %v10498_v55, %v10581_v17 }
 0x19e   :  { %v1996_v45 = vadd.f32 %v1995_v37, %v1985_v5 }
 0x19f   :  { %v2014_v22 = vsel %vm13245_vm3, %v1986_v18, 0.0  ;;  %v2016_v35 = vsel %vm13245_vm3, %v1972_v19, 0.0 }
 0x1a0   :  { %v1997_v4 = vadd.f32 %v1996_v45, %v1971_v1  ;;  %v2015_v21 = vadd.f32 %v2014_v22, %v2013_v34  ;;  %v10604_v22 = vsel %vm1457_vm0, 1.0, %v13420_v16  ;;  %vm13438_vm0 = vmpackc.low %vm10107_vm12, %vm10102_vm11  ;;  %vm13443_vm11 = vnez %v13351_v48 }
 0x1a1   :  { %v10593_v62 = vpop.f32.mrb[24].mxu1  ;;  %vm13444_vm12 = vnez %v13349_v47 }
 0x1a2   :  { %13433 = vst [vmem:[#allocation62_spill] sm:$0xff] %v10593_v62  ;;  %v2017_v61 = vadd.f32 %v2016_v35, %v2015_v21  ;;  %v1973_v51 = vadd.f32 %v10501_v56, %v10593_v62  ;;  %v10597_v23 = vpop.f32.mrb[25].mxu1 }
 0x1a3   :  { %13434 = vst [vmem:[#allocation63_spill] sm:$0xff] %v10597_v23  ;;  %v1974_v37 = vadd.f32 %v10504_v58, %v10597_v23  ;;  %v10601_v5 = vpop.f32.mrb[26].mxu1 }
 0x1a4   :  { %13435 = vst [vmem:[#allocation64_spill] sm:$0xff] %v10601_v5  ;;  %v1998_v34 = vadd.f32 %v1997_v4, %v1973_v51  ;;  %v1975_v18 = vadd.f32 %v10507_v59, %v10601_v5  ;;  %v10608_v19 = vpop.f32.mrb[27].mxu1 }
 0x1a5   :  { %v2018_v21 = vsel %vm13245_vm3, %v1974_v37, 0.0  ;;  %v1976_v1 = vadd.f32 %v10510_v63, %v10608_v19 }
 0x1a6   :  { %v2019_v45 = vadd.f32 %v2018_v21, %v2017_v61  ;;  %v1991_v35 = vmul.f32 %v10604_v22, %v1975_v18 }
 0x1a7   :  { %v1992_v49 = vmul.f32 %v10604_v22, %v1976_v1 }
 0x1a8   :  { %v1999_v29 = vadd.f32 %v1998_v34, %v1991_v35 }
 0x1a9   :  { %v2020_v56 = vsel %vm13245_vm3, %v1992_v49, 0.0 }
 0x1aa   :  { %v2000_v54 = vrot.slane %v1999_v29, 4  ;;  %v2021_v4 = vadd.f32 %v2020_v56, %v2019_v45 }
 0x1ac   :  { %v2001_v51 = vadd.f32 %v2000_v54, %v1999_v29  ;;  %v2022_v62 = vrot.slane %v2021_v4, 4 }
 0x1ae   :  { %v2002_v59 = vrot.slane %v2001_v51, 2  ;;  %v2023_v5 = vadd.f32 %v2022_v62, %v2021_v4 }
 0x1b0   :  { %v2003_v50 = vadd.f32 %v2002_v59, %v2001_v51  ;;  %v2024_v58 = vrot.slane %v2023_v5, 2  ;;  %v13480_v51 = vld [vmem:[#allocation51_spill] sm:$0xff] }
 0x1b2   :  { %v2025_v37 = vadd.f32 %v2024_v58, %v2023_v5  ;;  %v2004_v55 = vrot.slane %v2003_v50, 1 }
 0x1b4   :  { %v2026_v23 = vrot.slane %v2025_v37, 1  ;;  %v2005_v61 = vadd.f32 %v2004_v55, %v2003_v50  ;;  %v13478_v55 = vld [vmem:[#allocation49_spill] sm:$0xff]  ;;  %v13479_v50 = vld [vmem:[#allocation47_spill] sm:$0xff] }
 0x1b6   :  { %v2027_v63 = vadd.f32 %v2026_v23, %v2025_v37 }
 0x1b8   :  { %7599 = vmatprep.mubr.msk.f32.mxu0 %vm13245_vm3, %v2027_v63 }
 0x1b9   :  { %2096 = vmatmul.mubr.f32.vlgmr.msra.gmra.mrb[16].mxu0 %v2005_v61 }
 0x1ba   :  { %8423 = vmatpush1.bf16.msk.msra.mxu0 %vm10450_vm1, %v13397_v32  ;;  %2461 = vmatprep.mubr.f32.mxu0 %v13420_v16 }
 0x1bb   :  { %8425 = vmatprep.subr.msk.bf16.mxu0 %vm10454_vm2, %v13397_v32  ;;  %vm13437_vm2 = vmpackc.low %vm10059_vm8, %vm10054_vm7  ;;  %vm13441_vm7 = vnez %v13343_v40 }
 0x1bc   :  { %vm13442_vm8 = vmpackc.low %vm13440_vm6, %vm13441_vm7  ;;  %vm13452_vm7 = vnez %v13369_v30 }
 0x28c   :  { %v2097_v29 = vpop.f32.mrb[16].mxu0 }
 0x28d   :  { %v2102_v54 = vmul.f32 0.0006377551, %v2097_v29  ;;  %v2099_v56 = vpop.f32.mrb[17].mxu0  ;;  %v13481_v29 = vld [vmem:[#allocation41_spill] sm:$0xff] }
 0x28e   :  { %v13482_v56 = vld [vmem:[#allocation42_spill] sm:$0xff] }
 0x28f   :  { %7604 = vmatmul.mubr.msk.f32.vlgmr.msra.gmra.mrb[28].mxu1 %vm2103_vm10, %v2102_v54 }
 0x290   :  { %8380 = vmatpush1.bf16.msk.msra.mxu1 %vm13436_vm13, %v13397_v32  ;;  %vm13445_vm13 = vmpackc.low %vm13443_vm11, %vm13444_vm12  ;;  %vm13455_vm12 = vnez %v13375_v6 }
 0x291   :  { %8381 = vmatprep.subr.bf16.mxu1 %v13390_v31 }
 0x294   :  { %8383 = vmatpush1.bf16.msk.msra.mxu1 %vm13437_vm2, %v13397_v32  ;;  %vm13448_vm2 = vmpackc.low %vm13446_vm14, %vm13447_vm15  ;;  %vm13458_vm15 = vnez %v13383_v0  ;;  %v13468_v0 = vld [vmem:[#allocation8_spill] sm:$0xff] }
 0x295   :  { %8384 = vmatprep.subr.bf16.mxu1 %v13390_v31  ;;  %v10723_v10 = vsub.s32 0, %v13468_v0 }
 0x298   :  { %8386 = vmatpush1.bf16.msk.msra.mxu1 %vm13438_vm0, %v13397_v32  ;;  %vm13449_vm0 = vnez %v13363_v3  ;;  %v13472_v3 = vld [vmem:[#allocation52_spill] sm:$0xff] }
 0x299   :  { %8387 = vmatprep.subr.bf16.mxu1 %v13390_v31 }
 0x29c   :  { %8389 = vmatpush1.bf16.msk.msra.mxu1 %vm13439_vm5, %v13397_v32  ;;  %vm13450_vm5 = vnez %v13361_v57 }
 0x29d   :  { %8390 = vmatprep.subr.bf16.mxu1 %v13390_v31  ;;  %vm13451_vm6 = vmpackc.low %vm13449_vm0, %vm13450_vm5  ;;  %vm13461_vm5 = vnez %v13387_v53  ;;  %v13477_v53 = vld [vmem:[#allocation45_spill] sm:$0xff] }
 0x2a0   :  { %8392 = vmatpush1.bf16.msk.msra.mxu1 %vm13442_vm8, %v13397_v32  ;;  %vm13453_vm8 = vnez %v13367_v25  ;;  %v13473_v25 = vld [vmem:[#allocation55_spill] sm:$0xff] }
 0x2a1   :  { %8393 = vmatprep.subr.bf16.mxu1 %v13390_v31  ;;  %vm13454_vm11 = vmpackc.low %vm13452_vm7, %vm13453_vm8  ;;  %vm13464_vm8 = vnez %v13394_v38 }
 0x2a4   :  { %8395 = vmatpush1.bf16.msk.msra.mxu1 %vm13445_vm13, %v13397_v32  ;;  %vm13456_vm13 = vnez %v13373_v46  ;;  %v13475_v46 = vld [vmem:[#allocation63_spill] sm:$0xff] }
 0x2a5   :  { %8396 = vmatprep.subr.bf16.mxu1 %v13390_v31  ;;  %vm13457_vm14 = vmpackc.low %vm13455_vm12, %vm13456_vm13 }
 0x2a6   :  { %vm13467_vm13 = vmpackc.low %vm10427_vm4, %vm10422_vm9 }
 0x2a8   :  { %8398 = vmatpush1.bf16.msk.msra.mxu1 %vm13448_vm2, %v13397_v32  ;;  %vm13459_vm2 = vnez %v13379_v24 }
 0x2a9   :  { %8399 = vmatprep.subr.bf16.mxu1 %v13390_v31  ;;  %vm13460_vm0 = vmpackc.low %vm13458_vm15, %vm13459_vm2 }
 0x2ac   :  { %8401 = vmatpush1.bf16.msk.msra.mxu1 %vm13451_vm6, %v13397_v32  ;;  %vm13462_vm6 = vnez %v13385_v12 }
 0x2ad   :  { %8402 = vmatprep.subr.bf16.mxu1 %v13390_v31  ;;  %vm13463_vm7 = vmpackc.low %vm13461_vm5, %vm13462_vm6 }
 0x2b0   :  { %8404 = vmatpush1.bf16.msk.msra.mxu1 %vm13454_vm11, %v13397_v32  ;;  %vm13465_vm11 = vnez %v13392_v7 }
 0x2b1   :  { %8405 = vmatprep.subr.bf16.mxu1 %v13390_v31  ;;  %vm13466_vm12 = vmpackc.low %vm13464_vm8, %vm13465_vm11 }
 0x2b4   :  { %8407 = vmatpush1.bf16.msk.msra.mxu1 %vm13457_vm14, %v13397_v32 }
 0x2b5   :  { %8408 = vmatprep.subr.bf16.mxu1 %v13390_v31 }
 0x2b8   :  { %8410 = vmatpush1.bf16.msk.msra.mxu1 %vm13460_vm0, %v13397_v32 }
 0x2b9   :  { %8411 = vmatprep.subr.bf16.mxu1 %v13390_v31 }
 0x2bc   :  { %8413 = vmatpush1.bf16.msk.msra.mxu1 %vm13463_vm7, %v13397_v32 }
 0x2bd   :  { %8414 = vmatprep.subr.bf16.mxu1 %v13390_v31 }
 0x2c0   :  { %8416 = vmatpush1.bf16.msk.msra.mxu1 %vm13466_vm12, %v13397_v32 }
 0x2c1   :  { %8417 = vmatprep.subr.bf16.mxu1 %v13390_v31  ;;  %v13496_v31 = vld [vmem:[#allocation46_spill] sm:$0xff] }
 0x2c4   :  { %8419 = vmatpush1.bf16.msk.msra.mxu1 %vm13467_vm13, %v13397_v32 }
 0x362   :  { %v2173_v13 = vpop.f32.mrb[28].mxu1 }
 0x363   :  { %v10726_v14 = vrot.slane %v2173_v13, %v10723_v10  ;;  %v2175_v15 = vpop.f32.mrb[29].mxu1 }
 0x364   :  { %v2185_v26 = vrot.slane %v2175_v15, %v10723_v10 }
 0x365   :  { %v10731_v33 = vsub.f32 %v13469_v27, %v10726_v14  ;;  %v10735_v40 = vsub.f32 %v13470_v36, %v10726_v14  ;;  %v10818_v54 = vsub.f32 %v13481_v29, %v10726_v14  ;;  %v10822_v13 = vsub.f32 %v13482_v56, %v10726_v14 }
 0x366   :  { %v10738_v47 = vsub.f32 %v13471_v41, %v2185_v26  ;;  %v10741_v48 = vsub.f32 %v10474_v52, %v2185_v26  ;;  %v10744_v8 = vsub.f32 %v10486_v28, %v2185_v26  ;;  %v10747_v20 = vsub.f32 %v10480_v44, %v2185_v26  ;;  %v13474_v28 = vld [vmem:[#allocation60_spill] sm:$0xff] }
 0x367   :  { %v10750_v57 = vsub.f32 %v10492_v42, %v2185_v26  ;;  %v10753_v9 = vsub.f32 %v13472_v3, %v2185_v26  ;;  %v10756_v11 = vsub.f32 %v10531_v2, %v2185_v26  ;;  %v10759_v30 = vsub.f32 %v13473_v25, %v2185_v26 }
 0x368   :  { %v10762_v52 = vsub.f32 %v10557_v43, %v2185_v26  ;;  %v10765_v38 = vsub.f32 %v13474_v28, %v2185_v26  ;;  %v10768_v44 = vsub.f32 %v10581_v17, %v2185_v26  ;;  %v10771_v6 = vsub.f32 %v13475_v46, %v2185_v26 }
 0x369   :  { %v10774_v7 = vsub.f32 %v10608_v19, %v2185_v26  ;;  %v10777_v24 = vsub.f32 %v13477_v53, %v2185_v26  ;;  %v2219_v12 = vmul.f32 %v10738_v47, %v10738_v47  ;;  %v2221_v60 = vmul.f32 %v10741_v48, %v10741_v48  ;;  %v13484_v53 = vld [vmem:[#allocation59_spill] sm:$0xff] }
 0x36a   :  { %v2225_v42 = vmul.f32 %v10744_v8, %v10744_v8  ;;  %v10786_v58 = vsub.f32 %v13478_v55, %v2185_v26  ;;  %v2223_v59 = vmul.f32 %v10747_v20, %v10747_v20  ;;  %v2227_v63 = vmul.f32 %v10750_v57, %v10750_v57  ;;  %v13486_v55 = vld [vmem:[#allocation53_spill] sm:$0xff] }
 0x36b   :  { %13476 = vst [vmem:[#allocation38_spill] sm:$0xff] %v10774_v7  ;;  %v2235_v2 = vmul.f32 %v10753_v9, %v10753_v9  ;;  %v2237_v23 = vmul.f32 %v10756_v11, %v10756_v11  ;;  %v2239_v62 = vmul.f32 %v10759_v30, %v10759_v30  ;;  %v2241_v43 = vmul.f32 %v10762_v52, %v10762_v52 }
 0x36c   :  { %v10801_v17 = vsub.f32 %v13479_v50, %v2185_v26  ;;  %v2243_v49 = vmul.f32 %v10765_v38, %v10765_v38  ;;  %v2229_v5 = vmul.f32 %v10777_v24, %v10777_v24  ;;  %v2233_v21 = vmul.f32 %v10786_v58, %v10786_v58  ;;  %v13483_v26 = vld [vmem:[#allocation57_spill] sm:$0xff]  ;;  %v13489_v50 = vld [vmem:[#allocation58_spill] sm:$0xff] }
 0x36d   :  { %v2251_v34 = vadd.f32 %v2235_v2, %v2219_v12  ;;  %v2253_v18 = vadd.f32 %v2237_v23, %v2221_v60  ;;  %v2257_v19 = vadd.f32 %v2241_v43, %v2225_v42  ;;  %v2245_v1 = vmul.f32 %v10768_v44, %v10768_v44  ;;  %v13485_v60 = vld [vmem:[#allocation50_spill] sm:$0xff] }
 0x36e   :  { %v2249_v45 = vmul.f32 %v10774_v7, %v10774_v7  ;;  %v2255_v35 = vadd.f32 %v2239_v62, %v2223_v59  ;;  %v2259_v4 = vadd.f32 %v2243_v49, %v2227_v63  ;;  %v2231_v61 = vmul.f32 %v10801_v17, %v10801_v17  ;;  %v13487_v63 = vld [vmem:[#allocation54_spill] sm:$0xff]  ;;  %v13488_v62 = vld [vmem:[#allocation56_spill] sm:$0xff] }
 0x36f   :  { %v2267_v37 = vmul.f32 %v13480_v51, %v2251_v34  ;;  %v2247_v15 = vmul.f32 %v10771_v6, %v10771_v6  ;;  %v2273_v27 = vmul.f32 %v13483_v26, %v2257_v19  ;;  %v2296_v41 = vsel %vm13245_vm3, %v2253_v18, 0.0  ;;  %v13491_v19 = vld [vmem:[#allocation43_spill] sm:$0xff] }
 0x370   :  { %v2261_v3 = vadd.f32 %v2245_v1, %v2229_v5  ;;  %v2265_v25 = vadd.f32 %v2249_v45, %v2233_v21  ;;  %v2298_v46 = vsel %vm13245_vm3, %v2255_v35, 0.0  ;;  %v2275_v12 = vmul.f32 %v13484_v53, %v2259_v4  ;;  %v13490_v5 = vld [vmem:[#allocation61_spill] sm:$0xff]  ;;  %v13492_v1 = vld [vmem:[#allocation62_spill] sm:$0xff]  ;;  %v13493_v35 = vld [vmem:[#allocation64_spill] sm:$0xff] }
 0x371   :  { %v2295_v36 = vsel %vm13245_vm3, %v2267_v37, 0.0  ;;  %v10833_v42 = vsub.f32 %v13485_v60, %v10726_v14  ;;  %v10837_v59 = vsub.f32 %v13486_v55, %v10726_v14  ;;  %v10841_v2 = vsub.f32 %v13487_v63, %v10726_v14 }
 0x372   :  { %v2297_v28 = vadd.f32 %v2296_v41, %v2295_v36  ;;  %v10845_v43 = vsub.f32 %v13488_v62, %v10726_v14  ;;  %v10849_v49 = vsub.f32 %v13489_v50, %v10726_v14  ;;  %v10853_v34 = vsub.f32 %v13490_v5, %v10726_v14 }
 0x373   :  { %v2300_v18 = vsel %vm13245_vm3, %v2273_v27, 0.0  ;;  %v10858_v21 = vsub.f32 %v13491_v19, %v10726_v14  ;;  %v10862_v45 = vsub.f32 %v13492_v1, %v10726_v14  ;;  %v10866_v4 = vsub.f32 %v13493_v35, %v10726_v14 }
 0x374   :  { %v2299_v23 = vadd.f32 %v2298_v46, %v2297_v28  ;;  %v2218_v29 = vmul.f32 %v10731_v33, %v10731_v33  ;;  %v2263_v56 = vadd.f32 %v2247_v15, %v2231_v61  ;;  %v2302_v36 = vsel %vm13245_vm3, %v2275_v12, 0.0 }
 0x375   :  { %v2220_v27 = vmul.f32 %v10735_v40, %v10735_v40  ;;  %v2234_v41 = vmul.f32 %v10833_v42, %v10833_v42  ;;  %v2224_v46 = vmul.f32 %v10822_v13, %v10822_v13  ;;  %v2236_v60 = vmul.f32 %v10837_v59, %v10837_v59 }
 0x376   :  { %v2301_v37 = vadd.f32 %v2300_v18, %v2299_v23  ;;  %v2240_v55 = vmul.f32 %v10845_v43, %v10845_v43  ;;  %v2281_v61 = vmul.f32 %v10604_v22, %v2265_v25  ;;  %v2304_v15 = vsel %vm13245_vm3, %v2261_v3, 0.0  ;;  %v13494_v25 = vld [vmem:[#allocation44_spill] sm:$0xff] }
 0x377   :  { %v2222_v12 = vmul.f32 %v10818_v54, %v10818_v54  ;;  %v2226_v63 = vmul.f32 %v10858_v21, %v10858_v21  ;;  %v2238_v62 = vmul.f32 %v10841_v2, %v10841_v2  ;;  %v2242_v50 = vmul.f32 %v10849_v49, %v10849_v49  ;;  %v13495_v3 = vld [vmem:[#allocation48_spill] sm:$0xff] }
 0x378   :  { %v2303_v28 = vadd.f32 %v2302_v36, %v2301_v37  ;;  %v2250_v5 = vadd.f32 %v2234_v41, %v2218_v29  ;;  %v2306_v18 = vsel %vm13245_vm3, %v2263_v56, 0.0  ;;  %v10894_v19 = vsub.f32 %v13494_v25, %v10726_v14 }
 0x379   :  { %v10898_v1 = vsub.f32 %v13495_v3, %v10726_v14  ;;  %v2252_v37 = vadd.f32 %v2236_v60, %v2220_v27  ;;  %v2256_v36 = vadd.f32 %v2240_v55, %v2224_v46  ;;  %v10904_v29 = vsub.f32 %v13496_v31, %v10726_v14 }
 0x37a   :  { %v2305_v23 = vadd.f32 %v2304_v15, %v2303_v28  ;;  %v2266_v28 = vmul.f32 %v13480_v51, %v2250_v5  ;;  %v2308_v15 = vsel %vm13245_vm3, %v2281_v61, 0.0  ;;  %v2254_v41 = vadd.f32 %v2238_v62, %v2222_v12 }
 0x37b   :  { %v2258_v0 = vadd.f32 %v2242_v50, %v2226_v63  ;;  %v2228_v7 = vmul.f32 %v10894_v19, %v10894_v19  ;;  %v2244_v27 = vmul.f32 %v10853_v34, %v10853_v34  ;;  %v2248_v46 = vmul.f32 %v10866_v4, %v10866_v4 }
 0x37c   :  { %v2307_v35 = vadd.f32 %v2306_v18, %v2305_v23  ;;  %v2282_v25 = vadd.f32 %v2266_v28, %v2252_v37  ;;  %v2232_v23 = vmul.f32 %v10898_v1, %v10898_v1  ;;  %v2272_v31 = vmul.f32 %v13483_v26, %v2256_v36 }
 0x37d   :  { %v2230_v60 = vmul.f32 %v10904_v29, %v10904_v29  ;;  %v2246_v61 = vmul.f32 %v10862_v45, %v10862_v45  ;;  %v2274_v12 = vmul.f32 %v13484_v53, %v2258_v0  ;;  %v2260_v50 = vadd.f32 %v2244_v27, %v2228_v7 }
 0x37e   :  { %v2309_v56 = vadd.f32 %v2308_v15, %v2307_v35  ;;  %v2283_v14 = vadd.f32 %v2282_v25, %v2254_v41  ;;  %v2264_v5 = vadd.f32 %v2248_v46, %v2232_v23 }
 0x37f   :  { %v2262_v35 = vadd.f32 %v2246_v61, %v2230_v60  ;;  %v13497_v61 = vmov 0  }
 0x380   :  { %v2310_v51 = vrot.slane %v2309_v56, 4  ;;  %v2284_v63 = vadd.f32 %v2283_v14, %v2272_v31  ;;  %v2280_v26 = vmul.f32 %v10604_v22, %v2264_v5  ;;  %v2390_v22 = vld [vmem:[%s13114_s3] sm:$0x1] }
 0x381   :  { %v9157_v5 = vld [vmem:[%s13117_s6 + $0x100] ss:$8 sps:$4 sm:$0xff]  }
 0x382   :  { %v2311_v55 = vadd.f32 %v2310_v51, %v2309_v56  ;;  %v2285_v18 = vadd.f32 %v2284_v63, %v2274_v12  ;;  %v9145_v12 = vld [vmem:[%s13117_s6 + $0xe0] ss:$8 sps:$4 sm:$0xff]   ;;  %v9147_v63 = vld [vmem:[%s13117_s6 + $0xe4] ss:$8 sps:$4 sm:$0xff]  }
 0x383   :  { %3584 = vmatprep.subr.bf16.mxu1 %v9147_v63 }
 0x384   :  { %v2312_v62 = vrot.slane %v2311_v55, 2  ;;  %v2286_v37 = vadd.f32 %v2285_v18, %v2260_v50  ;;  %v9159_v50 = vld [vmem:[%s13117_s6 + $0x104] ss:$8 sps:$4 sm:$0xff]   ;;  %v9165_v18 = vld [vmem:[%s13117_s6 + $0x114] ss:$8 sps:$4 sm:$0xff]  }
 0x386   :  { %v2313_v3 = vadd.f32 %v2312_v62, %v2311_v55  ;;  %v2287_v36 = vadd.f32 %v2286_v37, %v2262_v35  ;;  %v2468_v55 = vld [vmem:[%s13115_s4] sm:$0x1]  ;;  %v9151_v62 = vld [vmem:[%s13117_s6 + $0xf0] ss:$8 sps:$4 sm:$0xff]   ;;  %v9171_v35 = vld [vmem:[%s13117_s6 + $0x124] ss:$8 sps:$4 sm:$0xff]  }
 0x387   :  { %v9169_v37 = vld [vmem:[%s13117_s6 + $0x120] ss:$8 sps:$4 sm:$0xff]  }
 0x388   :  { %v2314_v28 = vrot.slane %v2313_v3, 1  ;;  %v2288_v41 = vadd.f32 %v2287_v36, %v2280_v26  ;;  %v9175_v26 = vld [vmem:[%s13117_s6 + $0x130] ss:$8 sps:$4 sm:$0xff]   ;;  %v9183_v36 = vld [vmem:[%s13117_s6 + $0x144] ss:$8 sps:$4 sm:$0xff]  }
 0x38a   :  { %v2315_v15 = vadd.f32 %v2314_v28, %v2313_v3  ;;  %v2289_v56 = vrot.slane %v2288_v41, 4  ;;  %v9163_v3 = vld [vmem:[%s13117_s6 + $0x110] ss:$8 sps:$4 sm:$0xff]   ;;  %v9177_v28 = vld [vmem:[%s13117_s6 + $0x134] ss:$8 sps:$4 sm:$0xff]  }
 0x38c   :  { %7633 = vmatprep.mubr.msk.f32.mxu1 %vm13245_vm3, %v2315_v15  ;;  %v2290_v25 = vadd.f32 %v2289_v56, %v2288_v41  ;;  %v9181_v15 = vld [vmem:[%s13117_s6 + $0x140] ss:$8 sps:$4 sm:$0xff]   ;;  %v9189_v41 = vld [vmem:[%s13117_s6 + $0x154] ss:$8 sps:$4 sm:$0xff]   ;;  %v9187_v56 = vld [vmem:[%s13117_s6 + $0x150] ss:$8 sps:$4 sm:$0xff]  }
 0x38e   :  { %v2291_v51 = vrot.slane %v2290_v25, 2 }
 0x390   :  { %v2292_v0 = vadd.f32 %v2291_v51, %v2290_v25  ;;  %v9195_v25 = vld [vmem:[%s13117_s6 + $0x164] ss:$8 sps:$4 sm:$0xff]   ;;  %v9193_v51 = vld [vmem:[%s13117_s6 + $0x160] ss:$8 sps:$4 sm:$0xff]  }
 0x392   :  { %v2293_v53 = vrot.slane %v2292_v0, 1 }
 0x394   :  { %v2294_v31 = vadd.f32 %v2293_v53, %v2292_v0  ;;  %v9201_v0 = vld [vmem:[%s13117_s6 + $0x174] ss:$8 sps:$4 sm:$0xff]   ;;  %v9199_v53 = vld [vmem:[%s13117_s6 + $0x170] ss:$8 sps:$4 sm:$0xff]  }
 0x396   :  { %2384 = vmatmul.mubr.f32.vlgmr.msra.gmra.mrb[30].mxu1 %v2294_v31  ;;  %v13498_v31 = vld [vmem:[#allocation9_spill] sm:$0xff] }
 0x397   :  { %3585 = vmatpush1.bf16.msra.mxu1 %v9145_v12 }
 0x398   :  { %3586 = vmatprep.subr.bf16.mxu1 %v9153_v39 }
 0x39b   :  { %3587 = vmatpush1.bf16.msra.mxu1 %v9151_v62 }
 0x39c   :  { %3588 = vmatprep.subr.bf16.mxu1 %v9159_v50 }
 0x39f   :  { %3589 = vmatpush1.bf16.msra.mxu1 %v9157_v5 }
 0x3a0   :  { %3590 = vmatprep.subr.bf16.mxu1 %v9165_v18 }
 0x3a3   :  { %3591 = vmatpush1.bf16.msra.mxu1 %v9163_v3 }
 0x3a4   :  { %3592 = vmatprep.subr.bf16.mxu1 %v9171_v35 }
 0x3a7   :  { %3593 = vmatpush1.bf16.msra.mxu1 %v9169_v37 }
 0x3a8   :  { %3594 = vmatprep.subr.bf16.mxu1 %v9177_v28 }
 0x3ab   :  { %3595 = vmatpush1.bf16.msra.mxu1 %v9175_v26 }
 0x3ac   :  { %3596 = vmatprep.subr.bf16.mxu1 %v9183_v36 }
 0x3af   :  { %3597 = vmatpush1.bf16.msra.mxu1 %v9181_v15 }
 0x3b0   :  { %3598 = vmatprep.subr.bf16.mxu1 %v9189_v41 }
 0x3b3   :  { %3599 = vmatpush1.bf16.msra.mxu1 %v9187_v56 }
 0x3b4   :  { %3600 = vmatprep.subr.bf16.mxu1 %v9195_v25 }
 0x3b7   :  { %3601 = vmatpush1.bf16.msra.mxu1 %v9193_v51 }
 0x3b8   :  { %3602 = vmatprep.subr.bf16.mxu1 %v9201_v0 }
 0x3bb   :  { %3603 = vmatpush1.bf16.msra.mxu1 %v9199_v53 }
 0x469   :  { %v2385_v7 = vpop.f32.mrb[30].mxu1 }
 0x46a   :  { %v2389_v23 = vmul.f32 0.0006377551, %v2385_v7  ;;  %v2387_v27 = vpop.f32.mrb[31].mxu1  ;;  %v10996_v7 = vadd.s32 4294967294, %v13498_v31 }
 0x46c   :  { %v2391_v46 = vadd.f32 1e-05, %v2389_v23  ;;  %v2747_v23 = vand.u32 31, %v10996_v7  ;;  %v2750_v27 = vshra.s32 %v10996_v7, 5  ;;  %v2744_v63 = vand.u32 1, %v10996_v7 }
 0x46d   :  { %vm2743_vm7 = vcmp.ge.s32.totalorder %v10996_v7, 0  ;;  %v13285_v7 = vmov 65535  }
 0x46e   :  { %9562 = vrsqrt.f32 %v2391_v46  ;;  %v2751_v46 = vmul.u32 18, %v2750_v27  ;;  %vm2745_vm11 = vcmp.eq.s32.totalorder %v2744_v63, 0  ;;  %v9219_v63 = vld [vmem:[%s13117_s6 + $0x1a4] ss:$8 sps:$4 sm:$0xff]  }
 0x46f   :  { %vm2746_vm13 = vmand %vm2743_vm7, %vm2745_vm11  ;;  %vm2778_vm11 = vcmask 515072  }
 0x478   :  { %v9563_v14 = vpop.eup %9562 }
 0x479   :  { %v2393_v60 = vmul.f32 %v9563_v14, %v2390_v22  ;;  %v2752_v22 = vshra.s32 %v2747_v23, 1 }
 0x47b   :  { %7638 = vmatmul.mubr.msk.f32.vlgmr.msra.gmra.mrb[18].mxu0 %vm2103_vm10, %v2393_v60  ;;  %v11009_v39 = vadd.s32 %v2752_v22, %v2751_v46 }
 0x47c   :  { %8427 = vmatpush1.bf16.msk.msra.mxu0 %vm10450_vm1, %v13397_v32  ;;  %2536 = vmatprep.mubr.f32.mxu0 %v13420_v16  ;;  %vm13499_vm1 = vcmask 1046528  }
 0x47d   :  { %vm13500_vm4 = vmmov %vm13499_vm1 }
 0x47e   :  { %vm13501_vm9 = vmmov %vm13499_vm1 }
 0x47f   :  { %7643 = vmatmul.mubr.msk.f32.vlgmr.msra.gmra.mrb[20].mxu0 %vm2103_vm10, %v2468_v55  ;;  %vm13502_vm10 = vmmov %vm13499_vm1 }
 0x480   :  { %2829 = vmatprep.mubr.bf16.mxu0 %v13497_v61  ;;  %vm13503_vm14 = vmmov %vm13499_vm1 }
 0x481   :  { %vm13504_vm15 = vmmov %vm13499_vm1 }
 0x482   :  { %vm13505_vm2 = vmmov %vm13499_vm1 }
 0x483   :  { %vm13506_vm0 = vmmov %vm13499_vm1 }
 0x484   :  { %vm13507_vm5 = vmmov %vm13506_vm0 }
 0x485   :  { %vm13508_vm6 = vmmov %vm13506_vm0 }
 0x486   :  { %vm13510_vm8 = vmmov %vm13506_vm0 }
 0x487   :  { %vm13511_vm12 = vmmov %vm13506_vm0 }
 0x54e   :  { %v2463_v14 = vpop.f32.mrb[18].mxu0 }
 0x54f   :  { %v11003_v60 = vrot.slane %v2463_v14, %v10723_v10  ;;  %v2465_v55 = vpop.f32.mrb[19].mxu0 }
 0x550   :  { %v11006_v12 = vrot.slane %v2465_v55, %v10723_v10 }
 0x551   :  { %v2551_v62 = vmul.f32 %v11003_v60, %v10731_v33  ;;  %v2553_v50 = vmul.f32 %v11003_v60, %v10735_v40  ;;  %v2555_v5 = vmul.f32 %v11003_v60, %v10818_v54  ;;  %v2591_v18 = vmul.f32 %v11003_v60, %v10833_v42 }
 0x552   :  { %v2538_v3 = vpop.f32.mrb[20].mxu0  ;;  %v2552_v35 = vmul.f32 %v11006_v12, %v10738_v47  ;;  %v2554_v37 = vmul.f32 %v11006_v12, %v10741_v48  ;;  %v2556_v28 = vmul.f32 %v11006_v12, %v10747_v20  ;;  %v2592_v33 = vmul.f32 %v11006_v12, %v10753_v9 }
 0x553   :  { %v11028_v40 = vrot.slane %v2538_v3, %v10723_v10  ;;  %v2540_v54 = vpop.f32.mrb[21].mxu0  ;;  %v2594_v42 = vmul.f32 %v11006_v12, %v10756_v11  ;;  %v2596_v26 = vmul.f32 %v11006_v12, %v10759_v30  ;;  %v2593_v47 = vmul.f32 %v11003_v60, %v10837_v59 }
 0x554   :  { %v11037_v48 = vrot.slane %v2540_v54, %v10723_v10  ;;  %v2595_v20 = vmul.f32 %v11003_v60, %v10841_v2  ;;  %v2558_v9 = vmul.f32 %v11006_v12, %v10744_v8  ;;  %v2560_v36 = vmul.f32 %v11006_v12, %v10750_v57 }
 0x555   :  { %v2575_v11 = vadd.f32 %v11028_v40, %v2551_v62  ;;  %v2577_v15 = vadd.f32 %v11028_v40, %v2553_v50  ;;  %v2579_v30 = vadd.f32 %v11028_v40, %v2555_v5  ;;  %v2607_v59 = vadd.f32 %v2591_v18, %v11028_v40 }
 0x556   :  { %v2576_v41 = vadd.f32 %v11037_v48, %v2552_v35  ;;  %v2578_v56 = vadd.f32 %v11037_v48, %v2554_v37  ;;  %v2580_v2 = vadd.f32 %v11037_v48, %v2556_v28  ;;  %v2608_v25 = vadd.f32 %v2592_v33, %v11037_v48 }
 0x557   :  { %v2610_v8 = vadd.f32 %v2594_v42, %v11037_v48  ;;  %v2612_v57 = vadd.f32 %v2596_v26, %v11037_v48  ;;  %v2609_v51 = vadd.f32 %v2593_v47, %v11028_v40  ;;  %v2611_v0 = vadd.f32 %v2595_v20, %v11028_v40 }
 0x558   :  { %v2624_v53 = vmax.f32 %v2576_v41, %v2608_v25  ;;  %v2623_v27 = vmax.f32 %v2575_v11, %v2607_v59  ;;  %v2582_v46 = vadd.f32 %v11037_v48, %v2558_v9  ;;  %v2584_v22 = vadd.f32 %v11037_v48, %v2560_v36 }
 0x559   :  { %v2626_v14 = vmax.f32 %v2578_v56, %v2610_v8  ;;  %v2628_v55 = vmax.f32 %v2580_v2, %v2612_v57  ;;  %v2625_v62 = vmax.f32 %v2577_v15, %v2609_v51  ;;  %v2627_v50 = vmax.f32 %v2579_v30, %v2611_v0 }
 0x55a   :  { %v2640_v5 = vmax.f32 %v2624_v53, 0.0  ;;  %v2639_v18 = vmax.f32 %v2623_v27, 0.0  ;;  %v2598_v3 = vmul.f32 %v11006_v12, %v10762_v52  ;;  %v2600_v35 = vmul.f32 %v11006_v12, %v10765_v38 }
 0x55b   :  { %v2642_v37 = vmax.f32 %v2626_v14, 0.0  ;;  %v2644_v28 = vmax.f32 %v2628_v55, 0.0  ;;  %v2641_v33 = vmax.f32 %v2625_v62, 0.0  ;;  %v11063_v54 = vmax.f32 %v2627_v50, 0.0 }
 0x55c   :  { %v2675_v42 = vrot.slane %v2640_v5, 1  ;;  %v2672_v26 = vrot.slane %v2639_v18, 1  ;;  %v2614_v47 = vadd.f32 %v2598_v3, %v11037_v48  ;;  %v2616_v20 = vadd.f32 %v2600_v35, %v11037_v48 }
 0x55d   :  { %v2676_v9 = vrot.slane %v2642_v37, 1  ;;  %v2680_v36 = vrot.slane %v2644_v28, 1  ;;  %v2673_v11 = vrot.slane %v2641_v33, 1  ;;  %v2678_v15 = vrot.slane %v11063_v54, 1 }
 0x55e   :  { %v2630_v52 = vmax.f32 %v2582_v46, %v2614_v47  ;;  %v2632_v30 = vmax.f32 %v2584_v22, %v2616_v20  ;;  %v2557_v38 = vmul.f32 %v11003_v60, %v10822_v13  ;;  %v2559_v59 = vmul.f32 %v11003_v60, %v10858_v21 }
 0x55f   :  { %v2677_v41 = vsel %vm13499_vm1, %v2675_v42, %v2676_v9  ;;  %v2681_v56 = vsel %vm13500_vm4, %v2676_v9, %v2680_v36  ;;  %v2674_v2 = vsel %vm13501_vm9, %v2672_v26, %v2673_v11  ;;  %v2679_v25 = vsel %vm13502_vm10, %v2673_v11, %v2678_v15  ;;  %vm13515_vm10 = vmmov %vm13506_vm0 }
 0x560   :  { %v2719_v8 = vmax.f32 %v2640_v5, %v2677_v41  ;;  %v2721_v57 = vmax.f32 %v2642_v37, %v2681_v56  ;;  %v2718_v51 = vmax.f32 %v2639_v18, %v2674_v2  ;;  %v2720_v0 = vmax.f32 %v2641_v33, %v2679_v25 }
 0x561   :  { %v2646_v53 = vmax.f32 %v2630_v52, 0.0  ;;  %v11076_v27 = vmax.f32 %v2632_v30, 0.0  ;;  %v2581_v13 = vadd.f32 %v11028_v40, %v2557_v38  ;;  %v2583_v46 = vadd.f32 %v11028_v40, %v2559_v59 }
 0x562   :  { %v2735_v21 = vpack.c.bf16 %v2721_v57, %v2719_v8  ;;  %v2734_v22 = vpack.c.bf16 %v2720_v0, %v2718_v51  ;;  %v2597_v14 = vmul.f32 %v11003_v60, %v10845_v43  ;;  %v2599_v55 = vmul.f32 %v11003_v60, %v10849_v49 }
 0x563   :  { %v2684_v62 = vrot.slane %v2646_v53, 1  ;;  %v2688_v50 = vrot.slane %v11076_v27, 1  ;;  %v2562_v5 = vmul.f32 %v11006_v12, %v10777_v24  ;;  %v2564_v18 = vmul.f32 %v11006_v12, %v10801_v17 }
 0x564   :  { %2797 = vmatprep.subr.bf16.mxu0 %v2735_v21  ;;  %v2613_v3 = vadd.f32 %v2597_v14, %v11028_v40  ;;  %v2615_v35 = vadd.f32 %v2599_v55, %v11028_v40  ;;  %v2602_v43 = vmul.f32 %v11006_v12, %v10768_v44  ;;  %v2604_v49 = vmul.f32 %v11006_v12, %v10771_v6 }
 0x565   :  { %2798 = vmatpush1.bf16.msra.mxu0 %v2734_v22  ;;  %v2685_v37 = vsel %vm13503_vm14, %v2680_v36, %v2684_v62  ;;  %v2689_v33 = vsel %vm13504_vm15, %v2684_v62, %v2688_v50  ;;  %v2586_v24 = vadd.f32 %v11037_v48, %v2562_v5  ;;  %v2588_v17 = vadd.f32 %v11037_v48, %v2564_v18 }
 0x566   :  { %v2723_v42 = vmax.f32 %v2644_v28, %v2685_v37  ;;  %v2725_v26 = vmax.f32 %v2646_v53, %v2689_v33  ;;  %v2629_v47 = vmax.f32 %v2581_v13, %v2613_v3  ;;  %v2631_v20 = vmax.f32 %v2583_v46, %v2615_v35  ;;  %v13509_v37 = vld [vmem:[#allocation38_spill] sm:$0xff] }
 0x567   :  { %v2618_v9 = vadd.f32 %v2602_v43, %v11037_v48  ;;  %v2620_v44 = vadd.f32 %v2604_v49, %v11037_v48  ;;  %v2561_v6 = vmul.f32 %v11003_v60, %v10894_v19  ;;  %v2563_v36 = vmul.f32 %v11003_v60, %v10904_v29 }
 0x568   :  { %v2737_v11 = vpack.c.bf16 %v2725_v26, %v2723_v42  ;;  %v2645_v52 = vmax.f32 %v2629_v47, 0.0  ;;  %v2647_v30 = vmax.f32 %v2631_v20, 0.0  ;;  %v2601_v38 = vmul.f32 %v11003_v60, %v10853_v34 }
 0x569   :  { %v2634_v28 = vmax.f32 %v2586_v24, %v2618_v9  ;;  %v2636_v59 = vmax.f32 %v2588_v17, %v2620_v44  ;;  %v2585_v41 = vadd.f32 %v11028_v40, %v2561_v6  ;;  %v2587_v56 = vadd.f32 %v11028_v40, %v2563_v36 }
 0x56a   :  { %2799 = vmatprep.subr.bf16.mxu0 %v2737_v11  ;;  %v2682_v2 = vrot.slane %v2645_v52, 1  ;;  %v2686_v25 = vrot.slane %v2647_v30, 1  ;;  %v2603_v19 = vmul.f32 %v11003_v60, %v10862_v45  ;;  %v2617_v29 = vadd.f32 %v2601_v38, %v11028_v40 }
 0x56b   :  { %v2650_v8 = vmax.f32 %v2634_v28, 0.0  ;;  %v11112_v57 = vmax.f32 %v2636_v59, 0.0  ;;  %v2565_v34 = vmul.f32 %v11003_v60, %v10898_v1  ;;  %v2566_v51 = vmul.f32 %v11006_v12, %v10786_v58 }
 0x56c   :  { %v2683_v0 = vsel %vm13505_vm2, %v2678_v15, %v2682_v2  ;;  %v2687_v53 = vsel %vm13506_vm0, %v2682_v2, %v2686_v25  ;;  %v2619_v13 = vadd.f32 %v2603_v19, %v11028_v40  ;;  %v2633_v46 = vmax.f32 %v2585_v41, %v2617_v29  ;;  %vm13517_vm2 = vmmov %vm13506_vm0 }
 0x56d   :  { %v2722_v45 = vmax.f32 %v11063_v54, %v2683_v0  ;;  %v2724_v21 = vmax.f32 %v2645_v52, %v2687_v53  ;;  %v2692_v22 = vrot.slane %v2650_v8, 1  ;;  %v2696_v14 = vrot.slane %v11112_v57, 1  ;;  %v13516_v52 = vld [vmem:[#allocation10_spill] sm:$0xff]  ;;  %v13519_v0 = vld [vmem:[#allocation12_spill] sm:$0xff] }
 0x56e   :  { %v2635_v55 = vmax.f32 %v2587_v56, %v2619_v13  ;;  %v2649_v62 = vmax.f32 %v2633_v46, 0.0  ;;  %v2589_v1 = vadd.f32 %v11028_v40, %v2565_v34  ;;  %v2590_v5 = vadd.f32 %v11037_v48, %v2566_v51  ;;  %v9144_v34 = vld [vmem:[%s13116_s5 + $0xe4] ss:$8 sps:$4 sm:$0xff]   ;;  %v9142_v53 = vld [vmem:[%s13116_s5 + $0xe0] ss:$8 sps:$4 sm:$0xff]  }
 0x56f   :  { %v2736_v58 = vpack.c.bf16 %v2724_v21, %v2722_v45  ;;  %v2693_v15 = vsel %vm13507_vm5, %v2688_v50, %v2692_v22  ;;  %v2697_v18 = vsel %vm13508_vm6, %v2692_v22, %v2696_v14  ;;  %v2605_v3 = vmul.f32 %v11003_v60, %v10866_v4  ;;  %v9150_v13 = vld [vmem:[%s13116_s5 + $0xf4] ss:$8 sps:$4 sm:$0xff]   ;;  %v9148_v21 = vld [vmem:[%s13116_s5 + $0xf0] ss:$8 sps:$4 sm:$0xff]   ;;  %v9156_v22 = vld [vmem:[%s13116_s5 + $0x104] ss:$8 sps:$4 sm:$0xff]  }
 0x570   :  { %v2727_v54 = vmax.f32 %v11076_v27, %v2693_v15  ;;  %v2729_v35 = vmax.f32 %v2650_v8, %v2697_v18  ;;  %v2651_v43 = vmax.f32 %v2635_v55, 0.0  ;;  %v2690_v49 = vrot.slane %v2649_v62, 1  ;;  %v13518_v8 = vld [vmem:[#allocation11_spill] sm:$0xff]  ;;  %v9168_v15 = vld [vmem:[%s13116_s5 + $0x124] ss:$8 sps:$4 sm:$0xff]  }
 0x571   :  { %2800 = vmatpush1.bf16.msra.mxu0 %v2736_v58  ;;  %v2606_v33 = vmul.f32 %v11006_v12, %v13509_v37  ;;  %v2621_v24 = vadd.f32 %v2605_v3, %v11028_v40  ;;  %v2754_v12 = vadd.s32 4, %v11009_v39  ;;  %vm2748_vm1 = vcmp.lt.s32.totalorder %v2747_v23, 28  ;;  %v9160_v58 = vld [vmem:[%s13116_s5 + $0x110] ss:$8 sps:$4 sm:$0xff]   ;;  %v9166_v3 = vld [vmem:[%s13116_s5 + $0x120] ss:$8 sps:$4 sm:$0xff]  }
 0x572   :  { %v2739_v17 = vpack.c.bf16 %v2729_v35, %v2727_v54  ;;  %v2691_v50 = vsel %vm13510_vm8, %v2686_v25, %v2690_v49  ;;  %v2694_v42 = vrot.slane %v2651_v43, 1  ;;  %vm11142_vm4 = vmand %vm2746_vm13, %vm2748_vm1  ;;  %vm2788_vm15 = vcmask 1047552   ;;  %v9174_v54 = vld [vmem:[%s13116_s5 + $0x134] ss:$8 sps:$4 sm:$0xff]   ;;  %v9172_v35 = vld [vmem:[%s13116_s5 + $0x130] ss:$8 sps:$4 sm:$0xff]  }
 0x573   :  { %v2726_v4 = vmax.f32 %v2647_v30, %v2691_v50  ;;  %v2622_v60 = vadd.f32 %v2606_v33, %v11037_v48  ;;  %v2637_v27 = vmax.f32 %v2589_v1, %v2621_v24  ;;  %v13514_v48 = vld [vmem:[#allocation8_spill] sm:$0xff]  ;;  %vm2756_vm14 = vcmp.eq.s32.totalorder %v13516_v52, %v2754_v12  ;;  %v9162_v1 = vld [vmem:[%s13116_s5 + $0x114] ss:$8 sps:$4 sm:$0xff]   ;;  %v9184_v33 = vld [vmem:[%s13116_s5 + $0x150] ss:$8 sps:$4 sm:$0xff]  }
 0x574   :  { %2801 = vmatprep.subr.bf16.mxu0 %v2739_v17  ;;  %v2695_v26 = vsel %vm13511_vm12, %v2690_v49, %v2694_v42  ;;  %vm2755_vm9 = vcmp.eq.s32.totalorder %v13514_v48, %v2754_v12  ;;  %v2789_v23 = vsel %vm13517_vm2, 4294967295, %v13285_v7  ;;  %vm2761_vm6 = vmand %vm11142_vm4, %vm2756_vm14  ;;  %vm2757_vm7 = vcmp.eq.s32.totalorder %v13518_v8, %v2754_v12  ;;  %v9178_v49 = vld [vmem:[%s13116_s5 + $0x140] ss:$8 sps:$4 sm:$0xff]   ;;  %v9186_v37 = vld [vmem:[%s13116_s5 + $0x154] ss:$8 sps:$4 sm:$0xff]  }
 0x575   :  { %v2728_v47 = vmax.f32 %v2649_v62, %v2695_v26  ;;  %v2638_v40 = vmax.f32 %v2590_v5, %v2622_v60  ;;  %v2653_v20 = vmax.f32 %v2637_v27, 0.0  ;;  %vm2760_vm5 = vmand %vm11142_vm4, %vm2755_vm9  ;;  %v2790_v56 = vsel %vm2788_vm15, %v2789_v23, 0  ;;  %v9154_v62 = vld [vmem:[%s13116_s5 + $0x100] ss:$8 sps:$4 sm:$0xff]   ;;  %v9192_v24 = vld [vmem:[%s13116_s5 + $0x164] ss:$8 sps:$4 sm:$0xff]  }
 0x576   :  { %v7645_v25 = vsel %vm2760_vm5, 1.0, %v13420_v16  ;;  %v7646_v19 = vsel %vm2761_vm6, 1.0, %v13420_v16  ;;  %vm2758_vm8 = vcmp.eq.s32.totalorder %v13519_v0, %v2754_v12  ;;  %vm2762_vm12 = vmand %vm11142_vm4, %vm2757_vm7  ;;  %v9190_v17 = vld [vmem:[%s13116_s5 + $0x160] ss:$8 sps:$4 sm:$0xff]   ;;  %v9198_v50 = vld [vmem:[%s13116_s5 + $0x174] ss:$8 sps:$4 sm:$0xff]  }
 0x577   :  { %v2738_v9 = vpack.c.bf16 %v2728_v47, %v2726_v4  ;;  %v2654_v44 = vmax.f32 %v2638_v40, 0.0  ;;  %v2698_v6 = vrot.slane %v2653_v20, 1  ;;  %vm2763_vm13 = vmand %vm11142_vm4, %vm2758_vm8  ;;  %v7647_v46 = vsel %vm2762_vm12, 1.0, %v13420_v16  ;;  %v9202_v4 = vld [vmem:[%s13116_s5 + $0x180] ss:$8 sps:$4 sm:$0xff]  }
 0x578   :  { %v7648_v45 = vsel %vm2763_vm13, 1.0, %v13420_v16  ;;  %v9204_v60 = vld [vmem:[%s13116_s5 + $0x184] ss:$8 sps:$4 sm:$0xff]   ;;  %v9205_v27 = vld [vmem:[%s13117_s6 + $0x180] ss:$8 sps:$4 sm:$0xff]  }
 0x579   :  { %2802 = vmatpush1.bf16.msra.mxu0 %v2738_v9  ;;  %v2699_v36 = vsel %vm13515_vm10, %v2694_v42, %v2698_v6  ;;  %v2700_v39 = vrot.slane %v2654_v44, 1  ;;  %v2732_v11 = vmax.f32 %v2653_v20, %v2698_v6  ;;  %v2776_v55 = vpack.c.bf16 %v7648_v45, %v7647_v46  ;;  %v9196_v42 = vld [vmem:[%s13116_s5 + $0x170] ss:$8 sps:$4 sm:$0xff]   ;;  %v9207_v26 = vld [vmem:[%s13117_s6 + $0x184] ss:$8 sps:$4 sm:$0xff]  }
 0x57a   :  { %v2730_v30 = vmax.f32 %v2651_v43, %v2699_v36  ;;  %v9180_v43 = vld [vmem:[%s13116_s5 + $0x144] ss:$8 sps:$4 sm:$0xff]   ;;  %v9213_v47 = vld [vmem:[%s13117_s6 + $0x194] ss:$8 sps:$4 sm:$0xff]   ;;  %3604 = vmatprep.subr.bf16.mxu1 %v9207_v26  ;;  %v9208_v40 = vld [vmem:[%s13116_s5 + $0x190] ss:$8 sps:$4 sm:$0xff]  }
 0x57b   :  { %v2701_v38 = vsel %vm13506_vm0, %v2696_v14, %v2700_v39  ;;  %v2733_v28 = vmax.f32 %v2654_v44, %v2700_v39  ;;  %v13520_v14 = vld [vmem:[#allocation13_spill] sm:$0xff]  ;;  %3605 = vmatpush1.bf16.msra.mxu1 %v9205_v27  ;;  %v9222_v36 = vld [vmem:[%s13116_s5 + $0x1b4] ss:$8 sps:$4 sm:$0xff]   ;;  %vm13522_vm10 = vcmask 1045504   ;;  %vm13523_vm14 = vsmask.f32 7424 }
 0x57c   :  { %v2731_v59 = vmax.f32 %v11112_v57, %v2701_v38  ;;  %v2740_v41 = vpack.c.bf16 %v2732_v11, %v2730_v30  ;;  %v2775_v57 = vpack.c.bf16 %v7646_v19, %v7645_v25  ;;  %vm2759_vm1 = vcmp.eq.s32.totalorder %v13520_v14, %v2754_v12  ;;  %v9210_v12 = vld [vmem:[%s13116_s5 + $0x194] ss:$8 sps:$4 sm:$0xff]   ;;  %v9211_v20 = vld [vmem:[%s13117_s6 + $0x190] ss:$8 sps:$4 sm:$0xff]   ;;  %3606 = vmatprep.subr.bf16.mxu1 %v9213_v47  ;;  %v9214_v9 = vld [vmem:[%s13116_s5 + $0x1a0] ss:$8 sps:$4 sm:$0xff]  }
 0x57d   :  { %vm2764_vm9 = vmand %vm11142_vm4, %vm2759_vm1  ;;  %v9216_v44 = vld [vmem:[%s13116_s5 + $0x1a4] ss:$8 sps:$4 sm:$0xff]   ;;  %v9217_v6 = vld [vmem:[%s13117_s6 + $0x1a0] ss:$8 sps:$4 sm:$0xff]   ;;  %vm13525_vm2 = vsmask.f32 6400 }
 0x57e   :  { %v2741_v2 = vpack.c.bf16 %v2733_v28, %v2731_v59  ;;  %v2792_v51 = vand.u32 %v2790_v56, %v2740_v41  ;;  %v7649_v5 = vsel %vm2764_vm9, 1.0, %v13420_v16  ;;  %v9225_v39 = vld [vmem:[%s13117_s6 + $0x1b4] ss:$8 sps:$4 sm:$0xff]   ;;  %v9220_v11 = vld [vmem:[%s13116_s5 + $0x1b0] ss:$8 sps:$4 sm:$0xff]   ;;  %vm13521_vm4 = vmmov %vm13506_vm0 }
 0x57f   :  { %v2777_v18 = vpack.c.bf16 %v7649_v5, %v7649_v5  ;;  %3607 = vmatpush1.bf16.msra.mxu1 %v9211_v20  ;;  %v9223_v30 = vld [vmem:[%s13117_s6 + $0x1b0] ss:$8 sps:$4 sm:$0xff]   ;;  %v9228_v23 = vld [vmem:[%s13116_s5 + $0x4] ss:$8 sps:$4 sm:$0xff]   ;;  %vm13524_vm15 = vmmov %vm13523_vm14 }
 0x580   :  { %v2795_v29 = vand.u32 %v2790_v56, %v2741_v2  ;;  %3608 = vmatprep.subr.bf16.mxu1 %v9219_v63  ;;  %v9231_v38 = vld [vmem:[%s13117_s6 + $0x4] ss:$8 sps:$4 sm:$0xff]   ;;  %vm13526_vm0 = vmmov %vm13525_vm2 }
 0x581   :  { %vm13527_vm5 = vmmov %vm13523_vm14 }
 0x582   :  { %2803 = vmatprep.subr.bf16.mxu0 %v2795_v29  ;;  %vm13528_vm6 = vmmov %vm13527_vm5 }
 0x583   :  { %2804 = vmatpush1.bf16.msra.mxu0 %v2792_v51  ;;  %3609 = vmatpush1.bf16.msra.mxu1 %v9217_v6  ;;  %vm13529_vm7 = vmmov %vm13526_vm0 }
 0x584   :  { %3147 = vmatprep.subr.bf16.mxu0 %v9144_v34  ;;  %3610 = vmatprep.subr.bf16.mxu1 %v9225_v39  ;;  %v9237_v39 = vld [vmem:[%s13117_s6 + $0x14] ss:$8 sps:$4 sm:$0xff]   ;;  %vm13530_vm8 = vmmov %vm13526_vm0 }
 0x585   :  { %vm13532_vm12 = vmmov %vm13521_vm4 }
 0x586   :  { %7650 = vmatmul.mubr.msk.bf16.vlgmr.msra.gmra.mrb[24].mxu0 %vm2778_vm11, %v2775_v57  ;;  %vm13533_vm13 = vmmov %vm13521_vm4 }
 0x587   :  { %2839 = vmatprep.mubr.bf16.mxu0 %v13497_v61  ;;  %3148 = vmatpush1.bf16.msra.mxu0 %v9142_v53 }
 0x588   :  { %3149 = vmatprep.subr.bf16.mxu0 %v9150_v13  ;;  %3611 = vmatpush1.bf16.msra.mxu1 %v9223_v30 }
 0x589   :  { %3785 = vmatprep.subr.bf16.mxu1 %v9231_v38 }
 0x58b   :  { %3150 = vmatpush1.bf16.msra.mxu0 %v9148_v21 }
 0x58c   :  { %3151 = vmatprep.subr.bf16.mxu0 %v9156_v22 }
 0x58e   :  { %7651 = vmatmul.mubr.msk.bf16.gmra.mrb[28].mxu0 %vm2778_vm11, %v2776_v55 }
 0x58f   :  { %2849 = vmatprep.mubr.bf16.mxu0 %v13497_v61  ;;  %3152 = vmatpush1.bf16.msra.mxu0 %v9154_v62 }
 0x590   :  { %3153 = vmatprep.subr.bf16.mxu0 %v9162_v1 }
 0x593   :  { %3154 = vmatpush1.bf16.msra.mxu0 %v9160_v58 }
 0x594   :  { %3155 = vmatprep.subr.bf16.mxu0 %v9168_v15 }
 0x596   :  { %7652 = vmatmul.mubr.msk.bf16.gmra.mrb[32].mxu0 %vm2778_vm11, %v2777_v18  ;;  %vm13531_vm11 = vmmov %vm13521_vm4 }
 0x597   :  { %3156 = vmatpush1.bf16.msra.mxu0 %v9166_v3 }
 0x598   :  { %3157 = vmatprep.subr.bf16.mxu0 %v9174_v54 }
 0x59b   :  { %3158 = vmatpush1.bf16.msra.mxu0 %v9172_v35 }
 0x59c   :  { %3159 = vmatprep.subr.bf16.mxu0 %v9180_v43 }
 0x59f   :  { %3160 = vmatpush1.bf16.msra.mxu0 %v9178_v49 }
 0x5a0   :  { %3161 = vmatprep.subr.bf16.mxu0 %v9186_v37 }
 0x5a3   :  { %3162 = vmatpush1.bf16.msra.mxu0 %v9184_v33 }
 0x5a4   :  { %3163 = vmatprep.subr.bf16.mxu0 %v9192_v24 }
 0x5a7   :  { %3164 = vmatpush1.bf16.msra.mxu0 %v9190_v17 }
 0x5a8   :  { %3165 = vmatprep.subr.bf16.mxu0 %v9198_v50 }
 0x5ab   :  { %3166 = vmatpush1.bf16.msra.mxu0 %v9196_v42 }
 0x5ac   :  { %3167 = vmatprep.subr.bf16.mxu0 %v9204_v60  ;;  %v9226_v60 = vld [vmem:[%s13116_s5] ss:$8 sps:$4 sm:$0xff]  }
 0x5af   :  { %3168 = vmatpush1.bf16.msra.mxu0 %v9202_v4 }
 0x5b0   :  { %3169 = vmatprep.subr.bf16.mxu0 %v9210_v12 }
 0x5b3   :  { %3170 = vmatpush1.bf16.msra.mxu0 %v9208_v40  ;;  %v9229_v40 = vld [vmem:[%s13117_s6] ss:$8 sps:$4 sm:$0xff]  }
 0x5b4   :  { %3171 = vmatprep.subr.bf16.mxu0 %v9216_v44 }
 0x5b7   :  { %3172 = vmatpush1.bf16.msra.mxu0 %v9214_v9 }
 0x5b8   :  { %3173 = vmatprep.subr.bf16.mxu0 %v9222_v36  ;;  %v9234_v36 = vld [vmem:[%s13116_s5 + $0x14] ss:$8 sps:$4 sm:$0xff]  }
 0x5bb   :  { %3174 = vmatpush1.bf16.msra.mxu0 %v9220_v11 }
 0x5bc   :  { %3354 = vmatprep.subr.bf16.mxu0 %v9228_v23 }
 0x659   :  { %v2831_v28 = vpop.f32.mrb[24].mxu0 }
 0x65a   :  { %v2833_v59 = vpop.f32.mrb[25].mxu0 }
 0x65b   :  { %v2835_v41 = vpop.f32.mrb[26].mxu0 }
 0x65c   :  { %v11290_v56 = vpack.c.bf16 %v2835_v41, %v2831_v28  ;;  %v2837_v2 = vpop.f32.mrb[27].mxu0 }
 0x65d   :  { %v11292_v25 = vpack.c.bf16 %v2837_v2, %v2833_v59 }
 0x65e   :  { %v2950_v19 = vshrl.u32 %v11290_v56, 16  ;;  %v2952_v51 = vshll.u32 %v11290_v56, 16 }
 0x65f   :  { %v2962_v29 = vshrl.u32 %v11292_v25, 16  ;;  %v2964_v34 = vshll.u32 %v11292_v25, 16  ;;  %v3884_v1 = vrot.slane %v11292_v25, 1  ;;  %v4900_v43 = vrot.slane %v11292_v25, 2 }
 0x660   :  { %v11298_v53 = vrot.slane %v2950_v19, 1  ;;  %v11300_v22 = vrot.slane %v2952_v51, 2  ;;  %v2954_v3 = vrot.slane %v2952_v51, 1  ;;  %v9235_v51 = vld [vmem:[%s13117_s6 + $0x10] ss:$8 sps:$4 sm:$0xff]  }
 0x661   :  { %v2841_v57 = vpop.f32.mrb[28].mxu0  ;;  %v4390_v46 = vrot.slane %v2962_v29, 1  ;;  %v4391_v21 = vrot.slane %v2964_v34, 2  ;;  %v2966_v58 = vrot.slane %v2964_v34, 1  ;;  %v9232_v34 = vld [vmem:[%s13116_s5 + $0x10] ss:$8 sps:$4 sm:$0xff]  }
 0x662   :  { %v2843_v13 = vpop.f32.mrb[29].mxu0  ;;  %v4385_v18 = vor.u32 %v11300_v22, %v11298_v53  ;;  %v2955_v20 = vor.u32 %v2954_v3, %v2950_v19  ;;  %v9240_v22 = vld [vmem:[%s13116_s5 + $0x24] ss:$8 sps:$4 sm:$0xff]  }
 0x663   :  { %v2845_v45 = vpop.f32.mrb[30].mxu0  ;;  %v4392_v15 = vor.u32 %v4391_v21, %v4390_v46  ;;  %v2967_v42 = vor.u32 %v2966_v58, %v2962_v29 }
 0x664   :  { %v11302_v55 = vpack.c.bf16 %v2845_v45, %v2841_v57  ;;  %v2847_v62 = vpop.f32.mrb[31].mxu0 }
 0x665   :  { %v11305_v5 = vpack.c.bf16 %v2847_v62, %v2843_v13  ;;  %v9243_v62 = vld [vmem:[%s13117_s6 + $0x24] ss:$8 sps:$4 sm:$0xff]  }
 0x666   :  { %v2957_v54 = vshll.u32 %v11302_v55, 16  ;;  %v2973_v35 = vshrl.u32 %v11302_v55, 16 }
 0x667   :  { %v2969_v49 = vshll.u32 %v11305_v5, 16  ;;  %v2981_v37 = vshrl.u32 %v11305_v5, 16  ;;  %v3885_v33 = vrot.slane %v11305_v5, 1  ;;  %v4901_v24 = vrot.slane %v11305_v5, 2 }
 0x668   :  { %v2959_v17 = vrot.slane %v2957_v54, 1  ;;  %v4386_v9 = vrot.slane %v2973_v35, 1  ;;  %v4387_v41 = vrot.slane %v2957_v54, 2 }
 0x669   :  { %v2851_v50 = vpop.f32.mrb[32].mxu0  ;;  %v2971_v4 = vrot.slane %v2969_v49, 1  ;;  %v11322_v27 = vsel %vm13521_vm4, %v3884_v1, %v3885_v33  ;;  %v11327_v26 = vsel %vm13522_vm10, %v4900_v43, %v4901_v24  ;;  %v4393_v44 = vrot.slane %v2981_v37, 1  ;;  %vm13540_vm4 = vmmov %vm13522_vm10 }
 0x66a   :  { %v11329_v12 = vpack.c.bf16 %v2851_v50, %v2851_v50  ;;  %v2853_v47 = vpop.f32.mrb[33].mxu0  ;;  %v4394_v30 = vrot.slane %v2969_v49, 2  ;;  %v2960_v23 = vsel %vm13524_vm15, %v2955_v20, %v2959_v17  ;;  %v4388_v53 = vor.u32 %v4387_v41, %v4386_v9  ;;  %v9241_v49 = vld [vmem:[%s13117_s6 + $0x20] ss:$8 sps:$4 sm:$0xff]   ;;  %v9247_v20 = vld [vmem:[%s13117_s6 + $0x30] ss:$8 sps:$4 sm:$0xff]  }
 0x66b   :  { %v11334_v6 = vpack.c.bf16 %v2853_v47, %v2853_v47  ;;  %v2972_v63 = vsel %vm13523_vm14, %v2967_v42, %v2971_v4  ;;  %v2855_v11 = vpop.f32.mrb[34].mxu0  ;;  %v2983_v57 = vor.u32 %v2981_v37, %v2971_v4  ;;  %v2975_v37 = vor.u32 %v2973_v35, %v2959_v17  ;;  %v9249_v42 = vld [vmem:[%s13117_s6 + $0x34] ss:$8 sps:$4 sm:$0xff]   ;;  %v9252_v9 = vld [vmem:[%s13116_s5 + $0x44] ss:$8 sps:$4 sm:$0xff]   ;;  %vm13541_vm14 = vmmov %vm13540_vm4 }
 0x66c   :  { %7709 = vmatprep.mubr.msk.bf16.mxu0 %vm13245_vm3, %v2972_v63  ;;  %7799 = vmatprep.mubr.msk.bf16.mxu1 %vm13245_vm3, %v2972_v63  ;;  %v2977_v38 = vshll.u32 %v11329_v12, 16  ;;  %v2989_v28 = vshrl.u32 %v11329_v12, 16  ;;  %v2856_v59 = vpop.f32.mrb[35].mxu0  ;;  %v4395_v29 = vor.u32 %v4394_v30, %v4393_v44  ;;  %v11366_v58 = vsel %vm13526_vm0, %v4385_v18, %v4388_v53  ;;  %v9246_v18 = vld [vmem:[%s13116_s5 + $0x34] ss:$8 sps:$4 sm:$0xff]  }
 0x66d   :  { %3180 = vmatmul.mubr.bf16.vlgmr.msra.gmra.mrb[36].mxu0 %v2960_v23  ;;  %3617 = vmatmul.mubr.bf16.vlgmr.msra.gmra.mrb[32].mxu1 %v2960_v23  ;;  %v2985_v2 = vshll.u32 %v11334_v6, 16  ;;  %v2992_v19 = vshrl.u32 %v11334_v6, 16  ;;  %v9255_v44 = vld [vmem:[%s13117_s6 + $0x44] ss:$8 sps:$4 sm:$0xff]   ;;  %v9258_v11 = vld [vmem:[%s13116_s5 + $0x54] ss:$8 sps:$4 sm:$0xff]  }
 0x66e   :  { %3355 = vmatpush1.bf16.msra.mxu0 %v9226_v60  ;;  %3786 = vmatpush1.bf16.msra.mxu1 %v9229_v40  ;;  %v4397_v46 = vrot.slane %v2989_v28, 1  ;;  %v11357_v45 = vsel %vm13525_vm2, %v4392_v15, %v4395_v29  ;;  %v2979_v1 = vrot.slane %v2977_v38, 1  ;;  %v4398_v43 = vrot.slane %v2977_v38, 2  ;;  %v9238_v15 = vld [vmem:[%s13116_s5 + $0x20] ss:$8 sps:$4 sm:$0xff]  }
 0x66f   :  { %3356 = vmatprep.subr.bf16.mxu0 %v9234_v36  ;;  %3787 = vmatprep.subr.bf16.mxu1 %v9237_v39  ;;  %v2987_v13 = vrot.slane %v2985_v2, 1  ;;  %v4401_v21 = vrot.slane %v2992_v19, 1  ;;  %v4402_v3 = vrot.slane %v2985_v2, 2  ;;  %v9244_v40 = vld [vmem:[%s13116_s5 + $0x30] ss:$8 sps:$4 sm:$0xff]  }
 0x670   :  { %v11385_v4 = vor.u32 %v4398_v43, %v4397_v46  ;;  %v2980_v35 = vsel %vm13528_vm6, %v2975_v37, %v2979_v1  ;;  %v2991_v63 = vor.u32 %v2989_v28, %v2979_v1  ;;  %v9250_v36 = vld [vmem:[%s13116_s5 + $0x40] ss:$8 sps:$4 sm:$0xff]   ;;  %v9261_v30 = vld [vmem:[%s13117_s6 + $0x54] ss:$8 sps:$4 sm:$0xff]   ;;  %v9256_v23 = vld [vmem:[%s13116_s5 + $0x50] ss:$8 sps:$4 sm:$0xff]  }
 0x671   :  { %v2988_v54 = vsel %vm13527_vm5, %v2983_v57, %v2987_v13  ;;  %v11375_v50 = vor.u32 %v4402_v3, %v4401_v21  ;;  %v2994_v17 = vor.u32 %v2992_v19, %v2987_v13  ;;  %v9253_v39 = vld [vmem:[%s13117_s6 + $0x40] ss:$8 sps:$4 sm:$0xff]   ;;  %v9259_v38 = vld [vmem:[%s13117_s6 + $0x50] ss:$8 sps:$4 sm:$0xff]   ;;  %v9264_v28 = vld [vmem:[%s13116_s5 + $0x64] ss:$8 sps:$4 sm:$0xff]  }
 0x672   :  { %3357 = vmatpush1.bf16.msra.mxu0 %v9232_v34  ;;  %3788 = vmatpush1.bf16.msra.mxu1 %v9235_v51  ;;  %v11394_v47 = vsel %vm13530_vm8, %v4388_v53, %v11385_v4  ;;  %v9267_v59 = vld [vmem:[%s13117_s6 + $0x64] ss:$8 sps:$4 sm:$0xff]   ;;  %v9262_v41 = vld [vmem:[%s13116_s5 + $0x60] ss:$8 sps:$4 sm:$0xff]   ;;  %v9270_v2 = vld [vmem:[%s13116_s5 + $0x74] ss:$8 sps:$4 sm:$0xff]  }
 0x673   :  { %7710 = vmatprep.mubr.msk.bf16.mxu0 %vm13245_vm3, %v2988_v54  ;;  %7800 = vmatprep.mubr.msk.bf16.mxu1 %vm13245_vm3, %v2988_v54  ;;  %v11390_v60 = vsel %vm13529_vm7, %v4395_v29, %v11375_v50  ;;  %v9273_v19 = vld [vmem:[%s13117_s6 + $0x74] ss:$8 sps:$4 sm:$0xff]   ;;  %v9268_v29 = vld [vmem:[%s13116_s5 + $0x70] ss:$8 sps:$4 sm:$0xff]   ;;  %v9276_v51 = vld [vmem:[%s13116_s5 + $0x84] ss:$8 sps:$4 sm:$0xff]  }
 0x674   :  { %3358 = vmatprep.subr.bf16.mxu0 %v9240_v22  ;;  %3789 = vmatprep.subr.bf16.mxu1 %v9243_v62  ;;  %v9271_v34 = vld [vmem:[%s13117_s6 + $0x70] ss:$8 sps:$4 sm:$0xff]   ;;  %v9279_v57 = vld [vmem:[%s13117_s6 + $0x84] ss:$8 sps:$4 sm:$0xff]   ;;  %v9274_v53 = vld [vmem:[%s13116_s5 + $0x80] ss:$8 sps:$4 sm:$0xff]  }
 0x675   :  { %3190 = vmatmul.mubr.bf16.gmra.mrb[40].mxu0 %v2980_v35  ;;  %3627 = vmatmul.mubr.bf16.gmra.mrb[36].mxu1 %v2980_v35  ;;  %v9277_v13 = vld [vmem:[%s13117_s6 + $0x80] ss:$8 sps:$4 sm:$0xff]   ;;  %v9282_v46 = vld [vmem:[%s13116_s5 + $0x94] ss:$8 sps:$4 sm:$0xff]   ;;  %v9280_v22 = vld [vmem:[%s13116_s5 + $0x90] ss:$8 sps:$4 sm:$0xff]  }
 0x676   :  { %3359 = vmatpush1.bf16.msra.mxu0 %v9238_v15  ;;  %3790 = vmatpush1.bf16.msra.mxu1 %v9241_v49  ;;  %v9285_v21 = vld [vmem:[%s13117_s6 + $0x94] ss:$8 sps:$4 sm:$0xff]   ;;  %v9283_v62 = vld [vmem:[%s13117_s6 + $0x90] ss:$8 sps:$4 sm:$0xff]   ;;  %v9288_v1 = vld [vmem:[%s13116_s5 + $0xa4] ss:$8 sps:$4 sm:$0xff]  }
 0x677   :  { %3360 = vmatprep.subr.bf16.mxu0 %v9246_v18  ;;  %3791 = vmatprep.subr.bf16.mxu1 %v9249_v42  ;;  %v9291_v3 = vld [vmem:[%s13117_s6 + $0xa4] ss:$8 sps:$4 sm:$0xff]   ;;  %v9286_v54 = vld [vmem:[%s13116_s5 + $0xa0] ss:$8 sps:$4 sm:$0xff]   ;;  %v9294_v15 = vld [vmem:[%s13116_s5 + $0xb4] ss:$8 sps:$4 sm:$0xff]  }
 0x678   :  { %7711 = vmatprep.mubr.msk.bf16.mxu0 %vm13245_vm3, %v2994_v17  ;;  %7801 = vmatprep.mubr.msk.bf16.mxu1 %vm13245_vm3, %v2994_v17  ;;  %v9289_v43 = vld [vmem:[%s13117_s6 + $0xa0] ss:$8 sps:$4 sm:$0xff]   ;;  %v9297_v49 = vld [vmem:[%s13117_s6 + $0xb4] ss:$8 sps:$4 sm:$0xff]   ;;  %v9292_v37 = vld [vmem:[%s13116_s5 + $0xb0] ss:$8 sps:$4 sm:$0xff]  }
 0x679   :  { %v9295_v18 = vld [vmem:[%s13117_s6 + $0xb0] ss:$8 sps:$4 sm:$0xff]   ;;  %v9300_v42 = vld [vmem:[%s13116_s5 + $0xc4] ss:$8 sps:$4 sm:$0xff]   ;;  %v9298_v17 = vld [vmem:[%s13116_s5 + $0xc0] ss:$8 sps:$4 sm:$0xff]  }
 0x67a   :  { %3361 = vmatpush1.bf16.msra.mxu0 %v9244_v40  ;;  %3792 = vmatpush1.bf16.msra.mxu1 %v9247_v20  ;;  %v9303_v35 = vld [vmem:[%s13117_s6 + $0xc4] ss:$8 sps:$4 sm:$0xff]   ;;  %v9301_v40 = vld [vmem:[%s13117_s6 + $0xc0] ss:$8 sps:$4 sm:$0xff]   ;;  %v9306_v20 = vld [vmem:[%s13116_s5 + $0xd4] ss:$8 sps:$4 sm:$0xff]  }
 0x67b   :  { %3362 = vmatprep.subr.bf16.mxu0 %v9252_v9  ;;  %3793 = vmatprep.subr.bf16.mxu1 %v9255_v44  ;;  %v9309_v9 = vld [vmem:[%s13117_s6 + $0xd4] ss:$8 sps:$4 sm:$0xff]   ;;  %v9304_v44 = vld [vmem:[%s13116_s5 + $0xd0] ss:$8 sps:$4 sm:$0xff]   ;;  %vm13554_vm7 = vmmov %vm13540_vm4 }
 0x67d   :  { %3200 = vmatmul.mubr.bf16.gmra.mrb[44].mxu0 %v2991_v63  ;;  %3637 = vmatmul.mubr.bf16.gmra.mrb[40].mxu1 %v2991_v63  ;;  %v9307_v63 = vld [vmem:[%s13117_s6 + $0xd0] ss:$8 sps:$4 sm:$0xff]  }
 0x67e   :  { %3363 = vmatpush1.bf16.msra.mxu0 %v9250_v36  ;;  %3794 = vmatpush1.bf16.msra.mxu1 %v9253_v39  ;;  %v9312_v36 = vld [vmem:[%s13116_s5 + $0x1c4] ss:$8 sps:$4 sm:$0xff]  }
 0x67f   :  { %7740 = vmatprep.mubr.msk.bf16.mxu0 %vm13245_vm3, %v11292_v25  ;;  %7830 = vmatprep.mubr.msk.bf16.mxu1 %vm13245_vm3, %v11292_v25  ;;  %v9265_v25 = vld [vmem:[%s13117_s6 + $0x60] ss:$8 sps:$4 sm:$0xff]   ;;  %v9315_v39 = vld [vmem:[%s13117_s6 + $0x1c4] ss:$8 sps:$4 sm:$0xff]  }
 0x680   :  { %3364 = vmatprep.subr.bf16.mxu0 %v9258_v11  ;;  %3795 = vmatprep.subr.bf16.mxu1 %v9261_v30  ;;  %v9310_v11 = vld [vmem:[%s13116_s5 + $0x1c0] ss:$8 sps:$4 sm:$0xff]  }
 0x681   :  { %v9313_v30 = vld [vmem:[%s13117_s6 + $0x1c0] ss:$8 sps:$4 sm:$0xff]  }
 0x682   :  { %3365 = vmatpush1.bf16.msra.mxu0 %v9256_v23  ;;  %3796 = vmatpush1.bf16.msra.mxu1 %v9259_v38  ;;  %v9318_v23 = vld [vmem:[%s13116_s5 + $0x1d4] ss:$8 sps:$4 sm:$0xff]  }
 0x683   :  { %3366 = vmatprep.subr.bf16.mxu0 %v9264_v28  ;;  %3797 = vmatprep.subr.bf16.mxu1 %v9267_v59  ;;  %v9321_v38 = vld [vmem:[%s13117_s6 + $0x1d4] ss:$8 sps:$4 sm:$0xff]   ;;  %v9316_v28 = vld [vmem:[%s13116_s5 + $0x1d0] ss:$8 sps:$4 sm:$0xff]  }
 0x684   :  { %v9319_v59 = vld [vmem:[%s13117_s6 + $0x1d0] ss:$8 sps:$4 sm:$0xff]  }
 0x686   :  { %3367 = vmatpush1.bf16.msra.mxu0 %v9262_v41  ;;  %3798 = vmatpush1.bf16.msra.mxu1 %v9265_v25  ;;  %v9324_v41 = vld [vmem:[%s13116_s5 + $0x1e4] ss:$8 sps:$4 sm:$0xff]  }
 0x687   :  { %3368 = vmatprep.subr.bf16.mxu0 %v9270_v2  ;;  %3799 = vmatprep.subr.bf16.mxu1 %v9273_v19  ;;  %v9327_v25 = vld [vmem:[%s13117_s6 + $0x1e4] ss:$8 sps:$4 sm:$0xff]   ;;  %v9322_v2 = vld [vmem:[%s13116_s5 + $0x1e0] ss:$8 sps:$4 sm:$0xff]  }
 0x688   :  { %v9325_v19 = vld [vmem:[%s13117_s6 + $0x1e0] ss:$8 sps:$4 sm:$0xff]  }
 0x68a   :  { %3369 = vmatpush1.bf16.msra.mxu0 %v9268_v29  ;;  %3800 = vmatpush1.bf16.msra.mxu1 %v9271_v34  ;;  %v9330_v29 = vld [vmem:[%s13116_s5 + $0x1f4] ss:$8 sps:$4 sm:$0xff]  }
 0x68b   :  { %3370 = vmatprep.subr.bf16.mxu0 %v9276_v51  ;;  %3801 = vmatprep.subr.bf16.mxu1 %v9279_v57  ;;  %v9333_v34 = vld [vmem:[%s13117_s6 + $0x1f4] ss:$8 sps:$4 sm:$0xff]   ;;  %v9328_v51 = vld [vmem:[%s13116_s5 + $0x1f0] ss:$8 sps:$4 sm:$0xff]  }
 0x68c   :  { %v9331_v57 = vld [vmem:[%s13117_s6 + $0x1f0] ss:$8 sps:$4 sm:$0xff]  }
 0x68e   :  { %3371 = vmatpush1.bf16.msra.mxu0 %v9274_v53  ;;  %3802 = vmatpush1.bf16.msra.mxu1 %v9277_v13  ;;  %v9336_v53 = vld [vmem:[%s13116_s5 + $0x204] ss:$8 sps:$4 sm:$0xff]  }
 0x68f   :  { %3372 = vmatprep.subr.bf16.mxu0 %v9282_v46  ;;  %3803 = vmatprep.subr.bf16.mxu1 %v9285_v21  ;;  %v9339_v13 = vld [vmem:[%s13117_s6 + $0x204] ss:$8 sps:$4 sm:$0xff]   ;;  %v9334_v46 = vld [vmem:[%s13116_s5 + $0x200] ss:$8 sps:$4 sm:$0xff]  }
 0x690   :  { %v9337_v21 = vld [vmem:[%s13117_s6 + $0x200] ss:$8 sps:$4 sm:$0xff]  }
 0x692   :  { %3373 = vmatpush1.bf16.msra.mxu0 %v9280_v22  ;;  %3804 = vmatpush1.bf16.msra.mxu1 %v9283_v62  ;;  %v9342_v22 = vld [vmem:[%s13116_s5 + $0x214] ss:$8 sps:$4 sm:$0xff]  }
 0x693   :  { %3374 = vmatprep.subr.bf16.mxu0 %v9288_v1  ;;  %3805 = vmatprep.subr.bf16.mxu1 %v9291_v3  ;;  %v9345_v62 = vld [vmem:[%s13117_s6 + $0x214] ss:$8 sps:$4 sm:$0xff]   ;;  %v9340_v1 = vld [vmem:[%s13116_s5 + $0x210] ss:$8 sps:$4 sm:$0xff]  }
 0x694   :  { %v9343_v3 = vld [vmem:[%s13117_s6 + $0x210] ss:$8 sps:$4 sm:$0xff]  }
 0x696   :  { %3375 = vmatpush1.bf16.msra.mxu0 %v9286_v54  ;;  %3806 = vmatpush1.bf16.msra.mxu1 %v9289_v43  ;;  %v9348_v54 = vld [vmem:[%s13116_s5 + $0x224] ss:$8 sps:$4 sm:$0xff]   ;;  %v9346_v43 = vld [vmem:[%s13116_s5 + $0x220] ss:$8 sps:$4 sm:$0xff]  }
 0x697   :  { %3376 = vmatprep.subr.bf16.mxu0 %v9294_v15  ;;  %3807 = vmatprep.subr.bf16.mxu1 %v9297_v49  ;;  %v9349_v15 = vld [vmem:[%s13117_s6 + $0x220] ss:$8 sps:$4 sm:$0xff]   ;;  %v9354_v49 = vld [vmem:[%s13116_s5 + $0x234] ss:$8 sps:$4 sm:$0xff]  }
 0x69a   :  { %3377 = vmatpush1.bf16.msra.mxu0 %v9292_v37  ;;  %3808 = vmatpush1.bf16.msra.mxu1 %v9295_v18  ;;  %v9357_v37 = vld [vmem:[%s13117_s6 + $0x234] ss:$8 sps:$4 sm:$0xff]   ;;  %v9352_v18 = vld [vmem:[%s13116_s5 + $0x230] ss:$8 sps:$4 sm:$0xff]  }
 0x69b   :  { %3378 = vmatprep.subr.bf16.mxu0 %v9300_v42  ;;  %3809 = vmatprep.subr.bf16.mxu1 %v9303_v35  ;;  %v9355_v42 = vld [vmem:[%s13117_s6 + $0x230] ss:$8 sps:$4 sm:$0xff]   ;;  %v9360_v35 = vld [vmem:[%s13116_s5 + $0x244] ss:$8 sps:$4 sm:$0xff]  }
 0x69e   :  { %3379 = vmatpush1.bf16.msra.mxu0 %v9298_v17  ;;  %3810 = vmatpush1.bf16.msra.mxu1 %v9301_v40  ;;  %v9363_v17 = vld [vmem:[%s13117_s6 + $0x244] ss:$8 sps:$4 sm:$0xff]   ;;  %v9358_v40 = vld [vmem:[%s13116_s5 + $0x240] ss:$8 sps:$4 sm:$0xff]  }
 0x69f   :  { %3380 = vmatprep.subr.bf16.mxu0 %v9306_v20  ;;  %3811 = vmatprep.subr.bf16.mxu1 %v9309_v9  ;;  %v9361_v20 = vld [vmem:[%s13117_s6 + $0x240] ss:$8 sps:$4 sm:$0xff]   ;;  %v9366_v9 = vld [vmem:[%s13116_s5 + $0x254] ss:$8 sps:$4 sm:$0xff]  }
 0x6a2   :  { %3381 = vmatpush1.bf16.msra.mxu0 %v9304_v44  ;;  %3812 = vmatpush1.bf16.msra.mxu1 %v9307_v63  ;;  %v9369_v44 = vld [vmem:[%s13117_s6 + $0x254] ss:$8 sps:$4 sm:$0xff]   ;;  %v9364_v63 = vld [vmem:[%s13116_s5 + $0x250] ss:$8 sps:$4 sm:$0xff]  }
 0x6a3   :  { %4043 = vmatprep.subr.bf16.mxu0 %v9312_v36  ;;  %4283 = vmatprep.subr.bf16.mxu1 %v9315_v39  ;;  %v9367_v36 = vld [vmem:[%s13117_s6 + $0x250] ss:$8 sps:$4 sm:$0xff]   ;;  %v9372_v39 = vld [vmem:[%s13116_s5 + $0x264] ss:$8 sps:$4 sm:$0xff]  }
 0x6a5   :  { %3387 = vmatmul.mubr.bf16.vlgmr.msra.gmra.mrb[36].mxu0 %v11290_v56  ;;  %3818 = vmatmul.mubr.bf16.vlgmr.msra.gmra.mrb[32].mxu1 %v11290_v56 }
 0x6a6   :  { %7741 = vmatprep.mubr.msk.bf16.mxu0 %vm13245_vm3, %v11305_v5  ;;  %7831 = vmatprep.mubr.msk.bf16.mxu1 %vm13245_vm3, %v11305_v5  ;;  %v4903_v5 = vrot.slane %v11329_v12, 2 }
 0x6a7   :  { %4044 = vmatpush1.bf16.msra.mxu0 %v9310_v11  ;;  %4284 = vmatpush1.bf16.msra.mxu1 %v9313_v30  ;;  %v9375_v11 = vld [vmem:[%s13117_s6 + $0x264] ss:$8 sps:$4 sm:$0xff]   ;;  %v9370_v30 = vld [vmem:[%s13116_s5 + $0x260] ss:$8 sps:$4 sm:$0xff]  }
 0x6a8   :  { %4045 = vmatprep.subr.bf16.mxu0 %v9318_v23  ;;  %4285 = vmatprep.subr.bf16.mxu1 %v9321_v38  ;;  %v9373_v23 = vld [vmem:[%s13117_s6 + $0x260] ss:$8 sps:$4 sm:$0xff]   ;;  %v9378_v38 = vld [vmem:[%s13116_s5 + $0x274] ss:$8 sps:$4 sm:$0xff]  }
 0x6ab   :  { %4046 = vmatpush1.bf16.msra.mxu0 %v9316_v28  ;;  %4286 = vmatpush1.bf16.msra.mxu1 %v9319_v59  ;;  %v9381_v28 = vld [vmem:[%s13117_s6 + $0x274] ss:$8 sps:$4 sm:$0xff]   ;;  %v9376_v59 = vld [vmem:[%s13116_s5 + $0x270] ss:$8 sps:$4 sm:$0xff]  }
 0x6ac   :  { %4047 = vmatprep.subr.bf16.mxu0 %v9324_v41  ;;  %4287 = vmatprep.subr.bf16.mxu1 %v9327_v25  ;;  %v9379_v41 = vld [vmem:[%s13117_s6 + $0x270] ss:$8 sps:$4 sm:$0xff]   ;;  %v9384_v25 = vld [vmem:[%s13116_s5 + $0x284] ss:$8 sps:$4 sm:$0xff]  }
 0x6ad   :  { %3397 = vmatmul.mubr.bf16.gmra.mrb[40].mxu0 %v11302_v55  ;;  %3828 = vmatmul.mubr.bf16.gmra.mrb[36].mxu1 %v11302_v55 }
 0x6ae   :  { %7742 = vmatprep.mubr.msk.bf16.mxu0 %vm13245_vm3, %v11334_v6  ;;  %7832 = vmatprep.mubr.msk.bf16.mxu1 %vm13245_vm3, %v11334_v6 }
 0x6af   :  { %4048 = vmatpush1.bf16.msra.mxu0 %v9322_v2  ;;  %4288 = vmatpush1.bf16.msra.mxu1 %v9325_v19  ;;  %v9387_v2 = vld [vmem:[%s13117_s6 + $0x284] ss:$8 sps:$4 sm:$0xff]   ;;  %v9382_v19 = vld [vmem:[%s13116_s5 + $0x280] ss:$8 sps:$4 sm:$0xff]  }
 0x6b0   :  { %4049 = vmatprep.subr.bf16.mxu0 %v9330_v29  ;;  %4289 = vmatprep.subr.bf16.mxu1 %v9333_v34  ;;  %v9385_v29 = vld [vmem:[%s13117_s6 + $0x280] ss:$8 sps:$4 sm:$0xff]   ;;  %v9390_v34 = vld [vmem:[%s13116_s5 + $0x294] ss:$8 sps:$4 sm:$0xff]  }
 0x6b3   :  { %4050 = vmatpush1.bf16.msra.mxu0 %v9328_v51  ;;  %4290 = vmatpush1.bf16.msra.mxu1 %v9331_v57  ;;  %v9393_v51 = vld [vmem:[%s13117_s6 + $0x294] ss:$8 sps:$4 sm:$0xff]   ;;  %v9388_v57 = vld [vmem:[%s13116_s5 + $0x290] ss:$8 sps:$4 sm:$0xff]  }
 0x6b4   :  { %4051 = vmatprep.subr.bf16.mxu0 %v9336_v53  ;;  %4291 = vmatprep.subr.bf16.mxu1 %v9339_v13  ;;  %v9391_v53 = vld [vmem:[%s13117_s6 + $0x290] ss:$8 sps:$4 sm:$0xff]   ;;  %v9396_v13 = vld [vmem:[%s13116_s5 + $0x2a4] ss:$8 sps:$4 sm:$0xff]  }
 0x6b5   :  { %3407 = vmatmul.mubr.bf16.gmra.mrb[44].mxu0 %v11329_v12  ;;  %3838 = vmatmul.mubr.bf16.gmra.mrb[40].mxu1 %v11329_v12 }
 0x6b6   :  { %7889 = vmatprep.mubr.msk.bf16.mxu0 %vm13245_vm3, %v11322_v27  ;;  %7948 = vmatprep.mubr.msk.bf16.mxu1 %vm13245_vm3, %v11322_v27  ;;  %v9351_v27 = vld [vmem:[%s13117_s6 + $0x224] ss:$8 sps:$4 sm:$0xff]  }
 0x6b7   :  { %4052 = vmatpush1.bf16.msra.mxu0 %v9334_v46  ;;  %4292 = vmatpush1.bf16.msra.mxu1 %v9337_v21  ;;  %v9399_v46 = vld [vmem:[%s13117_s6 + $0x2a4] ss:$8 sps:$4 sm:$0xff]   ;;  %v3882_v21 = vrot.slane %v11302_v55, 1 }
 0x6b8   :  { %4053 = vmatprep.subr.bf16.mxu0 %v9342_v22  ;;  %4293 = vmatprep.subr.bf16.mxu1 %v9345_v62  ;;  %v3889_v22 = vrot.slane %v11334_v6, 1  ;;  %v3881_v62 = vrot.slane %v11290_v56, 1 }
 0x6bb   :  { %4054 = vmatpush1.bf16.msra.mxu0 %v9340_v1  ;;  %4294 = vmatpush1.bf16.msra.mxu1 %v9343_v3  ;;  %v9394_v1 = vld [vmem:[%s13116_s5 + $0x2a0] ss:$8 sps:$4 sm:$0xff]  }
 0x6bc   :  { %4055 = vmatprep.subr.bf16.mxu0 %v9348_v54  ;;  %4295 = vmatprep.subr.bf16.mxu1 %v9351_v27  ;;  %v9397_v3 = vld [vmem:[%s13117_s6 + $0x2a0] ss:$8 sps:$4 sm:$0xff]   ;;  %v3883_v54 = vsel %vm13531_vm11, %v3881_v62, %v3882_v21  ;;  %v9402_v27 = vld [vmem:[%s13116_s5 + $0x2b4] ss:$8 sps:$4 sm:$0xff]   ;;  %v9448_v62 = vld [vmem:[%s13116_s5 + $0x330] ss:$8 sps:$4 sm:$0xff]  }
 0x6bf   :  { %4056 = vmatpush1.bf16.msra.mxu0 %v9346_v43  ;;  %4296 = vmatpush1.bf16.msra.mxu1 %v9349_v15  ;;  %v9405_v43 = vld [vmem:[%s13117_s6 + $0x2b4] ss:$8 sps:$4 sm:$0xff]   ;;  %v3890_v15 = vsel %vm13532_vm12, %v3885_v33, %v3889_v22  ;;  %v9408_v33 = vld [vmem:[%s13116_s5 + $0x2c4] ss:$8 sps:$4 sm:$0xff]  }
 0x6c0   :  { %4057 = vmatprep.subr.bf16.mxu0 %v9354_v49  ;;  %4297 = vmatprep.subr.bf16.mxu1 %v9357_v37  ;;  %v9400_v49 = vld [vmem:[%s13116_s5 + $0x2b0] ss:$8 sps:$4 sm:$0xff]  }
 0x6c1   :  { %v9403_v37 = vld [vmem:[%s13117_s6 + $0x2b0] ss:$8 sps:$4 sm:$0xff]  }
 0x6c3   :  { %4058 = vmatpush1.bf16.msra.mxu0 %v9352_v18  ;;  %4298 = vmatpush1.bf16.msra.mxu1 %v9355_v42  ;;  %v3887_v18 = vrot.slane %v11329_v12, 1  ;;  %v9411_v42 = vld [vmem:[%s13117_s6 + $0x2c4] ss:$8 sps:$4 sm:$0xff]   ;;  %v13553_v12 = vld [vmem:[#allocation15_spill] sm:$0xff] }
 0x6c4   :  { %4059 = vmatprep.subr.bf16.mxu0 %v9360_v35  ;;  %4299 = vmatprep.subr.bf16.mxu1 %v9363_v17  ;;  %v9406_v35 = vld [vmem:[%s13116_s5 + $0x2c0] ss:$8 sps:$4 sm:$0xff]  }
 0x6c5   :  { %v9409_v17 = vld [vmem:[%s13117_s6 + $0x2c0] ss:$8 sps:$4 sm:$0xff]  }
 0x6c7   :  { %4060 = vmatpush1.bf16.msra.mxu0 %v9358_v40  ;;  %4300 = vmatpush1.bf16.msra.mxu1 %v9361_v20  ;;  %v3888_v40 = vsel %vm13533_vm13, %v3882_v21, %v3887_v18  ;;  %v9414_v20 = vld [vmem:[%s13116_s5 + $0x2d4] ss:$8 sps:$4 sm:$0xff]  }
 0x6c8   :  { %4061 = vmatprep.subr.bf16.mxu0 %v9366_v9  ;;  %4301 = vmatprep.subr.bf16.mxu1 %v9369_v44  ;;  %v9417_v9 = vld [vmem:[%s13117_s6 + $0x2d4] ss:$8 sps:$4 sm:$0xff]   ;;  %v9412_v44 = vld [vmem:[%s13116_s5 + $0x2d0] ss:$8 sps:$4 sm:$0xff]  }
 0x6c9   :  { %v9450_v21 = vld [vmem:[%s13116_s5 + $0x334] ss:$8 sps:$4 sm:$0xff]  }
 0x6cb   :  { %4062 = vmatpush1.bf16.msra.mxu0 %v9364_v63  ;;  %4302 = vmatpush1.bf16.msra.mxu1 %v9367_v36  ;;  %v9415_v63 = vld [vmem:[%s13117_s6 + $0x2d0] ss:$8 sps:$4 sm:$0xff]   ;;  %v9420_v36 = vld [vmem:[%s13116_s5 + $0x2e4] ss:$8 sps:$4 sm:$0xff]  }
 0x6cc   :  { %4063 = vmatprep.subr.bf16.mxu0 %v9372_v39  ;;  %4303 = vmatprep.subr.bf16.mxu1 %v9375_v11  ;;  %v9423_v39 = vld [vmem:[%s13117_s6 + $0x2e4] ss:$8 sps:$4 sm:$0xff]   ;;  %v9418_v11 = vld [vmem:[%s13116_s5 + $0x2e0] ss:$8 sps:$4 sm:$0xff]  }
 0x6cf   :  { %4064 = vmatpush1.bf16.msra.mxu0 %v9370_v30  ;;  %4304 = vmatpush1.bf16.msra.mxu1 %v9373_v23  ;;  %v9421_v30 = vld [vmem:[%s13117_s6 + $0x2e0] ss:$8 sps:$4 sm:$0xff]   ;;  %v9426_v23 = vld [vmem:[%s13116_s5 + $0x2f4] ss:$8 sps:$4 sm:$0xff]  }
 0x6d0   :  { %4065 = vmatprep.subr.bf16.mxu0 %v9378_v38  ;;  %4305 = vmatprep.subr.bf16.mxu1 %v9381_v28  ;;  %v9429_v38 = vld [vmem:[%s13117_s6 + $0x2f4] ss:$8 sps:$4 sm:$0xff]   ;;  %v9424_v28 = vld [vmem:[%s13116_s5 + $0x2f0] ss:$8 sps:$4 sm:$0xff]  }
 0x6d3   :  { %4066 = vmatpush1.bf16.msra.mxu0 %v9376_v59  ;;  %4306 = vmatpush1.bf16.msra.mxu1 %v9379_v41  ;;  %v9427_v59 = vld [vmem:[%s13117_s6 + $0x2f0] ss:$8 sps:$4 sm:$0xff]   ;;  %v9432_v41 = vld [vmem:[%s13116_s5 + $0x304] ss:$8 sps:$4 sm:$0xff]  }
 0x6d4   :  { %4067 = vmatprep.subr.bf16.mxu0 %v9384_v25  ;;  %4307 = vmatprep.subr.bf16.mxu1 %v9387_v2  ;;  %v9430_v25 = vld [vmem:[%s13116_s5 + $0x300] ss:$8 sps:$4 sm:$0xff]  }
 0x6d5   :  { %v9433_v2 = vld [vmem:[%s13117_s6 + $0x300] ss:$8 sps:$4 sm:$0xff]  }
 0x6d7   :  { %4068 = vmatpush1.bf16.msra.mxu0 %v9382_v19  ;;  %4308 = vmatpush1.bf16.msra.mxu1 %v9385_v29  ;;  %v9438_v19 = vld [vmem:[%s13116_s5 + $0x314] ss:$8 sps:$4 sm:$0xff]  }
 0x6d8   :  { %4069 = vmatprep.subr.bf16.mxu0 %v9390_v34  ;;  %4309 = vmatprep.subr.bf16.mxu1 %v9393_v51  ;;  %v9441_v29 = vld [vmem:[%s13117_s6 + $0x314] ss:$8 sps:$4 sm:$0xff]   ;;  %v9436_v34 = vld [vmem:[%s13116_s5 + $0x310] ss:$8 sps:$4 sm:$0xff]  }
 0x6d9   :  { %v9439_v51 = vld [vmem:[%s13117_s6 + $0x310] ss:$8 sps:$4 sm:$0xff]  }
 0x6db   :  { %4070 = vmatpush1.bf16.msra.mxu0 %v9388_v57  ;;  %4310 = vmatpush1.bf16.msra.mxu1 %v9391_v53  ;;  %v9444_v57 = vld [vmem:[%s13116_s5 + $0x324] ss:$8 sps:$4 sm:$0xff]  }
 0x6dc   :  { %4557 = vmatprep.subr.bf16.mxu0 %v9396_v13  ;;  %4797 = vmatprep.subr.bf16.mxu1 %v9399_v46  ;;  %v9447_v53 = vld [vmem:[%s13117_s6 + $0x324] ss:$8 sps:$4 sm:$0xff]   ;;  %v9442_v13 = vld [vmem:[%s13116_s5 + $0x320] ss:$8 sps:$4 sm:$0xff]  }
 0x6dd   :  { %v9445_v46 = vld [vmem:[%s13117_s6 + $0x320] ss:$8 sps:$4 sm:$0xff]  }
 0x6de   :  { %4076 = vmatmul.mubr.bf16.vlgmr.msra.gmra.mrb[36].mxu0 %v3883_v54  ;;  %4316 = vmatmul.mubr.bf16.vlgmr.msra.gmra.mrb[32].mxu1 %v3883_v54  ;;  %v9459_v54 = vld [vmem:[%s13117_s6 + $0x344] ss:$8 sps:$4 sm:$0xff]  }
 0x6df   :  { %7890 = vmatprep.mubr.msk.bf16.mxu0 %vm13245_vm3, %v3890_v15  ;;  %7949 = vmatprep.mubr.msk.bf16.mxu1 %vm13245_vm3, %v3890_v15  ;;  %v9462_v15 = vld [vmem:[%s13116_s5 + $0x354] ss:$8 sps:$4 sm:$0xff]  }
 0x6e0   :  { %4558 = vmatpush1.bf16.msra.mxu0 %v9394_v1  ;;  %4798 = vmatpush1.bf16.msra.mxu1 %v9397_v3  ;;  %v9451_v1 = vld [vmem:[%s13117_s6 + $0x330] ss:$8 sps:$4 sm:$0xff]   ;;  %v9456_v3 = vld [vmem:[%s13116_s5 + $0x344] ss:$8 sps:$4 sm:$0xff]  }
 0x6e1   :  { %4559 = vmatprep.subr.bf16.mxu0 %v9402_v27  ;;  %4799 = vmatprep.subr.bf16.mxu1 %v9405_v43  ;;  %v9454_v27 = vld [vmem:[%s13116_s5 + $0x340] ss:$8 sps:$4 sm:$0xff]  }
 0x6e2   :  { %v9457_v43 = vld [vmem:[%s13117_s6 + $0x340] ss:$8 sps:$4 sm:$0xff]  }
 0x6e4   :  { %4560 = vmatpush1.bf16.msra.mxu0 %v9400_v49  ;;  %4800 = vmatpush1.bf16.msra.mxu1 %v9403_v37  ;;  %v9465_v49 = vld [vmem:[%s13117_s6 + $0x354] ss:$8 sps:$4 sm:$0xff]   ;;  %v9460_v37 = vld [vmem:[%s13116_s5 + $0x350] ss:$8 sps:$4 sm:$0xff]  }
 0x6e5   :  { %4561 = vmatprep.subr.bf16.mxu0 %v9408_v33  ;;  %4801 = vmatprep.subr.bf16.mxu1 %v9411_v42  ;;  %v9468_v33 = vld [vmem:[%s13116_s5 + $0x364] ss:$8 sps:$4 sm:$0xff]  }
 0x6e6   :  { %4086 = vmatmul.mubr.bf16.gmra.mrb[40].mxu0 %v3888_v40  ;;  %4326 = vmatmul.mubr.bf16.gmra.mrb[36].mxu1 %v3888_v40  ;;  %v9471_v42 = vld [vmem:[%s13117_s6 + $0x364] ss:$8 sps:$4 sm:$0xff]   ;;  %v9474_v40 = vld [vmem:[%s13116_s5 + $0x374] ss:$8 sps:$4 sm:$0xff]  }
 0x6e7   :  { %7891 = vmatprep.mubr.msk.bf16.mxu0 %vm13245_vm3, %v3889_v22  ;;  %7950 = vmatprep.mubr.msk.bf16.mxu1 %vm13245_vm3, %v3889_v22  ;;  %v9453_v22 = vld [vmem:[%s13117_s6 + $0x334] ss:$8 sps:$4 sm:$0xff]  }
 0x6e8   :  { %4562 = vmatpush1.bf16.msra.mxu0 %v9406_v35  ;;  %4802 = vmatpush1.bf16.msra.mxu1 %v9409_v17  ;;  %v9466_v35 = vld [vmem:[%s13116_s5 + $0x360] ss:$8 sps:$4 sm:$0xff]  }
 0x6e9   :  { %4563 = vmatprep.subr.bf16.mxu0 %v9414_v20  ;;  %4803 = vmatprep.subr.bf16.mxu1 %v9417_v9  ;;  %v9469_v17 = vld [vmem:[%s13117_s6 + $0x360] ss:$8 sps:$4 sm:$0xff]   ;;  %v9477_v20 = vld [vmem:[%s13117_s6 + $0x374] ss:$8 sps:$4 sm:$0xff]   ;;  %v9472_v9 = vld [vmem:[%s13116_s5 + $0x370] ss:$8 sps:$4 sm:$0xff]  }
 0x6ec   :  { %4564 = vmatpush1.bf16.msra.mxu0 %v9412_v44  ;;  %4804 = vmatpush1.bf16.msra.mxu1 %v9415_v63  ;;  %v9475_v44 = vld [vmem:[%s13117_s6 + $0x370] ss:$8 sps:$4 sm:$0xff]   ;;  %v9480_v63 = vld [vmem:[%s13116_s5 + $0x384] ss:$8 sps:$4 sm:$0xff]  }
 0x6ed   :  { %4565 = vmatprep.subr.bf16.mxu0 %v9420_v36  ;;  %4805 = vmatprep.subr.bf16.mxu1 %v9423_v39  ;;  %v9483_v36 = vld [vmem:[%s13117_s6 + $0x384] ss:$8 sps:$4 sm:$0xff]   ;;  %v9478_v39 = vld [vmem:[%s13116_s5 + $0x380] ss:$8 sps:$4 sm:$0xff]  }
 0x6ee   :  { %4096 = vmatmul.mubr.bf16.gmra.mrb[44].mxu0 %v3887_v18  ;;  %4336 = vmatmul.mubr.bf16.gmra.mrb[40].mxu1 %v3887_v18  ;;  %v9463_v18 = vld [vmem:[%s13117_s6 + $0x350] ss:$8 sps:$4 sm:$0xff]  }
 0x6ef   :  { %8007 = vmatprep.mubr.msk.bf16.mxu0 %vm13245_vm3, %v11357_v45  ;;  %8066 = vmatprep.mubr.msk.bf16.mxu1 %vm13245_vm3, %v11357_v45  ;;  %v9435_v45 = vld [vmem:[%s13117_s6 + $0x304] ss:$8 sps:$4 sm:$0xff]  }
 0x6f0   :  { %4566 = vmatpush1.bf16.msra.mxu0 %v9418_v11  ;;  %4806 = vmatpush1.bf16.msra.mxu1 %v9421_v30  ;;  %v9481_v11 = vld [vmem:[%s13117_s6 + $0x380] ss:$8 sps:$4 sm:$0xff]   ;;  %v9486_v30 = vld [vmem:[%s13116_s5 + $0x394] ss:$8 sps:$4 sm:$0xff]  }
 0x6f1   :  { %4567 = vmatprep.subr.bf16.mxu0 %v9426_v23  ;;  %4807 = vmatprep.subr.bf16.mxu1 %v9429_v38  ;;  %v9489_v23 = vld [vmem:[%s13117_s6 + $0x394] ss:$8 sps:$4 sm:$0xff]   ;;  %v9484_v38 = vld [vmem:[%s13116_s5 + $0x390] ss:$8 sps:$4 sm:$0xff]  }
 0x6f4   :  { %4568 = vmatpush1.bf16.msra.mxu0 %v9424_v28  ;;  %4808 = vmatpush1.bf16.msra.mxu1 %v9427_v59  ;;  %v9487_v28 = vld [vmem:[%s13117_s6 + $0x390] ss:$8 sps:$4 sm:$0xff]   ;;  %v9490_v59 = vld [vmem:[%s13116_s5 + $0x3a0] ss:$8 sps:$4 sm:$0xff]  }
 0x6f5   :  { %4569 = vmatprep.subr.bf16.mxu0 %v9432_v41  ;;  %4809 = vmatprep.subr.bf16.mxu1 %v9435_v45  ;;  %v9493_v41 = vld [vmem:[%s13117_s6 + $0x3a0] ss:$8 sps:$4 sm:$0xff]   ;;  %v9498_v45 = vld [vmem:[%s13116_s5 + $0x3b4] ss:$8 sps:$4 sm:$0xff]  }
 0x6f8   :  { %4570 = vmatpush1.bf16.msra.mxu0 %v9430_v25  ;;  %4810 = vmatpush1.bf16.msra.mxu1 %v9433_v2  ;;  %v9501_v25 = vld [vmem:[%s13117_s6 + $0x3b4] ss:$8 sps:$4 sm:$0xff]   ;;  %v9496_v2 = vld [vmem:[%s13116_s5 + $0x3b0] ss:$8 sps:$4 sm:$0xff]  }
 0x6f9   :  { %4571 = vmatprep.subr.bf16.mxu0 %v9438_v19  ;;  %4811 = vmatprep.subr.bf16.mxu1 %v9441_v29  ;;  %v9499_v19 = vld [vmem:[%s13117_s6 + $0x3b0] ss:$8 sps:$4 sm:$0xff]   ;;  %v9502_v29 = vld [vmem:[%s13116_s5 + $0x3c0] ss:$8 sps:$4 sm:$0xff]  }
 0x6fc   :  { %4572 = vmatpush1.bf16.msra.mxu0 %v9436_v34  ;;  %4812 = vmatpush1.bf16.msra.mxu1 %v9439_v51  ;;  %v9505_v34 = vld [vmem:[%s13117_s6 + $0x3c0] ss:$8 sps:$4 sm:$0xff]   ;;  %v9510_v51 = vld [vmem:[%s13116_s5 + $0x3d4] ss:$8 sps:$4 sm:$0xff]  }
 0x6fd   :  { %4573 = vmatprep.subr.bf16.mxu0 %v9444_v57  ;;  %4813 = vmatprep.subr.bf16.mxu1 %v9447_v53  ;;  %v9513_v57 = vld [vmem:[%s13117_s6 + $0x3d4] ss:$8 sps:$4 sm:$0xff]   ;;  %v9508_v53 = vld [vmem:[%s13116_s5 + $0x3d0] ss:$8 sps:$4 sm:$0xff]  }
 0x700   :  { %4574 = vmatpush1.bf16.msra.mxu0 %v9442_v13  ;;  %4814 = vmatpush1.bf16.msra.mxu1 %v9445_v46  ;;  %v9511_v13 = vld [vmem:[%s13117_s6 + $0x3d0] ss:$8 sps:$4 sm:$0xff]   ;;  %v9514_v46 = vld [vmem:[%s13116_s5 + $0x3e0] ss:$8 sps:$4 sm:$0xff]  }
 0x701   :  { %4575 = vmatprep.subr.bf16.mxu0 %v9450_v21  ;;  %4815 = vmatprep.subr.bf16.mxu1 %v9453_v22  ;;  %v9517_v21 = vld [vmem:[%s13117_s6 + $0x3e0] ss:$8 sps:$4 sm:$0xff]   ;;  %v9522_v22 = vld [vmem:[%s13116_s5 + $0x3f4] ss:$8 sps:$4 sm:$0xff]  }
 0x704   :  { %4576 = vmatpush1.bf16.msra.mxu0 %v9448_v62  ;;  %4816 = vmatpush1.bf16.msra.mxu1 %v9451_v1  ;;  %v9525_v62 = vld [vmem:[%s13117_s6 + $0x3f4] ss:$8 sps:$4 sm:$0xff]   ;;  %v9520_v1 = vld [vmem:[%s13116_s5 + $0x3f0] ss:$8 sps:$4 sm:$0xff]  }
 0x705   :  { %4577 = vmatprep.subr.bf16.mxu0 %v9456_v3  ;;  %4817 = vmatprep.subr.bf16.mxu1 %v9459_v54  ;;  %v9523_v3 = vld [vmem:[%s13117_s6 + $0x3f0] ss:$8 sps:$4 sm:$0xff]   ;;  %v9528_v54 = vld [vmem:[%s13116_s5 + $0x404] ss:$8 sps:$4 sm:$0xff]  }
 0x708   :  { %4578 = vmatpush1.bf16.msra.mxu0 %v9454_v27  ;;  %4818 = vmatpush1.bf16.msra.mxu1 %v9457_v43  ;;  %v9531_v27 = vld [vmem:[%s13117_s6 + $0x404] ss:$8 sps:$4 sm:$0xff]   ;;  %v9526_v43 = vld [vmem:[%s13116_s5 + $0x400] ss:$8 sps:$4 sm:$0xff]  }
 0x709   :  { %4579 = vmatprep.subr.bf16.mxu0 %v9462_v15  ;;  %4819 = vmatprep.subr.bf16.mxu1 %v9465_v49  ;;  %v9529_v15 = vld [vmem:[%s13117_s6 + $0x400] ss:$8 sps:$4 sm:$0xff]   ;;  %v9534_v49 = vld [vmem:[%s13116_s5 + $0x414] ss:$8 sps:$4 sm:$0xff]  }
 0x70c   :  { %4580 = vmatpush1.bf16.msra.mxu0 %v9460_v37  ;;  %4820 = vmatpush1.bf16.msra.mxu1 %v9463_v18  ;;  %v9537_v37 = vld [vmem:[%s13117_s6 + $0x414] ss:$8 sps:$4 sm:$0xff]   ;;  %v9532_v18 = vld [vmem:[%s13116_s5 + $0x410] ss:$8 sps:$4 sm:$0xff]  }
 0x70d   :  { %4581 = vmatprep.subr.bf16.mxu0 %v9468_v33  ;;  %4821 = vmatprep.subr.bf16.mxu1 %v9471_v42  ;;  %v9535_v33 = vld [vmem:[%s13117_s6 + $0x410] ss:$8 sps:$4 sm:$0xff]   ;;  %v9540_v42 = vld [vmem:[%s13116_s5 + $0x424] ss:$8 sps:$4 sm:$0xff]  }
 0x710   :  { %4582 = vmatpush1.bf16.msra.mxu0 %v9466_v35  ;;  %4822 = vmatpush1.bf16.msra.mxu1 %v9469_v17  ;;  %v9543_v35 = vld [vmem:[%s13117_s6 + $0x424] ss:$8 sps:$4 sm:$0xff]   ;;  %v9538_v17 = vld [vmem:[%s13116_s5 + $0x420] ss:$8 sps:$4 sm:$0xff]  }
 0x711   :  { %4583 = vmatprep.subr.bf16.mxu0 %v9474_v40  ;;  %4823 = vmatprep.subr.bf16.mxu1 %v9477_v20  ;;  %v9541_v40 = vld [vmem:[%s13117_s6 + $0x420] ss:$8 sps:$4 sm:$0xff]   ;;  %v9546_v20 = vld [vmem:[%s13116_s5 + $0x434] ss:$8 sps:$4 sm:$0xff]  }
 0x714   :  { %4584 = vmatpush1.bf16.msra.mxu0 %v9472_v9  ;;  %4824 = vmatpush1.bf16.msra.mxu1 %v9475_v44  ;;  %v9549_v9 = vld [vmem:[%s13117_s6 + $0x434] ss:$8 sps:$4 sm:$0xff]   ;;  %v9544_v44 = vld [vmem:[%s13116_s5 + $0x430] ss:$8 sps:$4 sm:$0xff]  }
 0x715   :  { %5059 = vmatprep.subr.bf16.mxu0 %v9480_v63  ;;  %5299 = vmatprep.subr.bf16.mxu1 %v9483_v36  ;;  %v9547_v63 = vld [vmem:[%s13117_s6 + $0x430] ss:$8 sps:$4 sm:$0xff]   ;;  %v9552_v36 = vld [vmem:[%s13116_s5 + $0x444] ss:$8 sps:$4 sm:$0xff]  }
 0x717   :  { %4590 = vmatmul.mubr.bf16.vlgmr.msra.gmra.mrb[36].mxu0 %v11366_v58  ;;  %4830 = vmatmul.mubr.bf16.vlgmr.msra.gmra.mrb[32].mxu1 %v11366_v58  ;;  %v9492_v58 = vld [vmem:[%s13116_s5 + $0x3a4] ss:$8 sps:$4 sm:$0xff]  }
 0x718   :  { %8008 = vmatprep.mubr.msk.bf16.mxu0 %vm13245_vm3, %v11390_v60  ;;  %8067 = vmatprep.mubr.msk.bf16.mxu1 %vm13245_vm3, %v11390_v60  ;;  %v9495_v60 = vld [vmem:[%s13117_s6 + $0x3a4] ss:$8 sps:$4 sm:$0xff]  }
 0x719   :  { %5060 = vmatpush1.bf16.msra.mxu0 %v9478_v39  ;;  %5300 = vmatpush1.bf16.msra.mxu1 %v9481_v11  ;;  %v9555_v39 = vld [vmem:[%s13117_s6 + $0x444] ss:$8 sps:$4 sm:$0xff]   ;;  %v9550_v11 = vld [vmem:[%s13116_s5 + $0x440] ss:$8 sps:$4 sm:$0xff]  }
 0x71a   :  { %5061 = vmatprep.subr.bf16.mxu0 %v9486_v30  ;;  %5301 = vmatprep.subr.bf16.mxu1 %v9489_v23  ;;  %v9553_v30 = vld [vmem:[%s13117_s6 + $0x440] ss:$8 sps:$4 sm:$0xff]   ;;  %v9558_v23 = vld [vmem:[%s13116_s5 + $0x454] ss:$8 sps:$4 sm:$0xff]  }
 0x71d   :  { %5062 = vmatpush1.bf16.msra.mxu0 %v9484_v38  ;;  %5302 = vmatpush1.bf16.msra.mxu1 %v9487_v28  ;;  %v9561_v38 = vld [vmem:[%s13117_s6 + $0x454] ss:$8 sps:$4 sm:$0xff]   ;;  %v1357_v28 = vand.u32 31, %v13516_v52 }
 0x71e   :  { %5063 = vmatprep.subr.bf16.mxu0 %v9492_v58  ;;  %5303 = vmatprep.subr.bf16.mxu1 %v9495_v60  ;;  %v9556_v58 = vld [vmem:[%s13116_s5 + $0x450] ss:$8 sps:$4 sm:$0xff]  }
 0x71f   :  { %4600 = vmatmul.mubr.bf16.gmra.mrb[40].mxu0 %v11394_v47  ;;  %4840 = vmatmul.mubr.bf16.gmra.mrb[36].mxu1 %v11394_v47  ;;  %v9504_v47 = vld [vmem:[%s13116_s5 + $0x3c4] ss:$8 sps:$4 sm:$0xff]   ;;  %v9559_v60 = vld [vmem:[%s13117_s6 + $0x450] ss:$8 sps:$4 sm:$0xff]   ;;  %vm12096_vm9 = vcmp.eq.s32.totalorder %v1357_v28, %v13498_v31 }
 0x720   :  { %8009 = vmatprep.mubr.msk.bf16.mxu0 %vm13245_vm3, %v11375_v50  ;;  %8068 = vmatprep.mubr.msk.bf16.mxu1 %vm13245_vm3, %v11375_v50  ;;  %v9507_v50 = vld [vmem:[%s13117_s6 + $0x3c4] ss:$8 sps:$4 sm:$0xff]   ;;  %v13582_v28 = vld [vmem:[#allocation26_spill] sm:$0xff] }
 0x721   :  { %5064 = vmatpush1.bf16.msra.mxu0 %v9490_v59  ;;  %5304 = vmatpush1.bf16.msra.mxu1 %v9493_v41  ;;  %v4898_v59 = vrot.slane %v11302_v55, 2  ;;  %v4905_v41 = vrot.slane %v11334_v6, 2  ;;  %v4897_v55 = vrot.slane %v11290_v56, 2  ;;  %v13544_v56 = vand.u32 31, %v13519_v0 }
 0x722   :  { %5065 = vmatprep.subr.bf16.mxu0 %v9498_v45  ;;  %5305 = vmatprep.subr.bf16.mxu1 %v9501_v25  ;;  %v13534_v45 = vand.u32 31, %v13514_v48  ;;  %v13535_v25 = vmov 0 }
 0x723   :  { %v4899_v6 = vsel %vm13540_vm4, %v4897_v55, %v4898_v59  ;;  %vm12119_vm2 = vcmp.eq.s32.totalorder %v13544_v56, %v13498_v31  ;;  %v13593_v56 = vmov 0 }
 0x724   :  { %vm12091_vm1 = vcmp.eq.s32.totalorder %v13534_v45, %v13498_v31  ;;  %v13589_v45 = vmov 0 }
 0x725   :  { %5066 = vmatpush1.bf16.msra.mxu0 %v9496_v2  ;;  %5306 = vmatpush1.bf16.msra.mxu1 %v9499_v19  ;;  %v13536_v25 = vsel %vm12091_vm1, 4294967295, %v13535_v25  ;;  %v13537_v2 = vmov 0  ;;  %v1364_v19 = vand.u32 31, %v13518_v8  ;;  %vm13244_vm10 = vmpackc.low %vm12096_vm9, %vm12091_vm1 }
 0x726   :  { %5067 = vmatprep.subr.bf16.mxu0 %v9504_v47  ;;  %5307 = vmatprep.subr.bf16.mxu1 %v9507_v50  ;;  %v13538_v2 = vsel %vm12096_vm9, 4294967295, %v13537_v2  ;;  %v13539_v47 = vmov 0.0|0.0   ;;  %v4906_v50 = vsel %vm13541_vm14, %v4901_v24, %v4905_v41  ;;  %v13548_v24 = vand.u32 31, %v13520_v14 }
 0x727   :  { %4610 = vmatmul.mubr.bf16.gmra.mrb[44].mxu0 %v11385_v4  ;;  %4850 = vmatmul.mubr.bf16.gmra.mrb[40].mxu1 %v11385_v4  ;;  %v9516_v4 = vld [vmem:[%s13116_s5 + $0x3e4] ss:$8 sps:$4 sm:$0xff]   ;;  %vm12112_vm15 = vcmp.eq.s32.totalorder %v1364_v19, %v13498_v31  ;;  %v13591_v19 = vld [vmem:[#allocation27_spill] sm:$0xff] }
 0x728   :  { %8125 = vmatprep.mubr.msk.bf16.mxu0 %vm13245_vm3, %v11327_v26  ;;  %8184 = vmatprep.mubr.msk.bf16.mxu1 %vm13245_vm3, %v11327_v26  ;;  %v9519_v26 = vld [vmem:[%s13117_s6 + $0x3e4] ss:$8 sps:$4 sm:$0xff]   ;;  %vm13243_vm0 = vmpackc.low %vm12119_vm2, %vm12112_vm15  ;;  %vm12141_vm5 = vcmp.eq.s32.totalorder %v13548_v24, %v13498_v31  ;;  %v5549_v55 = vand.u32 31, %v13591_v19  ;;  %v13620_v19 = vmov 0 }
 0x729   :  { %5068 = vmatpush1.bf16.msra.mxu0 %v9502_v29  ;;  %5308 = vmatpush1.bf16.msra.mxu1 %v9505_v34  ;;  %v13542_v29 = vmov 0  ;;  %v13545_v34 = vmov 0 }
 0x72a   :  { %5069 = vmatprep.subr.bf16.mxu0 %v9510_v51  ;;  %5309 = vmatprep.subr.bf16.mxu1 %v9513_v57  ;;  %v13543_v29 = vsel %vm12112_vm15, 4294967295, %v13542_v29  ;;  %v13546_v34 = vsel %vm12119_vm2, 4294967295, %v13545_v34  ;;  %v13547_v51 = vld [vmem:[#allocation14_spill] sm:$0xff] }
 0x72b   :  { %v1385_v57 = vand.u32 31, %v13547_v51 }
 0x72d   :  { %5070 = vmatpush1.bf16.msra.mxu0 %v9508_v53  ;;  %5310 = vmatpush1.bf16.msra.mxu1 %v9511_v13  ;;  %v13549_v53 = vmov 0  ;;  %vm12146_vm6 = vcmp.eq.s32.totalorder %v1385_v57, %v13498_v31  ;;  %v13551_v13 = vmov 0  ;;  %v13595_v57 = vmov 0 }
 0x72e   :  { %5071 = vmatprep.subr.bf16.mxu0 %v9516_v4  ;;  %5311 = vmatprep.subr.bf16.mxu1 %v9519_v26  ;;  %v13550_v53 = vsel %vm12141_vm5, 4294967295, %v13549_v53  ;;  %v13552_v13 = vsel %vm12146_vm6, 4294967295, %v13551_v13  ;;  %v1392_v4 = vand.u32 31, %v13553_v12  ;;  %v4904_v26 = vsel %vm13554_vm7, %v4898_v59, %v4903_v5  ;;  %vm13241_vm8 = vmpackc.low %vm12146_vm6, %vm12141_vm5 }
 0x72f   :  { %v13585_v59 = vmov 0 }
 0x730   :  { %vm12164_vm11 = vcmp.eq.s32.totalorder %v1392_v4, %v13498_v31  ;;  %v13598_v4 = vld [vmem:[#allocation30_spill] sm:$0xff] }
 0x731   :  { %5072 = vmatpush1.bf16.msra.mxu0 %v9514_v46  ;;  %5312 = vmatpush1.bf16.msra.mxu1 %v9517_v21  ;;  %v13555_v46 = vmov 0  ;;  %v13557_v21 = vld [vmem:[#allocation16_spill] sm:$0xff] }
 0x732   :  { %5073 = vmatprep.subr.bf16.mxu0 %v9522_v22  ;;  %5313 = vmatprep.subr.bf16.mxu1 %v9525_v62  ;;  %v13556_v46 = vsel %vm12164_vm11, 4294967295, %v13555_v46  ;;  %v13558_v22 = vand.u32 31, %v13557_v21  ;;  %v13559_v62 = vmov 0  ;;  %v13599_v21 = vmov 0 }
 0x734   :  { %vm12171_vm12 = vcmp.eq.s32.totalorder %v13558_v22, %v13498_v31  ;;  %v13601_v22 = vmov 0 }
 0x735   :  { %5074 = vmatpush1.bf16.msra.mxu0 %v9520_v1  ;;  %5314 = vmatpush1.bf16.msra.mxu1 %v9523_v3  ;;  %v13560_v62 = vsel %vm12171_vm12, 4294967295, %v13559_v62  ;;  %v13561_v1 = vld [vmem:[#allocation17_spill] sm:$0xff]  ;;  %vm13240_vm13 = vmpackc.low %vm12171_vm12, %vm12164_vm11 }
 0x736   :  { %5075 = vmatprep.subr.bf16.mxu0 %v9528_v54  ;;  %5315 = vmatprep.subr.bf16.mxu1 %v9531_v27  ;;  %v5479_v3 = vand.u32 31, %v13561_v1  ;;  %v13562_v54 = vld [vmem:[#allocation18_spill] sm:$0xff]  ;;  %v13603_v1 = vld [vmem:[#allocation31_spill] sm:$0xff] }
 0x737   :  { %v5486_v27 = vand.u32 31, %v13562_v54  ;;  %v13604_v54 = vld [vmem:[#allocation32_spill] sm:$0xff] }
 0x738   :  { %vm12191_vm4 = vcmp.eq.s32.totalorder %v5479_v3, %v13498_v31  ;;  %v5577_v3 = vand.u32 31, %v13603_v1 }
 0x739   :  { %5076 = vmatpush1.bf16.msra.mxu0 %v9526_v43  ;;  %5316 = vmatpush1.bf16.msra.mxu1 %v9529_v15  ;;  %v13563_v43 = vmov 0  ;;  %vm12196_vm14 = vcmp.eq.s32.totalorder %v5486_v27, %v13498_v31  ;;  %v13565_v15 = vmov 0  ;;  %v5584_v27 = vand.u32 31, %v13604_v54 }
 0x73a   :  { %5077 = vmatprep.subr.bf16.mxu0 %v9534_v49  ;;  %5317 = vmatprep.subr.bf16.mxu1 %v9537_v37  ;;  %v13564_v43 = vsel %vm12191_vm4, 4294967295, %v13563_v43  ;;  %v13566_v15 = vsel %vm12196_vm14, 4294967295, %v13565_v15  ;;  %vm13242_vm7 = vmpackc.low %vm12196_vm14, %vm12191_vm4  ;;  %v13567_v49 = vld [vmem:[#allocation19_spill] sm:$0xff]  ;;  %vm12307_vm4 = vcmp.eq.s32.totalorder %v5549_v55, %v13498_v31  ;;  %v13622_v55 = vmov 0 }
 0x73b   :  { %v5493_v37 = vand.u32 31, %v13567_v49  ;;  %v13594_v56 = vsel %vm12307_vm4, 4294967295, %v13593_v56  ;;  %v13605_v49 = vld [vmem:[#allocation33_spill] sm:$0xff] }
 0x73d   :  { %5078 = vmatpush1.bf16.msra.mxu0 %v9532_v18  ;;  %5318 = vmatpush1.bf16.msra.mxu1 %v9535_v33  ;;  %v13568_v18 = vld [vmem:[#allocation20_spill] sm:$0xff] }
 0x73e   :  { %5079 = vmatprep.subr.bf16.mxu0 %v9540_v42  ;;  %5319 = vmatprep.subr.bf16.mxu1 %v9543_v35  ;;  %v5500_v33 = vand.u32 31, %v13568_v18  ;;  %v13569_v42 = vld [vmem:[#allocation21_spill] sm:$0xff]  ;;  %v13606_v18 = vld [vmem:[#allocation34_spill] sm:$0xff] }
 0x73f   :  { %v5507_v35 = vand.u32 31, %v13569_v42  ;;  %v13607_v42 = vmov 0 }
 0x741   :  { %5080 = vmatpush1.bf16.msra.mxu0 %v9538_v17  ;;  %5320 = vmatpush1.bf16.msra.mxu1 %v9541_v40  ;;  %v13570_v17 = vld [vmem:[#allocation22_spill] sm:$0xff] }
 0x742   :  { %5081 = vmatprep.subr.bf16.mxu0 %v9546_v20  ;;  %5321 = vmatprep.subr.bf16.mxu1 %v9549_v9  ;;  %v5514_v40 = vand.u32 31, %v13570_v17  ;;  %v13571_v20 = vmov 0  ;;  %v13573_v9 = vmov 0  ;;  %v13611_v17 = vld [vmem:[#allocation37_spill] sm:$0xff] }
 0x745   :  { %5082 = vmatpush1.bf16.msra.mxu0 %v9544_v44  ;;  %5322 = vmatpush1.bf16.msra.mxu1 %v9547_v63  ;;  %v13575_v44 = vmov 0  ;;  %v13577_v63 = vmov 0 }
 0x746   :  { %5083 = vmatprep.subr.bf16.mxu0 %v9552_v36  ;;  %5323 = vmatprep.subr.bf16.mxu1 %v9555_v39  ;;  %v13579_v36 = vld [vmem:[#allocation23_spill] sm:$0xff] }
 0x747   :  { %v5521_v39 = vand.u32 31, %v13579_v36  ;;  %v13612_v36 = vmov 0 }
 0x749   :  { %5084 = vmatpush1.bf16.msra.mxu0 %v9550_v11  ;;  %5324 = vmatpush1.bf16.msra.mxu1 %v9553_v30  ;;  %v13580_v11 = vld [vmem:[#allocation24_spill] sm:$0xff] }
 0x74a   :  { %5085 = vmatprep.subr.bf16.mxu0 %v9558_v23  ;;  %5325 = vmatprep.subr.bf16.mxu1 %v9561_v38  ;;  %v5528_v30 = vand.u32 31, %v13580_v11  ;;  %v13581_v23 = vld [vmem:[#allocation25_spill] sm:$0xff]  ;;  %v13616_v11 = vld [vmem:[#allocation35_spill] sm:$0xff] }
 0x74b   :  { %v5535_v38 = vand.u32 31, %v13581_v23  ;;  %v13617_v23 = vld [vmem:[#allocation36_spill] sm:$0xff] }
 0x74d   :  { %5086 = vmatpush1.bf16.msra.mxu0 %v9556_v58  ;;  %5326 = vmatpush1.bf16.msra.mxu1 %v9559_v60  ;;  %v5542_v58 = vand.u32 31, %v13582_v28  ;;  %v13583_v60 = vmov 0  ;;  %v5803_v28 = vand.u32 31, %v13498_v31 }
 0x74e   :  { %8428 = vmatprep.subr.bf16.mxu0 %v13539_v47 }
 0x74f   :  { %vm5825_vm5 = vcmp.eq.s32.totalorder %v5803_v28, %v13516_v52  ;;  %vm5827_vm15 = vcmp.eq.s32.totalorder %v5803_v28, %v13518_v8 }
 0x750   :  { %5092 = vmatmul.mubr.bf16.vlgmr.msra.gmra.mrb[36].mxu0 %v4899_v6  ;;  %5332 = vmatmul.mubr.bf16.vlgmr.msra.gmra.mrb[32].mxu1 %v4899_v6  ;;  %v13592_v6 = vld [vmem:[#allocation28_spill] sm:$0xff] }
 0x751   :  { %8126 = vmatprep.mubr.msk.bf16.mxu0 %vm13245_vm3, %v4906_v50  ;;  %8185 = vmatprep.mubr.msk.bf16.mxu1 %vm13245_vm3, %v4906_v50  ;;  %v5556_v50 = vand.u32 31, %v13592_v6 }
 0x752   :  { %8430 = vmatpush1.bf16.msk.msra.mxu0 %vm13244_vm10, %v13397_v32 }
 0x753   :  { %8431 = vmatprep.subr.bf16.mxu0 %v13539_v47  ;;  %vm12312_vm14 = vcmp.eq.s32.totalorder %v5556_v50, %v13498_v31  ;;  %v6671_v50 = vld [vmem:[#allocation2] sm:$0xff] }
 0x754   :  { %v13596_v57 = vsel %vm12312_vm14, 4294967295, %v13595_v57 }
 0x756   :  { %8433 = vmatpush1.bf16.msk.msra.mxu0 %vm13243_vm0, %v13397_v32  ;;  %vm12239_vm0 = vcmp.eq.s32.totalorder %v5514_v40, %v13498_v31  ;;  %v5810_v40 = vand.u32 31, %v13611_v17 }
 0x757   :  { %8434 = vmatprep.subr.bf16.mxu0 %v13539_v47  ;;  %v13578_v63 = vsel %vm12239_vm0, 4294967295, %v13577_v63 }
 0x758   :  { %5102 = vmatmul.mubr.bf16.gmra.mrb[40].mxu0 %v4904_v26  ;;  %5342 = vmatmul.mubr.bf16.gmra.mrb[36].mxu1 %v4904_v26  ;;  %v5570_v26 = vand.u32 31, %v13598_v4  ;;  %vm5828_vm11 = vcmp.eq.s32.totalorder %v5810_v40, %v13518_v8 }
 0x759   :  { %8127 = vmatprep.mubr.msk.bf16.mxu0 %vm13245_vm3, %v4905_v41  ;;  %8186 = vmatprep.mubr.msk.bf16.mxu1 %vm13245_vm3, %v4905_v41  ;;  %v13587_v41 = vmov 0 }
 0x75a   :  { %8436 = vmatpush1.bf16.msk.msra.mxu0 %vm13241_vm8, %v13397_v32  ;;  %vm12229_vm8 = vcmp.eq.s32.totalorder %v5500_v33, %v13498_v31  ;;  %v5598_v33 = vand.u32 31, %v13606_v18 }
 0x75b   :  { %8437 = vmatprep.subr.bf16.mxu0 %v13539_v47  ;;  %v13574_v9 = vsel %vm12229_vm8, 4294967295, %v13573_v9 }
 0x75e   :  { %8439 = vmatpush1.bf16.msk.msra.mxu0 %vm13240_vm13, %v13397_v32  ;;  %vm12224_vm13 = vcmp.eq.s32.totalorder %v5493_v37, %v13498_v31  ;;  %v5591_v37 = vand.u32 31, %v13605_v49 }
 0x75f   :  { %8440 = vmatprep.subr.bf16.mxu0 %v13539_v47  ;;  %v13572_v20 = vsel %vm12224_vm13, 4294967295, %v13571_v20  ;;  %vm13246_vm10 = vmpackc.low %vm12229_vm8, %vm12224_vm13  ;;  %vm12275_vm13 = vcmp.eq.s32.totalorder %v5528_v30, %v13498_v31  ;;  %vm12280_vm8 = vcmp.eq.s32.totalorder %v5535_v38, %v13498_v31  ;;  %v5605_v30 = vand.u32 31, %v13616_v11 }
 0x760   :  { %5112 = vmatmul.mubr.bf16.gmra.mrb[44].mxu0 %v4903_v5  ;;  %5352 = vmatmul.mubr.bf16.gmra.mrb[40].mxu1 %v4903_v5  ;;  %v13586_v59 = vsel %vm12275_vm13, 4294967295, %v13585_v59  ;;  %v13588_v41 = vsel %vm12280_vm8, 4294967295, %v13587_v41  ;;  %v13597_v5 = vld [vmem:[#allocation29_spill] sm:$0xff]  ;;  %v5612_v38 = vand.u32 31, %v13617_v23 }
 0x761   :  { %6038 = vmatprep.mubr.f32.mxu1 %v13420_v16  ;;  %v5563_v24 = vand.u32 31, %v13597_v5  ;;  %vm12404_vm12 = vcmp.eq.s32.totalorder %v5605_v30, %v13498_v31  ;;  %v13629_v5 = vmov 0 }
 0x762   :  { %8442 = vmatpush1.bf16.msk.msra.mxu0 %vm13242_vm7, %v13397_v32  ;;  %vm12234_vm7 = vcmp.eq.s32.totalorder %v5507_v35, %v13498_v31  ;;  %v13609_v35 = vmov 0  ;;  %v12488_v30 = vmul.u32.u64.low 3817748708, %v13520_v14  ;;  %v12489_v23 = vmul.u32.u64.high 3817748708, %v13520_v14, %v12488_v30 }
 0x763   :  { %8443 = vmatprep.subr.bf16.mxu0 %v13539_v47  ;;  %v13576_v44 = vsel %vm12234_vm7, 4294967295, %v13575_v44  ;;  %vm13249_vm3 = vmpackc.low %vm12239_vm0, %vm12234_vm7 }
 0x766   :  { %8445 = vmatpush1.bf16.msk.msra.mxu0 %vm13246_vm10, %v13397_v32  ;;  %vm12270_vm10 = vcmp.eq.s32.totalorder %v5521_v39, %v13498_v31  ;;  %v13614_v39 = vmov 0 }
 0x767   :  { %8446 = vmatprep.subr.bf16.mxu0 %v13539_v47  ;;  %v13584_v60 = vsel %vm12270_vm10, 4294967295, %v13583_v60  ;;  %vm13254_vm7 = vmpackc.low %vm12275_vm13, %vm12270_vm10  ;;  %vm12330_vm10 = vcmp.eq.s32.totalorder %v5563_v24, %v13498_v31  ;;  %vm12335_vm13 = vcmp.eq.s32.totalorder %v5570_v26, %v13498_v31 }
 0x768   :  { %v13600_v21 = vsel %vm12330_vm10, 4294967295, %v13599_v21  ;;  %v13602_v22 = vsel %vm12335_vm13, 4294967295, %v13601_v22  ;;  %v12468_v24 = vmul.u32.u64.low 3817748708, %v13514_v48  ;;  %v12469_v4 = vmul.u32.u64.high 3817748708, %v13514_v48, %v12468_v24 }
 0x769   :  { %v12472_v26 = vmul.u32.u64.low 3817748708, %v13516_v52  ;;  %v12473_v1 = vmul.u32.u64.high 3817748708, %v13516_v52, %v12472_v26 }
 0x76a   :  { %8448 = vmatpush1.bf16.msk.msra.mxu0 %vm13249_vm3, %v13397_v32  ;;  %vm12285_vm3 = vcmp.eq.s32.totalorder %v5542_v58, %v13498_v31  ;;  %v13618_v58 = vmov 0 }
 0x76b   :  { %8449 = vmatprep.subr.bf16.mxu0 %v13539_v47  ;;  %v13590_v45 = vsel %vm12285_vm3, 4294967295, %v13589_v45  ;;  %vm13257_vm0 = vmpackc.low %vm12285_vm3, %vm12280_vm8  ;;  %vm12355_vm8 = vcmp.eq.s32.totalorder %v5577_v3, %v13498_v31  ;;  %vm12382_vm3 = vcmp.eq.s32.totalorder %v5598_v33, %v13498_v31  ;;  %v13619_v58 = vsel %vm12404_vm12, 4294967295, %v13618_v58 }
 0x76c   :  { %v13608_v42 = vsel %vm12355_vm8, 4294967295, %v13607_v42  ;;  %v13615_v39 = vsel %vm12382_vm3, 4294967295, %v13614_v39  ;;  %v5376_v3 = vshrl.u32 %v12469_v4, 4  ;;  %v5387_v49 = vshrl.u32 %v12473_v1, 4 }
 0x76e   :  { %8451 = vmatpush1.bf16.msk.msra.mxu0 %vm13254_vm7, %v13397_v32  ;;  %vm13259_vm7 = vmpackc.low %vm12312_vm14, %vm12307_vm4  ;;  %vm12377_vm14 = vcmp.eq.s32.totalorder %v5591_v37, %v13498_v31  ;;  %v12482_v37 = vmul.u32.u64.low 3817748708, %v13519_v0  ;;  %v12483_v18 = vmul.u32.u64.high 3817748708, %v13519_v0, %v12482_v37  ;;  %v5377_v33 = vmul.u32 18, %v5376_v3 }
 0x76f   :  { %8452 = vmatprep.subr.bf16.mxu0 %v13539_v47  ;;  %v13613_v36 = vsel %vm12377_vm14, 4294967295, %v13612_v36  ;;  %vm13628_vm2 = vmpackc.low %vm12382_vm3, %vm12377_vm14  ;;  %v5388_v17 = vmul.u32 18, %v5387_v49 }
 0x772   :  { %8454 = vmatpush1.bf16.msk.msra.mxu0 %vm13257_vm0, %v13397_v32  ;;  %vm13263_vm0 = vmpackc.low %vm12335_vm13, %vm12330_vm10  ;;  %vm5824_vm10 = vcmp.eq.s32.totalorder %v5810_v40, %v13514_v48  ;;  %vm5826_vm13 = vcmp.eq.s32.totalorder %v5810_v40, %v13516_v52 }
 0x773   :  { %8455 = vmatprep.subr.bf16.mxu0 %v13539_v47 }
 0x776   :  { %8457 = vmatpush1.bf16.msk.msra.mxu0 %vm13259_vm7, %v13397_v32  ;;  %vm12360_vm7 = vcmp.eq.s32.totalorder %v5584_v27, %v13498_v31  ;;  %v12477_v54 = vmul.u32.u64.low 3817748708, %v13518_v8  ;;  %v12478_v27 = vmul.u32.u64.high 3817748708, %v13518_v8, %v12477_v54 }
 0x777   :  { %8458 = vmatprep.subr.bf16.mxu0 %v13539_v47  ;;  %v13610_v35 = vsel %vm12360_vm7, 4294967295, %v13609_v35  ;;  %vm13268_vm4 = vmpackc.low %vm12360_vm7, %vm12355_vm8  ;;  %vm5830_vm8 = vcmp.eq.s32.totalorder %v5810_v40, %v13519_v0  ;;  %vm5823_vm7 = vcmp.eq.s32.totalorder %v5803_v28, %v13514_v48  ;;  %v5378_v40 = vsub.s32 %v13514_v48, %v5377_v33 }
 0x778   :  { %vm12423_vm6 = vmpackc.low %vm5830_vm8, %vm5828_vm11  ;;  %v5398_v11 = vshrl.u32 %v12478_v27, 4  ;;  %v5420_v54 = vshrl.u32 %v12489_v23, 4 }
 0x779   :  { %v5440_v4 = vadd.s32 18, %v5378_v40 }
 0x77a   :  { %8460 = vmatpush1.bf16.msk.msra.mxu0 %vm13263_vm0, %v13397_v32  ;;  %vm12413_vm0 = vmpackc.low %vm5826_vm13, %vm5824_vm10  ;;  %vm5829_vm10 = vcmp.eq.s32.totalorder %v5803_v28, %v13519_v0  ;;  %v5409_v28 = vshrl.u32 %v12483_v18, 4  ;;  %v5399_v24 = vmul.u32 18, %v5398_v11  ;;  %v5421_v18 = vmul.u32 18, %v5420_v54 }
 0x77b   :  { %8461 = vmatprep.subr.bf16.mxu0 %v13539_v47  ;;  %v13623_v55 = vsel %vm12413_vm0, 4294967295, %v13622_v55  ;;  %8471 = vmatprep.subr.msk.bf16.mxu1 %vm12413_vm0, %v13397_v32  ;;  %vm12429_vm13 = vmpackc.low %vm5825_vm5, %vm5823_vm7 }
 0x77c   :  { %8473 = vmatpush1.bf16.msk.msra.mxu1 %vm12429_vm13, %v13397_v32  ;;  %vm12450_vm5 = vmpackc.low %vm5829_vm10, %vm5827_vm15  ;;  %vm5425_vm15 = vcmp.ne.s32.totalorder %v5378_v40, 0  ;;  %v5410_v26 = vmul.u32 18, %v5409_v28  ;;  %v5400_v3 = vsub.s32 %v13518_v8, %v5399_v24  ;;  %v5422_v11 = vsub.s32 %v13520_v14, %v5421_v18 }
 0x77d   :  { %8475 = vmatprep.subr.msk.bf16.mxu1 %vm12423_vm6, %v13397_v32  ;;  %v13630_v5 = vsel %vm12450_vm5, 4294967295, %v13629_v5 }
 0x77e   :  { %8463 = vmatpush1.bf16.msk.msra.mxu0 %vm13268_vm4, %v13397_v32  ;;  %vm12409_vm4 = vcmp.eq.s32.totalorder %v5612_v38, %v13498_v31  ;;  %v5389_v38 = vsub.s32 %v13516_v52, %v5388_v17  ;;  %v5411_v49 = vsub.s32 %v13519_v0, %v5410_v26  ;;  %v5442_v33 = vadd.s32 18, %v5400_v3 }
 0x77f   :  { %8464 = vmatprep.subr.bf16.mxu0 %v13539_v47  ;;  %v13621_v19 = vsel %vm12409_vm4, 4294967295, %v13620_v19  ;;  %vm13275_vm8 = vmpackc.low %vm12409_vm4, %vm12404_vm12  ;;  %vm5427_vm12 = vcmp.ne.s32.totalorder %v5400_v3, 0  ;;  %vm5432_vm4 = vcmp.lt.s32.totalorder %v5400_v3, 0 }
 0x780   :  { %8477 = vmatpush1.bf16.msk.msra.mxu1 %vm12450_vm5, %v13397_v32  ;;  %vm5426_vm11 = vcmp.ne.s32.totalorder %v5389_v38, 0  ;;  %vm5431_vm7 = vcmp.lt.s32.totalorder %v5389_v38, 0  ;;  %v5441_v1 = vadd.s32 18, %v5389_v38  ;;  %vm5428_vm1 = vcmp.ne.s32.totalorder %v5411_v49, 0 }
 0x781   :  { %8478 = vmatprep.subr.bf16.mxu1 %v13539_v47  ;;  %vm5433_vm9 = vcmp.lt.s32.totalorder %v5411_v49, 0  ;;  %v5443_v17 = vadd.s32 18, %v5411_v49 }
 0x782   :  { %8466 = vmatpush1.bf16.msk.msra.mxu0 %vm13628_vm2, %v13397_v32  ;;  %vm5430_vm2 = vcmp.lt.s32.totalorder %v5378_v40, 0 }
 0x783   :  { %8467 = vmatprep.subr.bf16.mxu0 %v13539_v47  ;;  %vm5435_vm10 = vmand %vm5430_vm2, %vm5425_vm15 }
 0x784   :  { %v5445_v27 = vsel %vm5435_vm10, %v5440_v4, %v5378_v40  ;;  %vm5437_vm2 = vmand %vm5432_vm4, %vm5427_vm12  ;;  %vm5434_vm12 = vcmp.lt.s32.totalorder %v5422_v11, 0  ;;  %vm13637_vm10 = vcmask 785408  }
 0x785   :  { %vm5450_vm14 = vcmp.ge.s32.totalorder %v5445_v27, 2  ;;  %vm5455_vm3 = vcmp.lt.s32.totalorder %v5445_v27, 16  ;;  %v5447_v40 = vsel %vm5437_vm2, %v5442_v33, %v5400_v3  ;;  %v5444_v33 = vadd.s32 18, %v5422_v11 }
 0x786   :  { %8469 = vmatpush1.bf16.msk.msra.mxu0 %vm13275_vm8, %v13397_v32  ;;  %vm5436_vm8 = vmand %vm5431_vm7, %vm5426_vm11 }
 0x787   :  { %8521 = vmatprep.subr.msk.bf16.mxu0 %vm12413_vm0, %v13397_v32  ;;  %v5446_v37 = vsel %vm5436_vm8, %v5441_v1, %v5389_v38  ;;  %vm5460_vm5 = vmand %vm5450_vm14, %vm5455_vm3  ;;  %vm5429_vm3 = vcmp.ne.s32.totalorder %v5422_v11, 0 }
 0x788   :  { %vm5451_vm0 = vcmp.ge.s32.totalorder %v5446_v37, 2  ;;  %vm5456_vm15 = vcmp.lt.s32.totalorder %v5446_v37, 16  ;;  %vm5438_vm11 = vmand %vm5433_vm9, %vm5428_vm1  ;;  %v12502_v38 = vsel %vm5460_vm5, 1.0, %v13420_v16  ;;  %vm5452_vm1 = vcmp.ge.s32.totalorder %v5447_v40, 2 }
 0x789   :  { %vm5461_vm7 = vmand %vm5451_vm0, %vm5456_vm15  ;;  %13632 = vst [vmem:[#allocation39_spill] sm:$0xff] %v12502_v38  ;;  %v5448_v26 = vsel %vm5438_vm11, %v5443_v17, %v5411_v49  ;;  %vm5457_vm9 = vcmp.lt.s32.totalorder %v5447_v40, 16 }
 0x78a   :  { %v12517_v27 = vsel %vm5461_vm7, 1.0, %v13420_v16  ;;  %vm5453_vm0 = vcmp.ge.s32.totalorder %v5448_v26, 2  ;;  %vm5458_vm4 = vcmp.lt.s32.totalorder %v5448_v26, 16  ;;  %vm5439_vm14 = vmand %vm5434_vm12, %vm5429_vm3 }
 0x78b   :  { %13635 = vst [vmem:[#allocation60_spill] sm:$0xff] %v12517_v27  ;;  %vm5462_vm8 = vmand %vm5452_vm1, %vm5457_vm9  ;;  %v5449_v31 = vsel %vm5439_vm14, %v5444_v33, %v5422_v11  ;;  %vm5870_vm1 = vcmask 1043456   ;;  %vm5886_vm9 = vcmask 781312   ;;  %vm13655_vm14 = vnez %v13623_v55 }
 0x78c   :  { %vm5463_vm5 = vmand %vm5453_vm0, %vm5458_vm4  ;;  %v12540_v52 = vsel %vm5462_vm8, 1.0, %v13420_v16  ;;  %vm5454_vm2 = vcmp.ge.s32.totalorder %v5449_v31, 2  ;;  %vm5459_vm11 = vcmp.lt.s32.totalorder %v5449_v31, 16  ;;  %vm13654_vm4 = vnez %v13630_v5  ;;  %v6676_v5 = vld [vmem:[#allocation2 + $0x28] sm:$0xff] }
 0x78d   :  { %vm13638_vm15 = vmmov %vm13637_vm10  ;;  %13640 = vst [vmem:[#allocation49_spill] sm:$0xff] %v12540_v52  ;;  %v12555_v33 = vsel %vm5463_vm5, 1.0, %v13420_v16  ;;  %vm5970_vm8 = vcmask 261120   ;;  %vm13656_vm5 = vnez %v13538_v2 }
 0x78e   :  { %13644 = vst [vmem:[#allocation42_spill] sm:$0xff] %v12555_v33  ;;  %vm5464_vm7 = vmand %vm5454_vm2, %vm5459_vm11  ;;  %vm13659_vm2 = vnez %v13546_v34  ;;  %vm13660_vm11 = vnez %v13543_v29 }
 0x78f   :  { %vm13647_vm3 = vmmov %vm13637_vm10 }
 0x790   :  { %vm13648_vm12 = vmmov %vm13647_vm3 }
 0x791   :  { %vm13653_vm0 = vmmov %vm13647_vm3 }
 0x823   :  { %v12497_v30 = vpop.f32.mrb[36].mxu0  ;;  %v12499_v23 = vpop.f32.mrb[32].mxu1 }
 0x824   :  { %13631 = vst [vmem:[#allocation40_spill] sm:$0xff] %v12499_v23  ;;  %v5847_v28 = vadd.f32 %v12499_v23, %v12497_v30  ;;  %v12506_v24 = vpop.f32.mrb[37].mxu0  ;;  %v12508_v4 = vpop.f32.mrb[33].mxu1 }
 0x825   :  { %13633 = vst [vmem:[#allocation52_spill] sm:$0xff] %v12508_v4  ;;  %v5848_v1 = vadd.f32 %v12508_v4, %v12506_v24  ;;  %v12512_v3 = vpop.f32.mrb[38].mxu0  ;;  %v12514_v54 = vpop.f32.mrb[34].mxu1 }
 0x826   :  { %13634 = vst [vmem:[#allocation55_spill] sm:$0xff] %v12514_v54  ;;  %v5849_v37 = vadd.f32 %v12514_v54, %v12512_v3  ;;  %v12521_v18 = vpop.f32.mrb[39].mxu0  ;;  %v12523_v49 = vpop.f32.mrb[35].mxu1  ;;  %v5857_v40 = vmul.f32 %v12502_v38, %v5847_v28 }
 0x827   :  { %13636 = vst [vmem:[#allocation63_spill] sm:$0xff] %v12523_v49  ;;  %v5858_v17 = vmul.f32 %v12502_v38, %v5848_v1  ;;  %v5850_v7 = vadd.f32 %v12523_v49, %v12521_v18 }
 0x828   :  { %v5859_v12 = vmul.f32 %v12517_v27, %v5849_v37 }
 0x829   :  { %v5860_v51 = vmul.f32 %v12517_v27, %v5850_v7  ;;  %v5879_v1 = vsel %vm13637_vm10, %v5858_v17, 0.0  ;;  %vm13657_vm10 = vnez %v13536_v25 }
 0x82a   :  { %v5867_v14 = vadd.f32 %v5859_v12, %v5857_v40 }
 0x82b   :  { %v5880_v0 = vsel %vm13638_vm15, %v5860_v51, 0.0  ;;  %v12535_v8 = vpop.f32.mrb[40].mxu0  ;;  %v12537_v26 = vpop.f32.mrb[36].mxu1  ;;  %vm13658_vm15 = vmpackc.low %vm13656_vm5, %vm13657_vm10  ;;  %vm13666_vm5 = vnez %v13556_v46 }
 0x82c   :  { %13639 = vst [vmem:[#allocation45_spill] sm:$0xff] %v12537_v26  ;;  %v5881_v28 = vadd.f32 %v5880_v0, %v5879_v1  ;;  %v5851_v37 = vadd.f32 %v12537_v26, %v12535_v8  ;;  %v12544_v48 = vpop.f32.mrb[41].mxu0  ;;  %v12546_v7 = vpop.f32.mrb[37].mxu1 }
 0x82d   :  { %13641 = vst [vmem:[#allocation47_spill] sm:$0xff] %v12544_v48  ;;  %13642 = vst [vmem:[#allocation51_spill] sm:$0xff] %v12546_v7  ;;  %v5852_v12 = vadd.f32 %v12546_v7, %v12544_v48  ;;  %v12550_v11 = vpop.f32.mrb[42].mxu0  ;;  %v12552_v51 = vpop.f32.mrb[38].mxu1 }
 0x82e   :  { %13643 = vst [vmem:[#allocation41_spill] sm:$0xff] %v12552_v51  ;;  %v5861_v0 = vmul.f32 %v12540_v52, %v5851_v37  ;;  %v5853_v17 = vadd.f32 %v12552_v51, %v12550_v11  ;;  %v12560_v40 = vpop.f32.mrb[43].mxu0  ;;  %v12562_v1 = vpop.f32.mrb[39].mxu1 }
 0x82f   :  { %13645 = vst [vmem:[#allocation57_spill] sm:$0xff] %v12560_v40  ;;  %13646 = vst [vmem:[#allocation59_spill] sm:$0xff] %v12562_v1  ;;  %v5862_v61 = vmul.f32 %v12540_v52, %v5852_v12  ;;  %v5854_v27 = vadd.f32 %v12562_v1, %v12560_v40  ;;  %v12576_v12 = vsel %vm5464_vm7, 1.0, %v13420_v16 }
 0x830   :  { %v5868_v26 = vadd.f32 %v5867_v14, %v5861_v0  ;;  %v5863_v38 = vmul.f32 %v12555_v33, %v5853_v17  ;;  %vm13661_vm7 = vmpackc.low %vm13659_vm2, %vm13660_vm11  ;;  %vm13669_vm2 = vnez %v13564_v43 }
 0x831   :  { %v5882_v31 = vsel %vm13647_vm3, %v5862_v61, 0.0  ;;  %v5864_v37 = vmul.f32 %v12555_v33, %v5854_v27  ;;  %vm13662_vm3 = vnez %v13552_v13 }
 0x832   :  { %v5883_v54 = vadd.f32 %v5882_v31, %v5881_v28  ;;  %v5869_v23 = vadd.f32 %v5868_v26, %v5863_v38 }
 0x833   :  { %v5884_v51 = vsel %vm13648_vm12, %v5864_v37, 0.0  ;;  %v12571_v7 = vpop.f32.mrb[44].mxu0  ;;  %v12573_v49 = vpop.f32.mrb[40].mxu1  ;;  %vm13663_vm12 = vnez %v13550_v53 }
 0x834   :  { %13649 = vst [vmem:[#allocation50_spill] sm:$0xff] %v12571_v7  ;;  %13650 = vst [vmem:[#allocation53_spill] sm:$0xff] %v12573_v49  ;;  %v5885_v52 = vadd.f32 %v5884_v51, %v5883_v54  ;;  %v5855_v14 = vadd.f32 %v12573_v49, %v12571_v7  ;;  %v12580_v0 = vpop.f32.mrb[45].mxu0  ;;  %v12582_v61 = vpop.f32.mrb[41].mxu1 }
 0x835   :  { %13651 = vst [vmem:[#allocation54_spill] sm:$0xff] %v12580_v0  ;;  %13652 = vst [vmem:[#allocation56_spill] sm:$0xff] %v12582_v61  ;;  %v5856_v38 = vadd.f32 %v12582_v61, %v12580_v0  ;;  %v5117_v27 = vpop.f32.mrb[46].mxu0  ;;  %v5357_v26 = vpop.f32.mrb[42].mxu1 }
 0x836   :  { %v5865_v28 = vmul.f32 %v12576_v12, %v5855_v14  ;;  %v5118_v17 = vpop.f32.mrb[47].mxu0  ;;  %v5358_v31 = vpop.f32.mrb[43].mxu1 }
 0x837   :  { %v5866_v54 = vmul.f32 %v12576_v12, %v5856_v38 }
 0x838   :  { %v5871_v51 = vsel %vm5870_vm1, %v5865_v28, 0.0 }
 0x839   :  { %v5872_v37 = vadd.f32 %v5871_v51, %v5869_v23  ;;  %v5887_v33 = vsel %vm5886_vm9, %v5866_v54, 0.0 }
 0x83a   :  { %v5888_v49 = vadd.f32 %v5887_v33, %v5885_v52 }
 0x83b   :  { %v5873_v7 = vrot.slane %v5872_v37, 4 }
 0x83c   :  { %v5889_v1 = vrot.slane %v5888_v49, 4 }
 0x83d   :  { %v5874_v4 = vadd.f32 %v5873_v7, %v5872_v37  ;;  %v13709_v37 = vld [vmem:[#allocation39_spill] sm:$0xff] }
 0x83e   :  { %v5890_v40 = vadd.f32 %v5889_v1, %v5888_v49 }
 0x83f   :  { %v5875_v61 = vrot.slane %v5874_v4, 2 }
 0x840   :  { %v5891_v27 = vrot.slane %v5890_v40, 2 }
 0x841   :  { %v5876_v26 = vadd.f32 %v5875_v61, %v5874_v4 }
 0x842   :  { %v5892_v0 = vadd.f32 %v5891_v27, %v5890_v40  ;;  %v13707_v40 = vld [vmem:[#allocation40_spill] sm:$0xff] }
 0x843   :  { %v5877_v14 = vrot.slane %v5876_v26, 1 }
 0x844   :  { %v5893_v48 = vrot.slane %v5892_v0, 1 }
 0x845   :  { %v5878_v31 = vadd.f32 %v5877_v14, %v5876_v26  ;;  %v13710_v26 = vld [vmem:[#allocation45_spill] sm:$0xff] }
 0x846   :  { %v5894_v17 = vadd.f32 %v5893_v48, %v5892_v0  ;;  %v13708_v0 = vld [vmem:[#allocation55_spill] sm:$0xff] }
 0x848   :  { %8256 = vmatprep.mubr.msk.f32.mxu0 %vm13653_vm0, %v5894_v17  ;;  %vm13664_vm0 = vmpackc.low %vm13662_vm3, %vm13663_vm12  ;;  %vm13672_vm3 = vnez %v13572_v20  ;;  %v13698_v20 = vld [vmem:[#allocation47_spill] sm:$0xff]  ;;  %v13711_v17 = vld [vmem:[#allocation41_spill] sm:$0xff] }
 0x849   :  { %5963 = vmatmul.mubr.f32.vlgmr.msra.gmra.mrb[22].mxu0 %v5878_v31 }
 0x84a   :  { %8523 = vmatpush1.bf16.msk.msra.mxu0 %vm12429_vm13, %v13397_v32  ;;  %6284 = vmatprep.mubr.f32.mxu0 %v13420_v16 }
 0x84b   :  { %8525 = vmatprep.subr.msk.bf16.mxu0 %vm12423_vm6, %v13397_v32 }
 0x84e   :  { %8527 = vmatpush1.bf16.msk.msra.mxu0 %vm13654_vm4, %v13397_v32 }
 0x84f   :  { %8529 = vmatprep.subr.msk.bf16.mxu0 %vm13655_vm14, %v13397_v32  ;;  %vm13665_vm14 = vnez %v13560_v62 }
 0x850   :  { %vm13667_vm10 = vmpackc.low %vm13665_vm14, %vm13666_vm5  ;;  %vm13675_vm14 = vnez %v13576_v44  ;;  %v13699_v44 = vld [vmem:[#allocation57_spill] sm:$0xff] }
 0x91c   :  { %v5964_v48 = vpop.f32.mrb[22].mxu0 }
 0x91d   :  { %v5969_v52 = vmul.f32 0.0025510204, %v5964_v48  ;;  %v5966_v23 = vpop.f32.mrb[23].mxu0  ;;  %v13712_v48 = vld [vmem:[#allocation53_spill] sm:$0xff] }
 0x91e   :  { %v13713_v23 = vld [vmem:[#allocation60_spill] sm:$0xff] }
 0x91f   :  { %8265 = vmatmul.mubr.msk.f32.vlgmr.msra.gmra.mrb[44].mxu1 %vm5970_vm8, %v5969_v52 }
 0x920   :  { %8480 = vmatpush1.bf16.msk.msra.mxu1 %vm13658_vm15, %v13397_v32  ;;  %vm13668_vm15 = vnez %v13566_v15 }
 0x921   :  { %8481 = vmatprep.subr.bf16.mxu1 %v13539_v47  ;;  %vm13670_vm11 = vmpackc.low %vm13668_vm15, %vm13669_vm2  ;;  %vm13678_vm15 = vnez %v13584_v60  ;;  %v13700_v60 = vld [vmem:[#allocation54_spill] sm:$0xff] }
 0x924   :  { %8483 = vmatpush1.bf16.msk.msra.mxu1 %vm13661_vm7, %v13397_v32  ;;  %vm13671_vm7 = vnez %v13574_v9 }
 0x925   :  { %8484 = vmatprep.subr.bf16.mxu1 %v13539_v47  ;;  %vm13673_vm12 = vmpackc.low %vm13671_vm7, %vm13672_vm3  ;;  %vm13681_vm7 = vnez %v13588_v41 }
 0x928   :  { %8486 = vmatpush1.bf16.msk.msra.mxu1 %vm13664_vm0, %v13397_v32  ;;  %vm13674_vm0 = vnez %v13578_v63 }
 0x929   :  { %8487 = vmatprep.subr.bf16.mxu1 %v13539_v47  ;;  %vm13676_vm5 = vmpackc.low %vm13674_vm0, %vm13675_vm14  ;;  %vm13684_vm0 = vnez %v13594_v56 }
 0x92c   :  { %8489 = vmatpush1.bf16.msk.msra.mxu1 %vm13667_vm10, %v13397_v32  ;;  %vm13677_vm10 = vnez %v13586_v59 }
 0x92d   :  { %8490 = vmatprep.subr.bf16.mxu1 %v13539_v47  ;;  %vm13679_vm2 = vmpackc.low %vm13677_vm10, %vm13678_vm15  ;;  %vm13687_vm10 = vnez %v13600_v21 }
 0x930   :  { %8492 = vmatpush1.bf16.msk.msra.mxu1 %vm13670_vm11, %v13397_v32  ;;  %vm13680_vm11 = vnez %v13590_v45  ;;  %v13702_v45 = vld [vmem:[#allocation63_spill] sm:$0xff] }
 0x931   :  { %8493 = vmatprep.subr.bf16.mxu1 %v13539_v47  ;;  %vm13682_vm3 = vmpackc.low %vm13680_vm11, %vm13681_vm7  ;;  %vm13690_vm11 = vnez %v13608_v42 }
 0x934   :  { %8495 = vmatpush1.bf16.msk.msra.mxu1 %vm13673_vm12, %v13397_v32  ;;  %vm13683_vm12 = vnez %v13596_v57  ;;  %v13703_v57 = vld [vmem:[#allocation51_spill] sm:$0xff] }
 0x935   :  { %8496 = vmatprep.subr.bf16.mxu1 %v13539_v47  ;;  %vm13685_vm14 = vmpackc.low %vm13683_vm12, %vm13684_vm0  ;;  %vm13693_vm12 = vnez %v13613_v36 }
 0x938   :  { %8498 = vmatpush1.bf16.msk.msra.mxu1 %vm13676_vm5, %v13397_v32  ;;  %vm13686_vm5 = vnez %v13602_v22  ;;  %v13704_v22 = vld [vmem:[#allocation59_spill] sm:$0xff] }
 0x939   :  { %8499 = vmatprep.subr.bf16.mxu1 %v13539_v47  ;;  %vm13688_vm15 = vmpackc.low %vm13686_vm5, %vm13687_vm10  ;;  %vm13696_vm5 = vnez %v13619_v58 }
 0x93c   :  { %8501 = vmatpush1.bf16.msk.msra.mxu1 %vm13679_vm2, %v13397_v32  ;;  %vm13689_vm2 = vnez %v13610_v35  ;;  %v13705_v35 = vld [vmem:[#allocation56_spill] sm:$0xff] }
 0x93d   :  { %8502 = vmatprep.subr.bf16.mxu1 %v13539_v47  ;;  %vm13691_vm7 = vmpackc.low %vm13689_vm2, %vm13690_vm11 }
 0x940   :  { %8504 = vmatpush1.bf16.msk.msra.mxu1 %vm13682_vm3, %v13397_v32  ;;  %vm13692_vm3 = vnez %v13615_v39 }
 0x941   :  { %8505 = vmatprep.subr.bf16.mxu1 %v13539_v47  ;;  %vm13694_vm0 = vmpackc.low %vm13692_vm3, %vm13693_vm12  ;;  %vm6591_vm3 = vcmask 1041408  }
 0x944   :  { %8507 = vmatpush1.bf16.msk.msra.mxu1 %vm13685_vm14, %v13397_v32  ;;  %vm13695_vm14 = vnez %v13621_v19 }
 0x945   :  { %8508 = vmatprep.subr.bf16.mxu1 %v13539_v47  ;;  %vm13697_vm10 = vmpackc.low %vm13695_vm14, %vm13696_vm5 }
 0x948   :  { %8510 = vmatpush1.bf16.msk.msra.mxu1 %vm13688_vm15, %v13397_v32  ;;  %vm13716_vm15 = vcmask 785408  }
 0x949   :  { %8511 = vmatprep.subr.bf16.mxu1 %v13539_v47  ;;  %vm13717_vm2 = vmmov %vm13716_vm15 }
 0x94a   :  { %vm13718_vm11 = vmmov %vm13717_vm2 }
 0x94c   :  { %8513 = vmatpush1.bf16.msk.msra.mxu1 %vm13691_vm7, %v13397_v32  ;;  %vm13719_vm7 = vmmov %vm13717_vm2 }
 0x94d   :  { %8514 = vmatprep.subr.bf16.mxu1 %v13539_v47 }
 0x950   :  { %8516 = vmatpush1.bf16.msk.msra.mxu1 %vm13694_vm0, %v13397_v32 }
 0x951   :  { %8517 = vmatprep.subr.bf16.mxu1 %v13539_v47 }
 0x954   :  { %8519 = vmatpush1.bf16.msk.msra.mxu1 %vm13697_vm10, %v13397_v32 }
 0x955   :  { %8578 = vmatprep.subr.bf16.mxu1 %v13539_v47 }
 0x9f2   :  { %v6040_v25 = vpop.f32.mrb[44].mxu1 }
 0x9f3   :  { %v6048_v2 = vrot.slane %v6040_v25, %v10723_v10  ;;  %v6042_v29 = vpop.f32.mrb[45].mxu1 }
 0x9f4   :  { %v6052_v34 = vrot.slane %v6042_v29, %v10723_v10  ;;  %v13714_v29 = vld [vmem:[#allocation49_spill] sm:$0xff] }
 0x9f5   :  { %v12706_v53 = vsub.f32 %v12497_v30, %v6048_v2  ;;  %v12709_v13 = vsub.f32 %v12512_v3, %v6048_v2  ;;  %v12712_v46 = vsub.f32 %v12535_v8, %v6048_v2  ;;  %v12715_v62 = vsub.f32 %v12550_v11, %v6048_v2  ;;  %v13701_v8 = vld [vmem:[#allocation52_spill] sm:$0xff]  ;;  %v13706_v11 = vld [vmem:[#allocation50_spill] sm:$0xff] }
 0x9f6   :  { %v12718_v43 = vsub.f32 %v12506_v24, %v6052_v34  ;;  %v12721_v15 = vsub.f32 %v12521_v18, %v6052_v34  ;;  %v12724_v9 = vsub.f32 %v13698_v20, %v6052_v34  ;;  %v12727_v63 = vsub.f32 %v13699_v44, %v6052_v34  ;;  %v13715_v20 = vld [vmem:[#allocation42_spill] sm:$0xff] }
 0x9f7   :  { %v12730_v59 = vsub.f32 %v13700_v60, %v6052_v34  ;;  %v12733_v41 = vsub.f32 %v13701_v8, %v6052_v34  ;;  %v12736_v56 = vsub.f32 %v13702_v45, %v6052_v34  ;;  %v12739_v21 = vsub.f32 %v13703_v57, %v6052_v34 }
 0x9f8   :  { %v12742_v42 = vsub.f32 %v13704_v22, %v6052_v34  ;;  %v12745_v36 = vsub.f32 %v13705_v35, %v6052_v34  ;;  %v6074_v39 = vmul.f32 %v12718_v43, %v12718_v43  ;;  %v6076_v58 = vmul.f32 %v12721_v15, %v12721_v15 }
 0x9f9   :  { %v6078_v19 = vmul.f32 %v12724_v9, %v12724_v9  ;;  %v6080_v55 = vmul.f32 %v12727_v63, %v12727_v63  ;;  %v6082_v30 = vmul.f32 %v12730_v59, %v12730_v59  ;;  %v6084_v24 = vmul.f32 %v12733_v41, %v12733_v41 }
 0x9fa   :  { %v6086_v4 = vmul.f32 %v12736_v56, %v12736_v56  ;;  %v6088_v3 = vmul.f32 %v12739_v21, %v12739_v21  ;;  %v6090_v18 = vmul.f32 %v12742_v42, %v12742_v42  ;;  %v6092_v49 = vmul.f32 %v12745_v36, %v12745_v36 }
 0x9fb   :  { %v6094_v7 = vadd.f32 %v6084_v24, %v6074_v39  ;;  %v12768_v33 = vsub.f32 %v13706_v11, %v6048_v2  ;;  %v12771_v1 = vsub.f32 %v13707_v40, %v6048_v2  ;;  %v12774_v61 = vsub.f32 %v13708_v0, %v6048_v2 }
 0x9fc   :  { %v6096_v38 = vadd.f32 %v6086_v4, %v6076_v58  ;;  %v6098_v28 = vadd.f32 %v6088_v3, %v6078_v19  ;;  %v6100_v54 = vadd.f32 %v6090_v18, %v6080_v55  ;;  %v6102_v51 = vadd.f32 %v6092_v49, %v6082_v30 }
 0x9fd   :  { %v6104_v27 = vmul.f32 %v13709_v37, %v6094_v7  ;;  %v12778_v14 = vsub.f32 %v13710_v26, %v6048_v2  ;;  %v12781_v31 = vsub.f32 %v13711_v17, %v6048_v2  ;;  %v12784_v52 = vsub.f32 %v13712_v48, %v6048_v2 }
 0x9fe   :  { %v6106_v25 = vmul.f32 %v13713_v23, %v6096_v38  ;;  %v6108_v34 = vmul.f32 %v13714_v29, %v6098_v28  ;;  %v6110_v44 = vmul.f32 %v13715_v20, %v6100_v54  ;;  %v6112_v60 = vmul.f32 %v12576_v12, %v6102_v51 }
 0x9ff   :  { %v6124_v8 = vsel %vm13716_vm15, %v6104_v27, 0.0  ;;  %v6073_v45 = vmul.f32 %v12706_v53, %v12706_v53  ;;  %v6075_v2 = vmul.f32 %v12709_v13, %v12709_v13  ;;  %v6077_v35 = vmul.f32 %v12712_v46, %v12712_v46 }
 0xa00   :  { %v6125_v57 = vsel %vm13717_vm2, %v6106_v25, 0.0  ;;  %v6127_v22 = vsel %vm13718_vm11, %v6108_v34, 0.0  ;;  %v6079_v58 = vmul.f32 %v12715_v62, %v12715_v62  ;;  %v6081_v19 = vmul.f32 %v12768_v33, %v12768_v33 }
 0xa01   :  { %v6126_v39 = vadd.f32 %v6125_v57, %v6124_v8  ;;  %v6083_v55 = vmul.f32 %v12771_v1, %v12771_v1  ;;  %v6085_v30 = vmul.f32 %v12774_v61, %v12774_v61  ;;  %v6087_v24 = vmul.f32 %v12778_v14, %v12778_v14 }
 0xa02   :  { %v6089_v4 = vmul.f32 %v12781_v31, %v12781_v31  ;;  %v6091_v3 = vmul.f32 %v12784_v52, %v12784_v52  ;;  %v6129_v7 = vsel %vm13719_vm7, %v6110_v44, 0.0  ;;  %v6131_v54 = vsel %vm5886_vm9, %v6112_v60, 0.0  ;;  %vm13720_vm9 = vmmov %vm13717_vm2 }
 0xa03   :  { %v6128_v18 = vadd.f32 %v6127_v22, %v6126_v39  ;;  %v6093_v49 = vadd.f32 %v6083_v55, %v6073_v45  ;;  %v6095_v11 = vadd.f32 %v6085_v30, %v6075_v2  ;;  %v6097_v40 = vadd.f32 %v6087_v24, %v6077_v35 }
 0xa04   :  { %v6101_v38 = vadd.f32 %v6091_v3, %v6081_v19  ;;  %v6099_v51 = vadd.f32 %v6089_v4, %v6079_v58  ;;  %v6213_v3 = vld [vmem:[%s13118_s7] sm:$0x1] }
 0xa05   :  { %v6130_v0 = vadd.f32 %v6129_v7, %v6128_v18  ;;  %v6103_v28 = vmul.f32 %v13709_v37, %v6093_v49  ;;  %v6105_v27 = vmul.f32 %v13713_v23, %v6095_v11  ;;  %v6107_v17 = vmul.f32 %v13714_v29, %v6097_v40  ;;  %v6291_v7 = vld [vmem:[%s13119_s8] sm:$0x1]  ;;  %v6672_v40 = vld [vmem:[#allocation2 + $0x8] sm:$0xff] }
 0xa06   :  { %v6111_v34 = vmul.f32 %v12576_v12, %v6101_v38  ;;  %v6109_v44 = vmul.f32 %v13715_v20, %v6099_v51  ;;  %v13721_v11 = vmov 0   ;;  %v6673_v38 = vld [vmem:[#allocation2 + $0x10] sm:$0xff] }
 0xa07   :  { %v6132_v26 = vadd.f32 %v6131_v54, %v6130_v0  ;;  %v6113_v48 = vadd.f32 %v6105_v27, %v6103_v28  ;;  %v8579_v0 = vpack.c.bf16 %v6672_v40, %v6671_v50  ;;  %v6674_v28 = vld [vmem:[#allocation2 + $0x18] sm:$0xff]  ;;  %v6677_v51 = vld [vmem:[#allocation2 + $0x30] sm:$0xff] }
 0xa08   :  { %v6116_v37 = vsel %vm5870_vm1, %v6111_v34, 0.0  ;;  %v8582_v6 = vpack.c.bf16 %v6674_v28, %v6673_v38  ;;  %v6678_v27 = vld [vmem:[#allocation2 + $0x38] sm:$0xff]  ;;  %v6681_v34 = vld [vmem:[#allocation2 + $0x50] sm:$0xff] }
 0xa09   :  { %v6133_v25 = vrot.slane %v6132_v26, 4  ;;  %v6114_v8 = vadd.f32 %v6113_v48, %v6107_v17  ;;  %v6679_v17 = vld [vmem:[#allocation2 + $0x40] sm:$0xff]  ;;  %v6680_v48 = vld [vmem:[#allocation2 + $0x48] sm:$0xff] }
 0xa0b   :  { %v6134_v45 = vadd.f32 %v6133_v25, %v6132_v26  ;;  %v6115_v57 = vadd.f32 %v6114_v8, %v6109_v44  ;;  %v8588_v26 = vpack.c.bf16 %v6678_v27, %v6677_v51  ;;  %v8591_v25 = vpack.c.bf16 %v6680_v48, %v6679_v17  ;;  %v6682_v44 = vld [vmem:[#allocation2 + $0x58] sm:$0xff] }
 0xa0c   :  { %v8594_v8 = vpack.c.bf16 %v6682_v44, %v6681_v34  ;;  %v13724_v48 = vld [vmem:[#allocation11_spill] sm:$0xff]  ;;  %v13725_v34 = vld [vmem:[#allocation12_spill] sm:$0xff] }
 0xa0d   :  { %v6135_v22 = vrot.slane %v6134_v45, 2  ;;  %v6117_v2 = vadd.f32 %v6116_v37, %v6115_v57  ;;  %v6684_v57 = vld [vmem:[#allocation2 + $0x68] sm:$0xff]  ;;  %v6685_v37 = vld [vmem:[#allocation2 + $0x70] sm:$0xff]  ;;  %v6499_v44 = vand.u32 7, %v13725_v34 }
 0xa0f   :  { %v6136_v60 = vadd.f32 %v6135_v22, %v6134_v45  ;;  %v6118_v35 = vrot.slane %v6117_v2, 4  ;;  %v6683_v45 = vld [vmem:[#allocation2 + $0x60] sm:$0xff] }
 0xa10   :  { %v8597_v22 = vpack.c.bf16 %v6684_v57, %v6683_v45 }
 0xa11   :  { %v6137_v39 = vrot.slane %v6136_v60, 1  ;;  %v6119_v23 = vadd.f32 %v6118_v35, %v6117_v2  ;;  %v6686_v2 = vld [vmem:[#allocation2 + $0x78] sm:$0xff]  ;;  %v6687_v35 = vld [vmem:[#allocation2 + $0x80] sm:$0xff] }
 0xa13   :  { %v6138_v58 = vadd.f32 %v6137_v39, %v6136_v60  ;;  %v6120_v19 = vrot.slane %v6119_v23, 2  ;;  %v8600_v60 = vpack.c.bf16 %v6686_v2, %v6685_v37  ;;  %v6688_v39 = vld [vmem:[#allocation2 + $0x88] sm:$0xff]  ;;  %v6520_v37 = vshra.s32 %v13725_v34, 3 }
 0xa15   :  { %8294 = vmatprep.mubr.msk.f32.mxu1 %vm13720_vm9, %v6138_v58  ;;  %v6121_v29 = vadd.f32 %v6120_v19, %v6119_v23  ;;  %v8603_v23 = vpack.c.bf16 %v6688_v39, %v6687_v35  ;;  %v6689_v58 = vld [vmem:[#allocation2 + $0x90] sm:$0xff]  ;;  %v6690_v19 = vld [vmem:[#allocation2 + $0x98] sm:$0xff]  ;;  %v12880_v39 = vmul.u32 18, %v6499_v44 }
 0xa17   :  { %v6122_v55 = vrot.slane %v6121_v29, 1 }
 0xa19   :  { %v6123_v12 = vadd.f32 %v6122_v55, %v6121_v29  ;;  %v8606_v29 = vpack.c.bf16 %v6690_v19, %v6689_v58  ;;  %v6691_v55 = vld [vmem:[#allocation2 + $0xa0] sm:$0xff] }
 0xa1b   :  { %6207 = vmatmul.mubr.f32.vlgmr.msra.gmra.mrb[46].mxu1 %v6123_v12  ;;  %v6692_v12 = vld [vmem:[#allocation2 + $0xa8] sm:$0xff] }
 0xa1c   :  { %8580 = vmatpush1.bf16.msra.mxu1 %v8579_v0  ;;  %v13723_v0 = vld [vmem:[#allocation10_spill] sm:$0xff] }
 0xa1d   :  { %8581 = vmatprep.subr.bf16.mxu1 %v13539_v47  ;;  %v6497_v38 = vand.u32 7, %v13723_v0 }
 0xa1f   :  { %vm6504_vm10 = vcmp.lt.s32.totalorder %v6497_v38, 2 }
 0xa20   :  { %8583 = vmatpush1.bf16.msra.mxu1 %v8582_v6  ;;  %v6518_v6 = vshra.s32 %v13723_v0, 3 }
 0xa21   :  { %8584 = vmatprep.subr.bf16.mxu1 %v13539_v47 }
 0xa22   :  { %v6525_v51 = vshll.u32 %v6518_v6, 1 }
 0xaee   :  { %v6208_v20 = vpop.f32.mrb[46].mxu1 }
 0xaef   :  { %v6212_v30 = vmul.f32 0.0025510204, %v6208_v20  ;;  %v6210_v24 = vpop.f32.mrb[47].mxu1  ;;  %v8609_v20 = vpack.c.bf16 %v6692_v12, %v6691_v55 }
 0xaf0   :  { %v6694_v24 = vld [vmem:[#allocation2 + $0xb8] sm:$0xff] }
 0xaf1   :  { %v6214_v4 = vadd.f32 1e-05, %v6212_v30  ;;  %v6693_v30 = vld [vmem:[#allocation2 + $0xb0] sm:$0xff] }
 0xaf3   :  { %9564 = vrsqrt.f32 %v6214_v4  ;;  %v8612_v4 = vpack.c.bf16 %v6694_v24, %v6693_v30 }
 0xafd   :  { %v9565_v18 = vpop.eup %9564 }
 0xafe   :  { %v6216_v49 = vmul.f32 %v9565_v18, %v6213_v3  ;;  %v6695_v3 = vld [vmem:[#allocation2 + $0xc0] sm:$0xff]  ;;  %v6696_v18 = vld [vmem:[#allocation2 + $0xc8] sm:$0xff] }
 0xb00   :  { %8303 = vmatmul.mubr.msk.f32.vlgmr.msra.gmra.mrb[48].mxu0 %vm5970_vm8, %v6216_v49  ;;  %v8615_v49 = vpack.c.bf16 %v6696_v18, %v6695_v3 }
 0xb01   :  { %8531 = vmatpush1.bf16.msk.msra.mxu0 %vm12429_vm13, %v13397_v32  ;;  %6359 = vmatprep.mubr.f32.mxu0 %v13420_v16  ;;  %vm13726_vm13 = vcmask 1046528  }
 0xb02   :  { %8533 = vmatprep.subr.msk.bf16.mxu0 %vm12423_vm6, %v13397_v32  ;;  %vm6590_vm6 = vcmask 1040384   ;;  %vm13727_vm1 = vmmov %vm13726_vm13 }
 0xb03   :  { %vm13730_vm12 = vmmov %vm13727_vm1 }
 0xb04   :  { %vm13731_vm0 = vmmov %vm13727_vm1 }
 0xb05   :  { %8535 = vmatpush1.bf16.msk.msra.mxu0 %vm13654_vm4, %v13397_v32  ;;  %v6675_v32 = vld [vmem:[#allocation2 + $0x20] sm:$0xff]  ;;  %vm13728_vm4 = vmmov %vm13727_vm1 }
 0xb06   :  { %v8585_v54 = vpack.c.bf16 %v6676_v5, %v6675_v32  ;;  %vm13738_vm2 = vmmov %vm13731_vm0 }
 0xb07   :  { %vm13739_vm11 = vmmov %vm13731_vm0 }
 0xb08   :  { %8312 = vmatmul.mubr.msk.f32.vlgmr.msra.gmra.mrb[50].mxu0 %vm5970_vm8, %v6291_v7  ;;  %8586 = vmatpush1.bf16.msra.mxu1 %v8585_v54  ;;  %v13722_v7 = vld [vmem:[#allocation8_spill] sm:$0xff]  ;;  %v6511_v54 = vmul.u32 18, %v6497_v38  ;;  %vm13729_vm8 = vmmov %vm13727_vm1 }
 0xb09   :  { %6632 = vmatprep.mubr.bf16.mxu0 %v13721_v11  ;;  %8587 = vmatprep.subr.bf16.mxu1 %v13539_v47  ;;  %v6496_v50 = vand.u32 7, %v13722_v7  ;;  %v6517_v40 = vshra.s32 %v13722_v7, 3  ;;  %v13737_v7 = vld [vmem:[#allocation14_spill] sm:$0xff] }
 0xb0a   :  { %v12866_v45 = vadd.s32 %v6525_v51, %v6511_v54 }
 0xb0b   :  { %v6510_v28 = vmul.u32 18, %v6496_v50  ;;  %v6524_v32 = vshll.u32 %v6517_v40, 1  ;;  %vm12920_vm14 = vcmp.lt.s32.totalorder %v6496_v50, 2  ;;  %v6501_v50 = vand.u32 7, %v13737_v7 }
 0xb0c   :  { %8589 = vmatpush1.bf16.msra.mxu1 %v8588_v26 }
 0xb0d   :  { %8590 = vmatprep.subr.bf16.mxu1 %v13539_v47  ;;  %v6531_v27 = vadd.s32 %v6524_v32, %v6510_v28 }
 0xb0f   :  { %v12868_v57 = vadd.s32 2, %v6531_v27 }
 0xb10   :  { %8592 = vmatpush1.bf16.msra.mxu1 %v8591_v25  ;;  %v6498_v25 = vand.u32 7, %v13724_v48 }
 0xb11   :  { %8593 = vmatprep.subr.bf16.mxu1 %v13539_v47 }
 0xb12   :  { %v12876_v35 = vmul.u32 18, %v6498_v25 }
 0xb14   :  { %8595 = vmatpush1.bf16.msra.mxu1 %v8594_v8 }
 0xb15   :  { %8596 = vmatprep.subr.bf16.mxu1 %v13539_v47 }
 0xb18   :  { %8598 = vmatpush1.bf16.msra.mxu1 %v8597_v22  ;;  %v6519_v22 = vshra.s32 %v13724_v48, 3 }
 0xb19   :  { %8599 = vmatprep.subr.bf16.mxu1 %v13539_v47 }
 0xb1c   :  { %8601 = vmatpush1.bf16.msra.mxu1 %v8600_v60 }
 0xb1d   :  { %8602 = vmatprep.subr.bf16.mxu1 %v13539_v47 }
 0xb20   :  { %8604 = vmatpush1.bf16.msra.mxu1 %v8603_v23 }
 0xb21   :  { %8605 = vmatprep.subr.bf16.mxu1 %v13539_v47 }
 0xb24   :  { %8607 = vmatpush1.bf16.msra.mxu1 %v8606_v29 }
 0xb25   :  { %8608 = vmatprep.subr.bf16.mxu1 %v13539_v47 }
 0xb28   :  { %8610 = vmatpush1.bf16.msra.mxu1 %v8609_v20 }
 0xb29   :  { %8611 = vmatprep.subr.bf16.mxu1 %v13539_v47 }
 0xb2c   :  { %8613 = vmatpush1.bf16.msra.mxu1 %v8612_v4 }
 0xb2d   :  { %8614 = vmatprep.subr.bf16.mxu1 %v13539_v47 }
 0xb30   :  { %8616 = vmatpush1.bf16.msra.mxu1 %v8615_v49 }
 0xb31   :  { %8617 = vmatprep.subr.bf16.mxu1 %v13539_v47 }
 0xbd3   :  { %v6286_v5 = vpop.f32.mrb[48].mxu0 }
 0xbd4   :  { %v6369_v26 = vrot.slane %v6286_v5, %v10723_v10  ;;  %v6288_v17 = vpop.f32.mrb[49].mxu0 }
 0xbd5   :  { %v6373_v8 = vrot.slane %v6288_v17, %v10723_v10 }
 0xbd6   :  { %v6374_v2 = vmul.f32 %v6369_v26, %v12706_v53  ;;  %v6376_v60 = vmul.f32 %v6369_v26, %v12709_v13  ;;  %v6378_v19 = vmul.f32 %v6369_v26, %v12712_v46  ;;  %v6402_v29 = vmul.f32 %v6369_v26, %v12771_v1 }
 0xbd7   :  { %v6375_v23 = vmul.f32 %v6373_v8, %v12718_v43  ;;  %v6377_v58 = vmul.f32 %v6373_v8, %v12721_v15  ;;  %v6379_v53 = vmul.f32 %v6373_v8, %v12724_v9  ;;  %v6403_v13 = vmul.f32 %v6373_v8, %v12733_v41 }
 0xbd8   :  { %v6405_v55 = vmul.f32 %v6373_v8, %v12736_v56  ;;  %v6407_v12 = vmul.f32 %v6373_v8, %v12739_v21  ;;  %v6404_v30 = vmul.f32 %v6369_v26, %v12774_v61  ;;  %v6406_v24 = vmul.f32 %v6369_v26, %v12778_v14 }
 0xbd9   :  { %v6381_v43 = vmul.f32 %v6373_v8, %v12727_v63  ;;  %v6383_v15 = vmul.f32 %v6373_v8, %v12730_v59  ;;  %v6409_v9 = vmul.f32 %v6373_v8, %v12742_v42  ;;  %v6411_v41 = vmul.f32 %v6373_v8, %v12745_v36 }
 0xbda   :  { %v6380_v56 = vmul.f32 %v6369_v26, %v12715_v62  ;;  %v6382_v4 = vmul.f32 %v6369_v26, %v12768_v33  ;;  %v6408_v61 = vmul.f32 %v6369_v26, %v12781_v31  ;;  %v6410_v14 = vmul.f32 %v6369_v26, %v12784_v52 }
 0xbdb   :  { %v6361_v20 = vpop.f32.mrb[50].mxu0 }
 0xbdc   :  { %v6387_v46 = vrot.slane %v6361_v20, %v10723_v10  ;;  %v6363_v1 = vpop.f32.mrb[51].mxu0 }
 0xbdd   :  { %v6391_v21 = vrot.slane %v6363_v1, %v10723_v10 }
 0xbde   :  { %v6392_v63 = vadd.f32 %v6387_v46, %v6374_v2  ;;  %v6394_v3 = vadd.f32 %v6387_v46, %v6376_v60  ;;  %v6396_v59 = vadd.f32 %v6387_v46, %v6378_v19  ;;  %v6412_v18 = vadd.f32 %v6402_v29, %v6387_v46 }
 0xbdf   :  { %v6393_v49 = vadd.f32 %v6391_v21, %v6375_v23  ;;  %v6395_v40 = vadd.f32 %v6391_v21, %v6377_v58  ;;  %v6397_v28 = vadd.f32 %v6391_v21, %v6379_v53  ;;  %v6413_v42 = vadd.f32 %v6403_v13, %v6391_v21 }
 0xbe0   :  { %v6415_v6 = vadd.f32 %v6405_v55, %v6391_v21  ;;  %v6417_v36 = vadd.f32 %v6407_v12, %v6391_v21  ;;  %v6414_v32 = vadd.f32 %v6404_v30, %v6387_v46  ;;  %v6416_v62 = vadd.f32 %v6406_v24, %v6387_v46 }
 0xbe1   :  { %v6423_v5 = vmax.f32 %v6393_v49, %v6413_v42  ;;  %v6422_v10 = vmax.f32 %v6392_v63, %v6412_v18  ;;  %v6399_v54 = vadd.f32 %v6391_v21, %v6381_v43  ;;  %v6401_v33 = vadd.f32 %v6391_v21, %v6383_v15 }
 0xbe2   :  { %v6425_v51 = vmax.f32 %v6395_v40, %v6415_v6  ;;  %v6427_v31 = vmax.f32 %v6397_v28, %v6417_v36  ;;  %v6424_v27 = vmax.f32 %v6394_v3, %v6414_v32  ;;  %v6426_v52 = vmax.f32 %v6396_v59, %v6416_v62 }
 0xbe3   :  { %v6433_v26 = vmax.f32 %v6423_v5, 0.0  ;;  %v6432_v17 = vmax.f32 %v6422_v10, 0.0  ;;  %v6419_v8 = vadd.f32 %v6409_v9, %v6391_v21  ;;  %v6421_v2 = vadd.f32 %v6411_v41, %v6391_v21 }
 0xbe4   :  { %v6435_v60 = vmax.f32 %v6425_v51, 0.0  ;;  %v6437_v23 = vmax.f32 %v6427_v31, 0.0  ;;  %v6434_v58 = vmax.f32 %v6424_v27, 0.0  ;;  %v12902_v19 = vmax.f32 %v6426_v52, 0.0 }
 0xbe5   :  { %v6455_v29 = vrot.slane %v6433_v26, 1  ;;  %v6452_v53 = vrot.slane %v6432_v17, 1  ;;  %v6429_v13 = vmax.f32 %v6399_v54, %v6419_v8  ;;  %v6431_v55 = vmax.f32 %v6401_v33, %v6421_v2 }
 0xbe6   :  { %v6456_v12 = vrot.slane %v6435_v60, 1  ;;  %v6460_v20 = vrot.slane %v6437_v23, 1  ;;  %v6453_v30 = vrot.slane %v6434_v58, 1  ;;  %v6458_v24 = vrot.slane %v12902_v19, 1 }
 0xbe7   :  { %v6439_v43 = vmax.f32 %v6429_v13, 0.0  ;;  %v6441_v15 = vmax.f32 %v6431_v55, 0.0  ;;  %v6398_v1 = vadd.f32 %v6387_v46, %v6380_v56  ;;  %v6400_v63 = vadd.f32 %v6387_v46, %v6382_v4 }
 0xbe8   :  { %v6457_v9 = vsel %vm13726_vm13, %v6455_v29, %v6456_v12  ;;  %v6461_v41 = vsel %vm13727_vm1, %v6456_v12, %v6460_v20  ;;  %v6454_v21 = vsel %vm13728_vm4, %v6452_v53, %v6453_v30  ;;  %v6459_v3 = vsel %vm13729_vm8, %v6453_v30, %v6458_v24 }
 0xbe9   :  { %v6481_v59 = vmax.f32 %v6433_v26, %v6457_v9  ;;  %v6483_v18 = vmax.f32 %v6435_v60, %v6461_v41  ;;  %v6480_v49 = vmax.f32 %v6432_v17, %v6454_v21  ;;  %v6482_v40 = vmax.f32 %v6434_v58, %v6459_v3  ;;  %v13735_v17 = vld [vmem:[#allocation9_spill] sm:$0xff] }
 0xbea   :  { %v6464_v28 = vrot.slane %v6439_v43, 1  ;;  %v6468_v42 = vrot.slane %v6441_v15, 1  ;;  %v6418_v6 = vadd.f32 %v6408_v61, %v6387_v46  ;;  %v6420_v36 = vadd.f32 %v6410_v14, %v6387_v46 }
 0xbeb   :  { %v6491_v32 = vpack.c.bf16 %v6483_v18, %v6481_v59  ;;  %v6490_v56 = vpack.c.bf16 %v6482_v40, %v6480_v49  ;;  %v6526_v4 = vshll.u32 %v6519_v22, 1  ;;  %v6527_v62 = vshll.u32 %v6520_v37, 1  ;;  %v6699_v18 = vld [vmem:[#allocation2 + $0xe0] sm:$0xff]  ;;  %v6700_v49 = vld [vmem:[#allocation2 + $0xe8] sm:$0xff] }
 0xbec   :  { %v6465_v5 = vsel %vm13730_vm12, %v6460_v20, %v6464_v28  ;;  %v6469_v10 = vsel %vm13731_vm0, %v6464_v28, %v6468_v42  ;;  %v6428_v54 = vmax.f32 %v6398_v1, %v6418_v6  ;;  %v6430_v33 = vmax.f32 %v6400_v63, %v6420_v36  ;;  %v6701_v36 = vld [vmem:[#allocation2 + $0xf0] sm:$0xff] }
 0xbed   :  { %6600 = vmatprep.subr.bf16.mxu0 %v6491_v32  ;;  %v6485_v51 = vmax.f32 %v6437_v23, %v6465_v5  ;;  %v6487_v31 = vmax.f32 %v6439_v43, %v6469_v10  ;;  %v13732_v27 = vmov 65535   ;;  %v6539_v61 = vadd.s32 2, %v12866_v45  ;;  %v13736_v23 = vld [vmem:[#allocation13_spill] sm:$0xff]  ;;  %v6702_v32 = vld [vmem:[#allocation2 + $0xf8] sm:$0xff] }
 0xbee   :  { %v6592_v46 = vsel %vm6590_vm6, 4294967295, %v13732_v27  ;;  %6601 = vmatpush1.bf16.msra.mxu0 %v6490_v56  ;;  %v6438_v14 = vmax.f32 %v6428_v54, 0.0  ;;  %v6440_v22 = vmax.f32 %v6430_v33, 0.0  ;;  %v6489_v52 = vmax.f32 %v6441_v15, %v6468_v42  ;;  %v6703_v33 = vld [vmem:[#allocation2 + $0x100] sm:$0xff] }
 0xbef   :  { %v6493_v26 = vpack.c.bf16 %v6487_v31, %v6485_v51  ;;  %vm6545_vm5 = vcmp.eq.s32.totalorder %v13735_v17, %v12868_v57  ;;  %v6533_v8 = vadd.s32 %v6526_v4, %v12876_v35  ;;  %v6534_v2 = vadd.s32 %v6527_v62, %v12880_v39  ;;  %v6704_v51 = vld [vmem:[#allocation2 + $0x108] sm:$0xff]  ;;  %v6698_v57 = vld [vmem:[#allocation2 + $0xd8] sm:$0xff] }
 0xbf0   :  { %v6462_v60 = vrot.slane %v6438_v14, 1  ;;  %v6466_v45 = vrot.slane %v6440_v22, 1  ;;  %v6500_v58 = vand.u32 7, %v13736_v23  ;;  %v6521_v29 = vshra.s32 %v13736_v23, 3  ;;  %vm6552_vm7 = vmand %vm12920_vm14, %vm6545_vm5  ;;  %v6709_v23 = vld [vmem:[#allocation2 + $0x130] sm:$0xff] }
 0xbf1   :  { %6602 = vmatprep.subr.bf16.mxu0 %v6493_v26  ;;  %vm6546_vm15 = vcmp.eq.s32.totalorder %v13735_v17, %v6539_v61  ;;  %v6522_v53 = vshra.s32 %v13737_v7, 3  ;;  %v6495_v55 = vpack.c.bf16 %v6489_v52, %v6489_v52  ;;  %v6593_v30 = vsel %vm6591_vm3, %v6592_v46, 0  ;;  %v6705_v61 = vld [vmem:[#allocation2 + $0x110] sm:$0xff] }
 0xbf2   :  { %v6463_v35 = vsel %vm13738_vm2, %v6458_v24, %v6462_v60  ;;  %v6467_v39 = vsel %vm13739_vm11, %v6462_v60, %v6466_v45  ;;  %v6488_v13 = vmax.f32 %v6440_v22, %v6466_v45  ;;  %vm6553_vm9 = vmand %vm6504_vm10, %vm6546_vm15  ;;  %v6540_v0 = vadd.s32 2, %v6533_v8  ;;  %v6707_v8 = vld [vmem:[#allocation2 + $0x120] sm:$0xff] }
 0xbf3   :  { %v6484_v12 = vmax.f32 %v12902_v19, %v6463_v35  ;;  %v6486_v20 = vmax.f32 %v6438_v14, %v6467_v39  ;;  %v6541_v38 = vadd.s32 2, %v6534_v2  ;;  %v6514_v43 = vmul.u32 18, %v6500_v58  ;;  %v6706_v14 = vld [vmem:[#allocation2 + $0x118] sm:$0xff]  ;;  %v6708_v2 = vld [vmem:[#allocation2 + $0x128] sm:$0xff]  ;;  %v6713_v39 = vld [vmem:[#allocation2 + $0x150] sm:$0xff] }
 0xbf4   :  { %v6528_v24 = vshll.u32 %v6521_v29, 1  ;;  %v6494_v1 = vpack.c.bf16 %v6488_v13, %v6488_v13  ;;  %v6515_v63 = vmul.u32 18, %v6501_v50  ;;  %v6529_v9 = vshll.u32 %v6522_v53, 1  ;;  %v6714_v13 = vld [vmem:[#allocation2 + $0x158] sm:$0xff] }
 0xbf5   :  { %v6492_v15 = vpack.c.bf16 %v6486_v20, %v6484_v12  ;;  %v6598_v41 = vand.u32 %v6593_v30, %v6495_v55  ;;  %v8313_v19 = vsel %vm6552_vm7, 1.0, %v13420_v16  ;;  %v8314_v21 = vsel %vm6553_vm9, 1.0, %v13420_v16  ;;  %v6717_v20 = vld [vmem:[#allocation2 + $0x170] sm:$0xff] }
 0xbf6   :  { %vm12948_vm6 = vcmp.lt.s32.totalorder %v6498_v25, 2  ;;  %vm12954_vm13 = vcmp.lt.s32.totalorder %v6499_v44, 2  ;;  %vm6547_vm1 = vcmp.eq.s32.totalorder %v13735_v17, %v6540_v0  ;;  %vm6548_vm4 = vcmp.eq.s32.totalorder %v13735_v17, %v6541_v38  ;;  %v13744_v25 = vld [vmem:[#allocation15_spill] sm:$0xff] }
 0xbf7   :  { %6603 = vmatpush1.bf16.msra.mxu0 %v6492_v15  ;;  %v6535_v59 = vadd.s32 %v6528_v24, %v6514_v43  ;;  %v6595_v40 = vand.u32 %v6593_v30, %v6494_v1  ;;  %v6536_v48 = vadd.s32 %v6529_v9, %v6515_v63  ;;  %v6502_v28 = vand.u32 7, %v13744_v25  ;;  %vm6554_vm3 = vmand %vm12948_vm6, %vm6547_vm1  ;;  %v6718_v30 = vld [vmem:[#allocation2 + $0x178] sm:$0xff]  ;;  %v6719_v38 = vld [vmem:[#allocation2 + $0x180] sm:$0xff] }
 0xbf8   :  { %6604 = vmatprep.subr.bf16.mxu0 %v6598_v41  ;;  %v6523_v42 = vshra.s32 %v13744_v25, 3  ;;  %v6573_v6 = vpack.c.bf16 %v8314_v21, %v8313_v19  ;;  %vm6577_vm8 = vcmask 285696   ;;  %v8537_v34 = vpack.c.bf16 %v6700_v49, %v6699_v18  ;;  %vm6555_vm12 = vmand %vm12954_vm13, %vm6548_vm4  ;;  %v6720_v43 = vld [vmem:[#allocation2 + $0x188] sm:$0xff]  ;;  %v6721_v15 = vld [vmem:[#allocation2 + $0x190] sm:$0xff] }
 0xbf9   :  { %v6542_v44 = vadd.s32 2, %v6535_v59  ;;  %v6543_v56 = vadd.s32 2, %v6536_v48  ;;  %v6516_v4 = vmul.u32 18, %v6502_v28  ;;  %v8315_v5 = vsel %vm6554_vm3, 1.0, %v13420_v16  ;;  %v6722_v1 = vld [vmem:[#allocation2 + $0x198] sm:$0xff]  ;;  %v6723_v9 = vld [vmem:[#allocation2 + $0x1a0] sm:$0xff] }
 0xbfa   :  { %v6530_v62 = vshll.u32 %v6523_v42, 1  ;;  %v8316_v10 = vsel %vm6555_vm12, 1.0, %v13420_v16  ;;  %v8540_v54 = vpack.c.bf16 %v6702_v32, %v6701_v36  ;;  %vm6507_vm0 = vcmp.lt.s32.totalorder %v6500_v58, 2  ;;  %v6710_v58 = vld [vmem:[#allocation2 + $0x138] sm:$0xff]  ;;  %v6724_v41 = vld [vmem:[#allocation2 + $0x1a8] sm:$0xff]  ;;  %v6697_v21 = vld [vmem:[#allocation2 + $0xd0] sm:$0xff] }
 0xbfb   :  { %6605 = vmatpush1.bf16.msra.mxu0 %v6595_v40  ;;  %vm6549_vm14 = vcmp.eq.s32.totalorder %v13735_v17, %v6542_v44  ;;  %vm6508_vm5 = vcmp.lt.s32.totalorder %v6501_v50, 2  ;;  %vm6550_vm10 = vcmp.eq.s32.totalorder %v13735_v17, %v6543_v56  ;;  %v6574_v27 = vpack.c.bf16 %v8316_v10, %v8315_v5  ;;  %v6711_v50 = vld [vmem:[#allocation2 + $0x140] sm:$0xff]  ;;  %v6725_v59 = vld [vmem:[#allocation2 + $0x1b0] sm:$0xff]  ;;  %v6726_v18 = vld [vmem:[#allocation2 + $0x1b8] sm:$0xff] }
 0xbfc   :  { %8536 = vmatprep.subr.bf16.mxu0 %v13539_v47  ;;  %v6537_v31 = vadd.s32 %v6530_v62, %v6516_v4  ;;  %vm6556_vm15 = vmand %vm6507_vm0, %vm6549_vm14  ;;  %v8543_v46 = vpack.c.bf16 %v6704_v51, %v6703_v33  ;;  %v8546_v26 = vpack.c.bf16 %v6706_v14, %v6705_v61  ;;  %vm6509_vm11 = vcmp.lt.s32.totalorder %v6502_v28, 2  ;;  %v6975_v40 = vld [vmem:[#allocation2 + $0x2a0] sm:$0xff]  ;;  %v6976_v48 = vld [vmem:[#allocation2 + $0x2a8] sm:$0xff] }
 0xbfd   :  { %vm6557_vm2 = vmand %vm6508_vm5, %vm6550_vm10  ;;  %v8317_v52 = vsel %vm6556_vm15, 1.0, %v13420_v16  ;;  %v8549_v45 = vpack.c.bf16 %v6708_v2, %v6707_v8  ;;  %v8552_v7 = vpack.c.bf16 %v6710_v58, %v6709_v23  ;;  %v8558_v55 = vpack.c.bf16 %v6714_v13, %v6713_v39  ;;  %v6873_v25 = vld [vmem:[#allocation2 + $0x1c0] sm:$0xff]  ;;  %v6874_v28 = vld [vmem:[#allocation2 + $0x1c8] sm:$0xff] }
 0xbfe   :  { %8320 = vmatmul.mubr.msk.bf16.vlgmr.msra.gmra.mrb[52].mxu0 %vm6577_vm8, %v6573_v6  ;;  %v6544_v22 = vadd.s32 2, %v6537_v31  ;;  %v8318_v37 = vsel %vm6557_vm2, 1.0, %v13420_v16  ;;  %v8564_v0 = vpack.c.bf16 %v6718_v30, %v6717_v20  ;;  %v8567_v24 = vpack.c.bf16 %v6720_v43, %v6719_v38  ;;  %v6977_v44 = vld [vmem:[#allocation2 + $0x2b0] sm:$0xff]  ;;  %v6978_v36 = vld [vmem:[#allocation2 + $0x2b8] sm:$0xff]  ;;  %v6980_v33 = vld [vmem:[#allocation2 + $0x2c8] sm:$0xff] }
 0xbff   :  { %6642 = vmatprep.mubr.bf16.mxu0 %v13721_v11  ;;  %8538 = vmatpush1.bf16.msra.mxu0 %v8537_v34  ;;  %v6575_v60 = vpack.c.bf16 %v8318_v37, %v8317_v52  ;;  %v8570_v63 = vpack.c.bf16 %v6722_v1, %v6721_v15  ;;  %v8573_v19 = vpack.c.bf16 %v6724_v41, %v6723_v9  ;;  %vm13745_vm6 = vcmask 785408   ;;  %v6875_v62 = vld [vmem:[#allocation2 + $0x1d0] sm:$0xff]  ;;  %v6876_v5 = vld [vmem:[#allocation2 + $0x1d8] sm:$0xff]  ;;  %v6877_v31 = vld [vmem:[#allocation2 + $0x1e0] sm:$0xff] }
 0xc00   :  { %8539 = vmatprep.subr.bf16.mxu0 %v13539_v47  ;;  %vm6551_vm7 = vcmp.eq.s32.totalorder %v13735_v17, %v6544_v22  ;;  %v6712_v17 = vld [vmem:[#allocation2 + $0x148] sm:$0xff]  ;;  %v8618_v3 = vpack.c.bf16 %v6698_v57, %v6697_v21  ;;  %v8576_v49 = vpack.c.bf16 %v6726_v18, %v6725_v59  ;;  %v8663_v6 = vpack.c.bf16 %v6976_v48, %v6975_v40  ;;  %vm13746_vm13 = vmmov %vm13745_vm6  ;;  %v6981_v14 = vld [vmem:[#allocation2 + $0x2d0] sm:$0xff] }
 0xc01   :  { %vm6558_vm9 = vmand %vm6509_vm11, %vm6551_vm7  ;;  %v8555_v35 = vpack.c.bf16 %v6712_v17, %v6711_v50  ;;  %v8621_v56 = vpack.c.bf16 %v6874_v28, %v6873_v25  ;;  %v8666_v10 = vpack.c.bf16 %v6978_v36, %v6977_v44  ;;  %v8624_v51 = vpack.c.bf16 %v6876_v5, %v6875_v62  ;;  %v6982_v22 = vld [vmem:[#allocation2 + $0x2d8] sm:$0xff]  ;;  %v6879_v8 = vld [vmem:[#allocation2 + $0x1f0] sm:$0xff] }
 0xc02   :  { %v8319_v29 = vsel %vm6558_vm9, 1.0, %v13420_v16  ;;  %v6715_v16 = vld [vmem:[#allocation2 + $0x160] sm:$0xff]  ;;  %8619 = vmatpush1.bf16.msra.mxu1 %v8618_v3  ;;  %vm13747_vm1 = vmmov %vm13745_vm6  ;;  %v6880_v2 = vld [vmem:[#allocation2 + $0x1f8] sm:$0xff]  ;;  %vm7391_vm0 = vcmask 74752  }
 0xc03   :  { %8541 = vmatpush1.bf16.msra.mxu0 %v8540_v54  ;;  %v6576_v53 = vpack.c.bf16 %v8319_v29, %v8319_v29  ;;  %8662 = vmatprep.subr.bf16.mxu1 %v13539_v47  ;;  %v6979_v54 = vld [vmem:[#allocation2 + $0x2c0] sm:$0xff]  ;;  %vm13748_vm4 = vmmov %vm13747_vm1  ;;  %v6984_v58 = vld [vmem:[#allocation2 + $0x2e8] sm:$0xff]  ;;  %v8630_v29 = vpack.c.bf16 %v6880_v2, %v6879_v8 }
 0xc04   :  { %8542 = vmatprep.subr.bf16.mxu0 %v13539_v47  ;;  %v6983_v23 = vld [vmem:[#allocation2 + $0x2e0] sm:$0xff]  ;;  %v6882_v50 = vld [vmem:[#allocation2 + $0x208] sm:$0xff]  ;;  %v6986_v39 = vld [vmem:[#allocation2 + $0x2f8] sm:$0xff] }
 0xc05   :  { %v8675_v17 = vpack.c.bf16 %v6984_v58, %v6983_v23  ;;  %v6988_v38 = vld [vmem:[#allocation2 + $0x308] sm:$0xff]  ;;  %v6990_v9 = vld [vmem:[#allocation2 + $0x318] sm:$0xff]  ;;  %v6991_v3 = vld [vmem:[#allocation2 + $0x320] sm:$0xff] }
 0xc06   :  { %8321 = vmatmul.mubr.msk.bf16.gmra.mrb[56].mxu0 %vm6577_vm8, %v6574_v27  ;;  %v6878_v27 = vld [vmem:[#allocation2 + $0x1e8] sm:$0xff]  ;;  %v6888_v21 = vld [vmem:[#allocation2 + $0x238] sm:$0xff]  ;;  %v6993_v25 = vld [vmem:[#allocation2 + $0x330] sm:$0xff] }
 0xc07   :  { %6652 = vmatprep.mubr.bf16.mxu0 %v13721_v11  ;;  %8544 = vmatpush1.bf16.msra.mxu0 %v8543_v46  ;;  %v8669_v46 = vpack.c.bf16 %v6980_v33, %v6979_v54  ;;  %v8627_v37 = vpack.c.bf16 %v6878_v27, %v6877_v31  ;;  %v6886_v15 = vld [vmem:[#allocation2 + $0x228] sm:$0xff]  ;;  %v6994_v28 = vld [vmem:[#allocation2 + $0x338] sm:$0xff]  ;;  %v6995_v36 = vld [vmem:[#allocation2 + $0x340] sm:$0xff] }
 0xc08   :  { %8545 = vmatprep.subr.bf16.mxu0 %v13539_v47  ;;  %v6992_v59 = vld [vmem:[#allocation2 + $0x328] sm:$0xff]  ;;  %v8690_v44 = vpack.c.bf16 %v6994_v28, %v6993_v25  ;;  %v6893_v62 = vld [vmem:[#allocation2 + $0x260] sm:$0xff]  ;;  %v6998_v31 = vld [vmem:[#allocation2 + $0x358] sm:$0xff] }
 0xc09   :  { %v6890_v40 = vld [vmem:[#allocation2 + $0x248] sm:$0xff]  ;;  %v8687_v48 = vpack.c.bf16 %v6992_v59, %v6991_v3  ;;  %v7001_v58 = vld [vmem:[#allocation2 + $0x370] sm:$0xff]  ;;  %vm13750_vm3 = vmmov %vm13747_vm1 }
 0xc0a   :  { %v6894_v5 = vld [vmem:[#allocation2 + $0x268] sm:$0xff]  ;;  %v7186_v3 = vld [vmem:[#allocation2 + $0x498] sm:$0xff]  ;;  %v7083_v59 = vld [vmem:[#allocation2 + $0x3b0] sm:$0xff] }
 0xc0b   :  { %8547 = vmatpush1.bf16.msra.mxu0 %v8546_v26  ;;  %v7000_v8 = vld [vmem:[#allocation2 + $0x368] sm:$0xff]  ;;  %v7085_v25 = vld [vmem:[#allocation2 + $0x3c0] sm:$0xff]  ;;  %vm13751_vm12 = vmmov %vm13747_vm1 }
 0xc0c   :  { %8548 = vmatprep.subr.bf16.mxu0 %v13539_v47  ;;  %v7086_v28 = vld [vmem:[#allocation2 + $0x3c8] sm:$0xff] }
 0xc0e   :  { %8322 = vmatmul.mubr.msk.bf16.gmra.mrb[60].mxu0 %vm6577_vm8, %v6575_v60 }
 0xc0f   :  { %6662 = vmatprep.mubr.bf16.mxu0 %v13721_v11  ;;  %8550 = vmatpush1.bf16.msra.mxu0 %v8549_v45  ;;  %v6716_v11 = vld [vmem:[#allocation2 + $0x168] sm:$0xff]  ;;  %v8672_v45 = vpack.c.bf16 %v6982_v22, %v6981_v14  ;;  %v6895_v14 = vld [vmem:[#allocation2 + $0x270] sm:$0xff]  ;;  %v6896_v22 = vld [vmem:[#allocation2 + $0x278] sm:$0xff] }
 0xc10   :  { %8551 = vmatprep.subr.bf16.mxu0 %v13539_v47  ;;  %v8561_v12 = vpack.c.bf16 %v6716_v11, %v6715_v16  ;;  %v6883_v11 = vld [vmem:[#allocation2 + $0x210] sm:$0xff]  ;;  %v8654_v2 = vpack.c.bf16 %v6896_v22, %v6895_v14 }
 0xc11   :  { %v7091_v22 = vld [vmem:[#allocation2 + $0x3f0] sm:$0xff] }
 0xc13   :  { %8553 = vmatpush1.bf16.msra.mxu0 %v8552_v7  ;;  %v6881_v7 = vld [vmem:[#allocation2 + $0x200] sm:$0xff] }
 0xc14   :  { %8554 = vmatprep.subr.bf16.mxu0 %v13539_v47 }
 0xc16   :  { %8323 = vmatmul.mubr.msk.bf16.gmra.mrb[64].mxu0 %vm6577_vm8, %v6576_v53  ;;  %vm13749_vm8 = vmmov %vm13747_vm1 }
 0xc17   :  { %8556 = vmatpush1.bf16.msra.mxu0 %v8555_v35  ;;  %v6985_v35 = vld [vmem:[#allocation2 + $0x2f0] sm:$0xff] }
 0xc18   :  { %8557 = vmatprep.subr.bf16.mxu0 %v13539_v47  ;;  %v8678_v30 = vpack.c.bf16 %v6986_v39, %v6985_v35  ;;  %v7179_v39 = vld [vmem:[#allocation2 + $0x460] sm:$0xff] }
 0xc1b   :  { %8559 = vmatpush1.bf16.msra.mxu0 %v8558_v55  ;;  %v8633_v55 = vpack.c.bf16 %v6882_v50, %v6881_v7  ;;  %v6899_v50 = vld [vmem:[#allocation2 + $0x290] sm:$0xff] }
 0xc1c   :  { %8560 = vmatprep.subr.bf16.mxu0 %v13539_v47 }
 0xc1f   :  { %8562 = vmatpush1.bf16.msra.mxu0 %v8561_v12  ;;  %v6884_v12 = vld [vmem:[#allocation2 + $0x218] sm:$0xff] }
 0xc20   :  { %8563 = vmatprep.subr.bf16.mxu0 %v13539_v47  ;;  %v8636_v43 = vpack.c.bf16 %v6884_v12, %v6883_v11  ;;  %v7077_v12 = vld [vmem:[#allocation2 + $0x380] sm:$0xff] }
 0xc23   :  { %8565 = vmatpush1.bf16.msra.mxu0 %v8564_v0  ;;  %v6987_v0 = vld [vmem:[#allocation2 + $0x300] sm:$0xff] }
 0xc24   :  { %8566 = vmatprep.subr.bf16.mxu0 %v13539_v47  ;;  %v8681_v1 = vpack.c.bf16 %v6988_v38, %v6987_v0  ;;  %v7181_v38 = vld [vmem:[#allocation2 + $0x470] sm:$0xff] }
 0xc27   :  { %8568 = vmatpush1.bf16.msra.mxu0 %v8567_v24  ;;  %v6885_v24 = vld [vmem:[#allocation2 + $0x220] sm:$0xff] }
 0xc28   :  { %8569 = vmatprep.subr.bf16.mxu0 %v13539_v47  ;;  %v8639_v41 = vpack.c.bf16 %v6886_v15, %v6885_v24  ;;  %v7079_v15 = vld [vmem:[#allocation2 + $0x390] sm:$0xff] }
 0xc2b   :  { %8571 = vmatpush1.bf16.msra.mxu0 %v8570_v63  ;;  %v6989_v63 = vld [vmem:[#allocation2 + $0x310] sm:$0xff] }
 0xc2c   :  { %8572 = vmatprep.subr.bf16.mxu0 %v13539_v47  ;;  %v8684_v57 = vpack.c.bf16 %v6990_v9, %v6989_v63  ;;  %v7183_v9 = vld [vmem:[#allocation2 + $0x480] sm:$0xff] }
 0xc2f   :  { %8574 = vmatpush1.bf16.msra.mxu0 %v8573_v19  ;;  %v6887_v19 = vld [vmem:[#allocation2 + $0x230] sm:$0xff] }
 0xc30   :  { %8575 = vmatprep.subr.bf16.mxu0 %v13539_v47  ;;  %v8642_v18 = vpack.c.bf16 %v6888_v21, %v6887_v19  ;;  %v7082_v21 = vld [vmem:[#allocation2 + $0x3a8] sm:$0xff] }
 0xc33   :  { %8577 = vmatpush1.bf16.msra.mxu0 %v8576_v49  ;;  %v6889_v49 = vld [vmem:[#allocation2 + $0x240] sm:$0xff] }
 0xc34   :  { %8620 = vmatprep.subr.bf16.mxu0 %v13539_v47 }
 0xcd1   :  { %v6634_v42 = vpop.f32.mrb[52].mxu0 }
 0xcd2   :  { %v6636_v34 = vpop.f32.mrb[53].mxu0 }
 0xcd3   :  { %v6638_v32 = vpop.f32.mrb[54].mxu0  ;;  %8325 = vmatprep.mubr.msk.f32.mxu1 %vm13745_vm6, %v6636_v34  ;;  %v6892_v34 = vld [vmem:[#allocation2 + $0x258] sm:$0xff] }
 0xcd4   :  { %v6640_v4 = vpop.f32.mrb[55].mxu0  ;;  %6868 = vmatmul.mubr.f32.vlgmr.msra.gmra.mrb[48].mxu1 %v6634_v42  ;;  %v8645_v42 = vpack.c.bf16 %v6890_v40, %v6889_v49  ;;  %v7188_v40 = vld [vmem:[#allocation2 + $0x4a8] sm:$0xff] }
 0xcd5   :  { %8324 = vmatprep.mubr.msk.f32.mxu0 %vm13746_vm13, %v6640_v4  ;;  %8664 = vmatpush1.bf16.msra.mxu1 %v8663_v6  ;;  %v6891_v6 = vld [vmem:[#allocation2 + $0x250] sm:$0xff] }
 0xcd6   :  { %6795 = vmatmul.mubr.f32.vlgmr.msra.gmra.mrb[68].mxu0 %v6638_v32  ;;  %8665 = vmatprep.subr.bf16.mxu1 %v13539_v47  ;;  %v6996_v32 = vld [vmem:[#allocation2 + $0x348] sm:$0xff] }
 0xcd7   :  { %8622 = vmatpush1.bf16.msra.mxu0 %v8621_v56  ;;  %v8648_v56 = vpack.c.bf16 %v6892_v34, %v6891_v6  ;;  %v8693_v54 = vpack.c.bf16 %v6996_v32, %v6995_v36  ;;  %v7189_v6 = vld [vmem:[#allocation2 + $0x4b0] sm:$0xff]  ;;  %v7190_v34 = vld [vmem:[#allocation2 + $0x4b8] sm:$0xff] }
 0xcd8   :  { %8623 = vmatprep.subr.bf16.mxu0 %v13539_v47  ;;  %v7087_v36 = vld [vmem:[#allocation2 + $0x3d0] sm:$0xff]  ;;  %v7088_v32 = vld [vmem:[#allocation2 + $0x3d8] sm:$0xff] }
 0xcd9   :  { %8667 = vmatpush1.bf16.msra.mxu1 %v8666_v10  ;;  %v13001_v61 = vpop.f32.mrb[56].mxu0 }
 0xcda   :  { %8668 = vmatprep.subr.bf16.mxu1 %v13539_v47  ;;  %v6646_v52 = vpop.f32.mrb[57].mxu0 }
 0xcdb   :  { %8625 = vmatpush1.bf16.msra.mxu0 %v8624_v51  ;;  %v13004_v26 = vpop.f32.mrb[58].mxu0  ;;  %8326 = vmatprep.mubr.msk.f32.mxu0 %vm13747_vm1, %v6646_v52  ;;  %v6997_v51 = vld [vmem:[#allocation2 + $0x350] sm:$0xff] }
 0xcdc   :  { %8626 = vmatprep.subr.bf16.mxu0 %v13539_v47  ;;  %v6650_v60 = vpop.f32.mrb[59].mxu0  ;;  %v8696_v52 = vpack.c.bf16 %v6998_v31, %v6997_v51  ;;  %v7090_v51 = vld [vmem:[#allocation2 + $0x3e8] sm:$0xff] }
 0xcdd   :  { %8670 = vmatpush1.bf16.msra.mxu1 %v8669_v46  ;;  %8327 = vmatprep.mubr.msk.f32.mxu1 %vm13748_vm4, %v6650_v60  ;;  %v8651_v46 = vpack.c.bf16 %v6894_v5, %v6893_v62  ;;  %v6897_v60 = vld [vmem:[#allocation2 + $0x280] sm:$0xff]  ;;  %v7192_v5 = vld [vmem:[#allocation2 + $0x4c8] sm:$0xff] }
 0xcde   :  { %8671 = vmatprep.subr.bf16.mxu1 %v13539_v47  ;;  %v7191_v62 = vld [vmem:[#allocation2 + $0x4c0] sm:$0xff] }
 0xcdf   :  { %8628 = vmatpush1.bf16.msra.mxu0 %v8627_v37  ;;  %v6999_v37 = vld [vmem:[#allocation2 + $0x360] sm:$0xff]  ;;  %v8765_v31 = vpack.c.bf16 %v7192_v5, %v7191_v62  ;;  %v7290_v5 = vld [vmem:[#allocation2 + $0x588] sm:$0xff] }
 0xce0   :  { %8629 = vmatprep.subr.bf16.mxu0 %v13539_v47  ;;  %v8699_v23 = vpack.c.bf16 %v7000_v8, %v6999_v37  ;;  %v7195_v8 = vld [vmem:[#allocation2 + $0x4e0] sm:$0xff] }
 0xce1   :  { %8673 = vmatpush1.bf16.msra.mxu1 %v8672_v45  ;;  %v13011_v53 = vpop.f32.mrb[60].mxu0  ;;  %v6898_v45 = vld [vmem:[#allocation2 + $0x288] sm:$0xff] }
 0xce2   :  { %8674 = vmatprep.subr.bf16.mxu1 %v13539_v47  ;;  %v13014_v13 = vpop.f32.mrb[61].mxu0  ;;  %v8657_v7 = vpack.c.bf16 %v6898_v45, %v6897_v60  ;;  %v7093_v45 = vld [vmem:[#allocation2 + $0x400] sm:$0xff] }
 0xce3   :  { %8631 = vmatpush1.bf16.msra.mxu0 %v8630_v29  ;;  %v13016_v16 = vpop.f32.mrb[62].mxu0  ;;  %v7002_v29 = vld [vmem:[#allocation2 + $0x378] sm:$0xff] }
 0xce4   :  { %8632 = vmatprep.subr.bf16.mxu0 %v13539_v47  ;;  %v13019_v20 = vpop.f32.mrb[63].mxu0  ;;  %v8702_v35 = vpack.c.bf16 %v7002_v29, %v7001_v58  ;;  %v7197_v29 = vld [vmem:[#allocation2 + $0x4f0] sm:$0xff] }
 0xce5   :  { %8676 = vmatpush1.bf16.msra.mxu1 %v8675_v17  ;;  %v6900_v17 = vld [vmem:[#allocation2 + $0x298] sm:$0xff] }
 0xce6   :  { %8677 = vmatprep.subr.bf16.mxu1 %v13539_v47  ;;  %v8660_v11 = vpack.c.bf16 %v6900_v17, %v6899_v50  ;;  %v7095_v17 = vld [vmem:[#allocation2 + $0x410] sm:$0xff] }
 0xce7   :  { %8634 = vmatpush1.bf16.msra.mxu0 %v8633_v55  ;;  %v7180_v55 = vld [vmem:[#allocation2 + $0x468] sm:$0xff] }
 0xce8   :  { %8635 = vmatprep.subr.bf16.mxu0 %v13539_v47  ;;  %v8747_v0 = vpack.c.bf16 %v7180_v55, %v7179_v39  ;;  %v7199_v55 = vld [vmem:[#allocation2 + $0x500] sm:$0xff] }
 0xce9   :  { %8679 = vmatpush1.bf16.msra.mxu1 %v8678_v30  ;;  %v13030_v4 = vpop.f32.mrb[64].mxu0  ;;  %v7078_v30 = vld [vmem:[#allocation2 + $0x388] sm:$0xff] }
 0xcea   :  { %8680 = vmatprep.subr.bf16.mxu1 %v13539_v47  ;;  %v13033_v10 = vpop.f32.mrb[65].mxu0  ;;  %v8705_v24 = vpack.c.bf16 %v7078_v30, %v7077_v12  ;;  %v7097_v30 = vld [vmem:[#allocation2 + $0x420] sm:$0xff] }
 0xceb   :  { %8637 = vmatpush1.bf16.msra.mxu0 %v8636_v43  ;;  %v6668_v33 = vpop.f32.mrb[66].mxu0  ;;  %v7182_v43 = vld [vmem:[#allocation2 + $0x478] sm:$0xff] }
 0xcec   :  { %8638 = vmatprep.subr.bf16.mxu0 %v13539_v47  ;;  %v6669_v27 = vpop.f32.mrb[67].mxu0  ;;  %v8750_v63 = vpack.c.bf16 %v7182_v43, %v7181_v38  ;;  %v7089_v33 = vld [vmem:[#allocation2 + $0x3e0] sm:$0xff]  ;;  %v7201_v43 = vld [vmem:[#allocation2 + $0x510] sm:$0xff] }
 0xced   :  { %8682 = vmatpush1.bf16.msra.mxu1 %v8681_v1  ;;  %v7080_v1 = vld [vmem:[#allocation2 + $0x398] sm:$0xff]  ;;  %v7193_v27 = vld [vmem:[#allocation2 + $0x4d0] sm:$0xff]  ;;  %v8723_v14 = vpack.c.bf16 %v7090_v51, %v7089_v33 }
 0xcee   :  { %8683 = vmatprep.subr.bf16.mxu1 %v13539_v47  ;;  %v8708_v19 = vpack.c.bf16 %v7080_v1, %v7079_v15  ;;  %v7099_v1 = vld [vmem:[#allocation2 + $0x430] sm:$0xff]  ;;  %v7292_v33 = vld [vmem:[#allocation2 + $0x598] sm:$0xff] }
 0xcef   :  { %8640 = vmatpush1.bf16.msra.mxu0 %v8639_v41  ;;  %v7184_v41 = vld [vmem:[#allocation2 + $0x488] sm:$0xff] }
 0xcf0   :  { %8641 = vmatprep.subr.bf16.mxu0 %v13539_v47 }
 0xcf1   :  { %8685 = vmatpush1.bf16.msra.mxu1 %v8684_v57  ;;  %v8753_v57 = vpack.c.bf16 %v7184_v41, %v7183_v9  ;;  %v7203_v41 = vld [vmem:[#allocation2 + $0x520] sm:$0xff] }
 0xcf2   :  { %8686 = vmatprep.subr.bf16.mxu1 %v13539_v47 }
 0xcf3   :  { %8643 = vmatpush1.bf16.msra.mxu0 %v8642_v18  ;;  %v7084_v18 = vld [vmem:[#allocation2 + $0x3b8] sm:$0xff] }
 0xcf4   :  { %8644 = vmatprep.subr.bf16.mxu0 %v13539_v47 }
 0xcf5   :  { %8688 = vmatpush1.bf16.msra.mxu1 %v8687_v48  ;;  %v8714_v48 = vpack.c.bf16 %v7084_v18, %v7083_v59  ;;  %v7103_v18 = vld [vmem:[#allocation2 + $0x450] sm:$0xff] }
 0xcf6   :  { %8689 = vmatprep.subr.bf16.mxu1 %v13539_v47 }
 0xcf7   :  { %8646 = vmatpush1.bf16.msra.mxu0 %v8645_v42 }
 0xcf8   :  { %8647 = vmatprep.subr.bf16.mxu0 %v13539_v47 }
 0xcf9   :  { %8691 = vmatpush1.bf16.msra.mxu1 %v8690_v44  ;;  %v8717_v44 = vpack.c.bf16 %v7086_v28, %v7085_v25  ;;  %v7282_v25 = vld [vmem:[#allocation2 + $0x548] sm:$0xff] }
 0xcfa   :  { %8692 = vmatprep.subr.bf16.mxu1 %v13539_v47 }
 0xcfb   :  { %8649 = vmatpush1.bf16.msra.mxu0 %v8648_v56  ;;  %v8762_v56 = vpack.c.bf16 %v7190_v34, %v7189_v6  ;;  %v7284_v6 = vld [vmem:[#allocation2 + $0x558] sm:$0xff] }
 0xcfc   :  { %8650 = vmatprep.subr.bf16.mxu0 %v13539_v47 }
 0xcfd   :  { %8694 = vmatpush1.bf16.msra.mxu1 %v8693_v54  ;;  %v8720_v54 = vpack.c.bf16 %v7088_v32, %v7087_v36  ;;  %v7286_v36 = vld [vmem:[#allocation2 + $0x568] sm:$0xff] }
 0xcfe   :  { %8695 = vmatprep.subr.bf16.mxu1 %v13539_v47 }
 0xcff   :  { %8652 = vmatpush1.bf16.msra.mxu0 %v8651_v46  ;;  %v7194_v46 = vld [vmem:[#allocation2 + $0x4d8] sm:$0xff] }
 0xd00   :  { %8653 = vmatprep.subr.bf16.mxu0 %v13539_v47  ;;  %v8768_v37 = vpack.c.bf16 %v7194_v46, %v7193_v27  ;;  %v7294_v27 = vld [vmem:[#allocation2 + $0x5a8] sm:$0xff] }
 0xd01   :  { %8697 = vmatpush1.bf16.msra.mxu1 %v8696_v52  ;;  %v7092_v52 = vld [vmem:[#allocation2 + $0x3f8] sm:$0xff] }
 0xd02   :  { %8698 = vmatprep.subr.bf16.mxu1 %v13539_v47  ;;  %v8726_v60 = vpack.c.bf16 %v7092_v52, %v7091_v22  ;;  %v7296_v22 = vld [vmem:[#allocation2 + $0x5b8] sm:$0xff] }
 0xd03   :  { %8655 = vmatpush1.bf16.msra.mxu0 %v8654_v2  ;;  %v7196_v2 = vld [vmem:[#allocation2 + $0x4e8] sm:$0xff] }
 0xd04   :  { %8656 = vmatprep.subr.bf16.mxu0 %v13539_v47  ;;  %v8771_v58 = vpack.c.bf16 %v7196_v2, %v7195_v8  ;;  %v7298_v8 = vld [vmem:[#allocation2 + $0x5c8] sm:$0xff] }
 0xd05   :  { %8700 = vmatpush1.bf16.msra.mxu1 %v8699_v23  ;;  %v7094_v23 = vld [vmem:[#allocation2 + $0x408] sm:$0xff] }
 0xd06   :  { %8701 = vmatprep.subr.bf16.mxu1 %v13539_v47  ;;  %v8729_v50 = vpack.c.bf16 %v7094_v23, %v7093_v45  ;;  %v7300_v45 = vld [vmem:[#allocation2 + $0x5d8] sm:$0xff] }
 0xd07   :  { %8658 = vmatpush1.bf16.msra.mxu0 %v8657_v7  ;;  %v7198_v7 = vld [vmem:[#allocation2 + $0x4f8] sm:$0xff] }
 0xd08   :  { %8659 = vmatprep.subr.bf16.mxu0 %v13539_v47  ;;  %v8774_v39 = vpack.c.bf16 %v7198_v7, %v7197_v29  ;;  %v7302_v29 = vld [vmem:[#allocation2 + $0x5e8] sm:$0xff] }
 0xd09   :  { %8703 = vmatpush1.bf16.msra.mxu1 %v8702_v35  ;;  %v7096_v35 = vld [vmem:[#allocation2 + $0x418] sm:$0xff] }
 0xd0a   :  { %8746 = vmatprep.subr.bf16.mxu1 %v13539_v47  ;;  %v8732_v12 = vpack.c.bf16 %v7096_v35, %v7095_v17  ;;  %v7304_v17 = vld [vmem:[#allocation2 + $0x5f8] sm:$0xff] }
 0xd0b   :  { %8661 = vmatpush1.bf16.msra.mxu0 %v8660_v11  ;;  %v7200_v11 = vld [vmem:[#allocation2 + $0x508] sm:$0xff] }
 0xd0c   :  { %7071 = vmatmul.mubr.f32.vlgmr.msra.gmra.mrb[50].mxu1 %v13004_v26  ;;  %8704 = vmatprep.subr.bf16.mxu0 %v13539_v47  ;;  %v7081_v26 = vld [vmem:[#allocation2 + $0x3a0] sm:$0xff]  ;;  %v8777_v38 = vpack.c.bf16 %v7200_v11, %v7199_v55  ;;  %v7306_v55 = vld [vmem:[#allocation2 + $0x608] sm:$0xff] }
 0xd0d   :  { %8748 = vmatpush1.bf16.msra.mxu1 %v8747_v0  ;;  %8329 = vmatprep.mubr.msk.f32.mxu1 %vm13749_vm8, %v13019_v20  ;;  %v7185_v20 = vld [vmem:[#allocation2 + $0x490] sm:$0xff]  ;;  %v7098_v0 = vld [vmem:[#allocation2 + $0x428] sm:$0xff] }
 0xd0e   :  { %6969 = vmatmul.mubr.f32.vlgmr.msra.gmra.mrb[70].mxu0 %v13001_v61  ;;  %8749 = vmatprep.subr.bf16.mxu1 %v13539_v47  ;;  %v8711_v61 = vpack.c.bf16 %v7082_v21, %v7081_v26  ;;  %v8756_v49 = vpack.c.bf16 %v7186_v3, %v7185_v20  ;;  %v8735_v15 = vpack.c.bf16 %v7098_v0, %v7097_v30  ;;  %v7101_v21 = vld [vmem:[#allocation2 + $0x440] sm:$0xff]  ;;  %v7205_v3 = vld [vmem:[#allocation2 + $0x530] sm:$0xff]  ;;  %v7308_v30 = vld [vmem:[#allocation2 + $0x618] sm:$0xff] }
 0xd0f   :  { %8706 = vmatpush1.bf16.msra.mxu0 %v8705_v24  ;;  %8328 = vmatprep.mubr.msk.f32.mxu0 %vm13750_vm3, %v13014_v13  ;;  %v7187_v13 = vld [vmem:[#allocation2 + $0x4a0] sm:$0xff]  ;;  %v7202_v24 = vld [vmem:[#allocation2 + $0x518] sm:$0xff] }
 0xd10   :  { %8707 = vmatprep.subr.bf16.mxu0 %v13539_v47  ;;  %v8759_v42 = vpack.c.bf16 %v7188_v40, %v7187_v13  ;;  %v8780_v9 = vpack.c.bf16 %v7202_v24, %v7201_v43 }
 0xd11   :  { %8751 = vmatpush1.bf16.msra.mxu1 %v8750_v63  ;;  %v7100_v63 = vld [vmem:[#allocation2 + $0x438] sm:$0xff] }
 0xd12   :  { %8752 = vmatprep.subr.bf16.mxu1 %v13539_v47  ;;  %v8738_v26 = vpack.c.bf16 %v7100_v63, %v7099_v1 }
 0xd13   :  { %8709 = vmatpush1.bf16.msra.mxu0 %v8708_v19  ;;  %v7204_v19 = vld [vmem:[#allocation2 + $0x528] sm:$0xff] }
 0xd14   :  { %8710 = vmatprep.subr.bf16.mxu0 %v13539_v47  ;;  %v8783_v20 = vpack.c.bf16 %v7204_v19, %v7203_v41 }
 0xd15   :  { %8754 = vmatpush1.bf16.msra.mxu1 %v8753_v57  ;;  %v7102_v57 = vld [vmem:[#allocation2 + $0x448] sm:$0xff] }
 0xd16   :  { %8755 = vmatprep.subr.bf16.mxu1 %v13539_v47  ;;  %v8741_v59 = vpack.c.bf16 %v7102_v57, %v7101_v21 }
 0xd17   :  { %8712 = vmatpush1.bf16.msra.mxu0 %v8711_v61  ;;  %v7206_v61 = vld [vmem:[#allocation2 + $0x538] sm:$0xff] }
 0xd18   :  { %8713 = vmatprep.subr.bf16.mxu0 %v13539_v47  ;;  %v8786_v13 = vpack.c.bf16 %v7206_v61, %v7205_v3 }
 0xd19   :  { %8757 = vmatpush1.bf16.msra.mxu1 %v8756_v49  ;;  %v7104_v49 = vld [vmem:[#allocation2 + $0x458] sm:$0xff] }
 0xd1a   :  { %8758 = vmatprep.subr.bf16.mxu1 %v13539_v47  ;;  %v8744_v40 = vpack.c.bf16 %v7104_v49, %v7103_v18 }
 0xd1b   :  { %8715 = vmatpush1.bf16.msra.mxu0 %v8714_v48  ;;  %v7281_v48 = vld [vmem:[#allocation2 + $0x540] sm:$0xff] }
 0xd1c   :  { %8716 = vmatprep.subr.bf16.mxu0 %v13539_v47  ;;  %v8789_v28 = vpack.c.bf16 %v7282_v25, %v7281_v48 }
 0xd1d   :  { %8760 = vmatpush1.bf16.msra.mxu1 %v8759_v42  ;;  %v7283_v42 = vld [vmem:[#allocation2 + $0x550] sm:$0xff] }
 0xd1e   :  { %8761 = vmatprep.subr.bf16.mxu1 %v13539_v47  ;;  %v8792_v34 = vpack.c.bf16 %v7284_v6, %v7283_v42 }
 0xd1f   :  { %8718 = vmatpush1.bf16.msra.mxu0 %v8717_v44  ;;  %v7285_v44 = vld [vmem:[#allocation2 + $0x560] sm:$0xff] }
 0xd20   :  { %8719 = vmatprep.subr.bf16.mxu0 %v13539_v47  ;;  %v8795_v32 = vpack.c.bf16 %v7286_v36, %v7285_v44 }
 0xd21   :  { %8763 = vmatpush1.bf16.msra.mxu1 %v8762_v56  ;;  %v7288_v56 = vld [vmem:[#allocation2 + $0x578] sm:$0xff] }
 0xd22   :  { %8764 = vmatprep.subr.bf16.mxu1 %v13539_v47 }
 0xd23   :  { %8721 = vmatpush1.bf16.msra.mxu0 %v8720_v54 }
 0xd24   :  { %8722 = vmatprep.subr.bf16.mxu0 %v13539_v47 }
 0xd25   :  { %8766 = vmatpush1.bf16.msra.mxu1 %v8765_v31  ;;  %v7293_v31 = vld [vmem:[#allocation2 + $0x5a0] sm:$0xff] }
 0xd26   :  { %8767 = vmatprep.subr.bf16.mxu1 %v13539_v47  ;;  %v8807_v46 = vpack.c.bf16 %v7294_v27, %v7293_v31 }
 0xd27   :  { %8724 = vmatpush1.bf16.msra.mxu0 %v8723_v14  ;;  %v7295_v14 = vld [vmem:[#allocation2 + $0x5b0] sm:$0xff] }
 0xd28   :  { %8725 = vmatprep.subr.bf16.mxu0 %v13539_v47  ;;  %v8810_v52 = vpack.c.bf16 %v7296_v22, %v7295_v14 }
 0xd29   :  { %8769 = vmatpush1.bf16.msra.mxu1 %v8768_v37  ;;  %v7297_v37 = vld [vmem:[#allocation2 + $0x5c0] sm:$0xff] }
 0xd2a   :  { %8770 = vmatprep.subr.bf16.mxu1 %v13539_v47  ;;  %v8813_v2 = vpack.c.bf16 %v7298_v8, %v7297_v37 }
 0xd2b   :  { %8727 = vmatpush1.bf16.msra.mxu0 %v8726_v60  ;;  %v7299_v60 = vld [vmem:[#allocation2 + $0x5d0] sm:$0xff] }
 0xd2c   :  { %8728 = vmatprep.subr.bf16.mxu0 %v13539_v47  ;;  %v8816_v23 = vpack.c.bf16 %v7300_v45, %v7299_v60 }
 0xd2d   :  { %8772 = vmatpush1.bf16.msra.mxu1 %v8771_v58  ;;  %v7301_v58 = vld [vmem:[#allocation2 + $0x5e0] sm:$0xff] }
 0xd2e   :  { %8773 = vmatprep.subr.bf16.mxu1 %v13539_v47  ;;  %v8819_v7 = vpack.c.bf16 %v7302_v29, %v7301_v58 }
 0xd2f   :  { %8730 = vmatpush1.bf16.msra.mxu0 %v8729_v50  ;;  %v7303_v50 = vld [vmem:[#allocation2 + $0x5f0] sm:$0xff] }
 0xd30   :  { %8731 = vmatprep.subr.bf16.mxu0 %v13539_v47  ;;  %v8822_v35 = vpack.c.bf16 %v7304_v17, %v7303_v50 }
 0xd31   :  { %8775 = vmatpush1.bf16.msra.mxu1 %v8774_v39  ;;  %v7305_v39 = vld [vmem:[#allocation2 + $0x600] sm:$0xff] }
 0xd32   :  { %8776 = vmatprep.subr.bf16.mxu1 %v13539_v47  ;;  %v8825_v11 = vpack.c.bf16 %v7306_v55, %v7305_v39 }
 0xd33   :  { %8733 = vmatpush1.bf16.msra.mxu0 %v8732_v12  ;;  %v7307_v12 = vld [vmem:[#allocation2 + $0x610] sm:$0xff] }
 0xd34   :  { %8734 = vmatprep.subr.bf16.mxu0 %v13539_v47  ;;  %v8828_v0 = vpack.c.bf16 %v7308_v30, %v7307_v12 }
 0xd35   :  { %8778 = vmatpush1.bf16.msra.mxu1 %v8777_v38 }
 0xd36   :  { %8779 = vmatprep.subr.bf16.mxu1 %v13539_v47 }
 0xd37   :  { %8736 = vmatpush1.bf16.msra.mxu0 %v8735_v15 }
 0xd38   :  { %8737 = vmatprep.subr.bf16.mxu0 %v13539_v47 }
 0xd39   :  { %8781 = vmatpush1.bf16.msra.mxu1 %v8780_v9 }
 0xd3a   :  { %8782 = vmatprep.subr.bf16.mxu1 %v13539_v47 }
 0xd3b   :  { %8739 = vmatpush1.bf16.msra.mxu0 %v8738_v26 }
 0xd3c   :  { %8740 = vmatprep.subr.bf16.mxu0 %v13539_v47 }
 0xd3d   :  { %8784 = vmatpush1.bf16.msra.mxu1 %v8783_v20 }
 0xd3e   :  { %8785 = vmatprep.subr.bf16.mxu1 %v13539_v47 }
 0xd3f   :  { %8742 = vmatpush1.bf16.msra.mxu0 %v8741_v59 }
 0xd40   :  { %8743 = vmatprep.subr.bf16.mxu0 %v13539_v47 }
 0xd41   :  { %8787 = vmatpush1.bf16.msra.mxu1 %v8786_v13 }
 0xd43   :  { %8745 = vmatpush1.bf16.msra.mxu0 %v8744_v40 }
 0xd44   :  { %7275 = vmatmul.mubr.f32.vlgmr.msra.gmra.mrb[52].mxu1 %v13016_v16  ;;  %8788 = vmatprep.subr.bf16.mxu0 %v13539_v47  ;;  %v7287_v16 = vld [vmem:[#allocation2 + $0x570] sm:$0xff] }
 0xd45   :  { %v8798_v62 = vpack.c.bf16 %v7288_v56, %v7287_v16 }
 0xd46   :  { %7173 = vmatmul.mubr.f32.vlgmr.msra.gmra.mrb[72].mxu0 %v13011_v53  ;;  %v7289_v53 = vld [vmem:[#allocation2 + $0x580] sm:$0xff] }
 0xd47   :  { %8790 = vmatpush1.bf16.msra.mxu0 %v8789_v28  ;;  %8330 = vmatprep.mubr.msk.f32.mxu0 %vm13751_vm12, %v13033_v10  ;;  %v8801_v54 = vpack.c.bf16 %v7290_v5, %v7289_v53  ;;  %v7291_v10 = vld [vmem:[#allocation2 + $0x590] sm:$0xff] }
 0xd48   :  { %8791 = vmatprep.subr.bf16.mxu0 %v13539_v47  ;;  %v8804_v51 = vpack.c.bf16 %v7292_v33, %v7291_v10 }
 0xd4b   :  { %8793 = vmatpush1.bf16.msra.mxu0 %v8792_v34 }
 0xd4c   :  { %8794 = vmatprep.subr.bf16.mxu0 %v13539_v47 }
 0xd4f   :  { %8796 = vmatpush1.bf16.msra.mxu0 %v8795_v32 }
 0xd50   :  { %8797 = vmatprep.subr.bf16.mxu0 %v13539_v47 }
 0xd53   :  { %8799 = vmatpush1.bf16.msra.mxu0 %v8798_v62 }
 0xd54   :  { %8800 = vmatprep.subr.bf16.mxu0 %v13539_v47 }
 0xd57   :  { %8802 = vmatpush1.bf16.msra.mxu0 %v8801_v54 }
 0xd58   :  { %8803 = vmatprep.subr.bf16.mxu0 %v13539_v47 }
 0xd5b   :  { %8805 = vmatpush1.bf16.msra.mxu0 %v8804_v51 }
 0xd5c   :  { %8806 = vmatprep.subr.bf16.mxu0 %v13539_v47 }
 0xd5f   :  { %8808 = vmatpush1.bf16.msra.mxu0 %v8807_v46 }
 0xd60   :  { %8809 = vmatprep.subr.bf16.mxu0 %v13539_v47 }
 0xd63   :  { %8811 = vmatpush1.bf16.msra.mxu0 %v8810_v52 }
 0xd64   :  { %8812 = vmatprep.subr.bf16.mxu0 %v13539_v47 }
 0xd67   :  { %8814 = vmatpush1.bf16.msra.mxu0 %v8813_v2 }
 0xd68   :  { %8815 = vmatprep.subr.bf16.mxu0 %v13539_v47 }
 0xd6b   :  { %8817 = vmatpush1.bf16.msra.mxu0 %v8816_v23 }
 0xd6c   :  { %8818 = vmatprep.subr.bf16.mxu0 %v13539_v47 }
 0xd6f   :  { %8820 = vmatpush1.bf16.msra.mxu0 %v8819_v7 }
 0xd70   :  { %8821 = vmatprep.subr.bf16.mxu0 %v13539_v47 }
 0xd73   :  { %8823 = vmatpush1.bf16.msra.mxu0 %v8822_v35 }
 0xd74   :  { %8824 = vmatprep.subr.bf16.mxu0 %v13539_v47 }
 0xd77   :  { %8826 = vmatpush1.bf16.msra.mxu0 %v8825_v11 }
 0xd78   :  { %8827 = vmatprep.subr.bf16.mxu0 %v13539_v47 }
 0xd7b   :  { %8829 = vmatpush1.bf16.msra.mxu0 %v8828_v0 }
 0xd7e   :  { %7377 = vmatmul.mubr.f32.vlgmr.msra.gmra.mrb[74].mxu0 %v13030_v4  ;;  %v8331_v4 = vld [vmem:[%s13121_s10] ss:$0 sm:$0xff] }
 0xda7   :  { %v6869_v38 = vpop.f32.mrb[48].mxu1 }
 0xda8   :  { %v6871_v43 = vpop.f32.mrb[49].mxu1 }
 0xda9   :  { %v6796_v24 = vpop.f32.mrb[68].mxu0 }
 0xdaa   :  { %v6870_v15 = vadd.f32 %v6869_v38, %v6796_v24  ;;  %v6798_v1 = vpop.f32.mrb[69].mxu0 }
 0xddf   :  { %v7072_v63 = vpop.f32.mrb[50].mxu1 }
 0xde0   :  { %v7074_v9 = vpop.f32.mrb[51].mxu1 }
 0xde1   :  { %v6970_v41 = vpop.f32.mrb[70].mxu0 }
 0xde2   :  { %v6974_v19 = vadd.f32 %v6970_v41, %v6870_v15  ;;  %v6972_v26 = vpop.f32.mrb[71].mxu0 }
 0xde4   :  { %v7076_v21 = vadd.f32 %v7072_v63, %v6974_v19 }
 0xe17   :  { %v7276_v57 = vpop.f32.mrb[52].mxu1 }
 0xe18   :  { %v7278_v20 = vpop.f32.mrb[53].mxu1 }
 0xe19   :  { %v7174_v3 = vpop.f32.mrb[72].mxu0 }
 0xe1a   :  { %v7178_v61 = vadd.f32 %v7174_v3, %v7076_v21  ;;  %v7176_v59 = vpop.f32.mrb[73].mxu0 }
 0xe1c   :  { %v7280_v47 = vadd.f32 %v7276_v57, %v7178_v61 }
 0xe51   :  { %v7378_v18 = vpop.f32.mrb[74].mxu0 }
 0xe52   :  { %v7382_v49 = vadd.f32 %v7378_v18, %v7280_v47  ;;  %v7380_v13 = vpop.f32.mrb[75].mxu0 }
 0xe54   :  { %v7390_v40 = vadd.f32 %v8331_v4, %v7382_v49 }
 0xe56   :  { %7392 = vst.msk [vmem:[#allocation5] sm:$0x3] %vm7391_vm0, %v7390_v40 }
 0xe57   :  { %9599 = shalt.err (!%p9596_p12)
}
 0xe58   :  { %s9600_s14 = scalar_lea.hbm %s13122_s11, 32 }
 0xe59   :  { %p9601_p13 = scmp.ne.s32.totalorder %s13122_s11, %s9600_s14  ;;  %p9604_p0 = scmp.lt.u32.totalorder %s9600_s14, %s13122_s11 }
 0xe5b   :  { %p9606_p1 = pnand %p9604_p0, %p9601_p13 }
 0xe5d   :  { %9609 = shalt.err (!%p9606_p1)
}
 0xe5e   :  { %7402 = dma.vmem_to_hbm [thread:$0]  %s7400_s29, 32, %s13122_s11, [#allocation4]  }
 0xe5f   :  { %9612 = dma.done.wait [#allocation4], 32  }
 0xe60   :  { %9613 = vsyncadd [#allocation4], 4294967264 }
 0xe61   :  { %7406 = vsyncpa [#allocation3], 1 }
 0xe62   :  { %7407 = vsyncpa [#allocation4], 1 }

</bundles_post_ra>
